<compile_context>
chip_gen: v5e
topology: v5e:2x2
jax: 0.10.0
libtpu: 0.0.40
codegen_flags: <defaults>
</compile_context>

<pallas_src>
import jax
import jax.numpy as jnp
from jax.experimental import pallas as pl
from jax.experimental.pallas import tpu as pltpu


# ----------------------------- Pallas kernel ---------------------------------


def _mlp_kernel(x_ref, w1_ref, b1_ref, w2_ref, b2_ref, o_ref):
    # x_ref : (TB, D_in)     VMEM, x's native dtype (cast to weight dtype in-kernel)
    # w1_ref: (D_in, D_hid)  VMEM, bf16 (default) - resident across grid steps
    # b1_ref: (1, D_hid)     VMEM, f32
    # w2_ref: (D_hid, D_out) VMEM, bf16 (default) - resident across grid steps
    # b2_ref: (1, D_out)     VMEM, f32
    # o_ref : (TB, D_out)    VMEM, out_dtype (bf16 by default)
    x = x_ref[...].astype(w1_ref.dtype)          # cast on VPU, avoids wrapper HBM pass
    # layer1: x @ W1 + b1 (MXU, f32 accumulation; epilogue in f32 - right for v5e too)
    h = jnp.dot(x, w1_ref[...], preferred_element_type=jnp.float32) + b1_ref[...]
    # relu (f32 on the VPU)
    h = jnp.maximum(h, 0.0)
    # layer2: cast(h) @ W2 + b2
    y = jnp.dot(h.astype(w2_ref.dtype), w2_ref[...],
                preferred_element_type=jnp.float32) + b2_ref[...]
    o_ref[...] = y.astype(o_ref.dtype)


# ----------------------------- Parameter prep (one-time) ----------------------


def _pad_amt(n, m):
    return (-n) % m


def prepare_params(w1, b1, w2, b2, *, weight_dtype=jnp.bfloat16):
    """One-time prep, outside the per-call path: reshape torch-style 1-D biases to
    (1, D), zero-pad feature dims to multiples of 128 (lane-dense), cast weights
    to `weight_dtype` (bf16 by default; use jnp.float32 for full-f32 numerics)."""
    d_in, d_hid = w1.shape
    d_out = w2.shape[1]
    b1 = jnp.reshape(b1, (1, -1))
    b2 = jnp.reshape(b2, (1, -1))

    p_in, p_hid, p_out = _pad_amt(d_in, 128), _pad_amt(d_hid, 128), _pad_amt(d_out, 128)
    # Zero-padding is semantics-preserving: padded input features hit zero weight rows,
    # padded hidden units are exactly zero after ReLU, padded output cols are sliced off.
    if p_in or p_hid:
        w1 = jnp.pad(w1, ((0, p_in), (0, p_hid)))
    if p_hid:
        b1 = jnp.pad(b1, ((0, 0), (0, p_hid)))
    if p_hid or p_out:
        w2 = jnp.pad(w2, ((0, p_hid), (0, p_out)))
    if p_out:
        b2 = jnp.pad(b2, ((0, 0), (0, p_out)))

    return {
        "w1": w1.astype(weight_dtype),
        "b1": b1.astype(jnp.float32),
        "w2": w2.astype(weight_dtype),
        "b2": b2.astype(jnp.float32),
        "d_in": d_in,
        "d_out": d_out,
    }


# ----------------------------- Wrapper ----------------------------------------


def mlp_forward(x, params, *, tb=None, out_dtype=jnp.bfloat16):
    """Fused Linear -> ReLU -> Linear via a single batch-tiled Pallas kernel.

    `params` must come from prepare_params (padded, weight-dtype-cast, cached across
    calls). x is passed in its native dtype; the kernel casts it for the MXU.
    """
    w1, b1, w2, b2 = params["w1"], params["b1"], params["w2"], params["b2"]
    d_in, d_out = params["d_in"], params["d_out"]

    B, x_din = x.shape
    assert x_din == d_in, f"x feature dim {x_din} != layer1 in_features {d_in}"
    Dip, Dhp = w1.shape
    Dop = w2.shape[1]

    if tb is None:
        # >=4 even grid steps for v7x megacore at moderate B; 512 amortizes per-step
        # overhead on v5e/v6e for large batches. Never over-pad tiny batches.
        tb = 512 if B >= 4096 else 256
        tb = min(tb, (B + 7) // 8 * 8)
    assert tb % 8 == 0, "tile batch must be a multiple of 8 (sublane constraint)"

    pB, pIn = _pad_amt(B, tb), Dip - d_in
    if pB or pIn:
        x_p = jnp.pad(x, ((0, pB), (0, pIn)))
    else:
        x_p = x
    Bp = B + pB

    out_itemsize = jnp.dtype(out_dtype).itemsize
    w_bytes = w1.size * w1.dtype.itemsize + w2.size * w2.dtype.itemsize
    # VMEM budget: 2 pipeline buffers per operand (weights included) + f32 hidden temp.
    vmem_bytes = (2 * tb * Dip * x_p.dtype.itemsize        # x tile (double-buffered)
                  + 2 * tb * Dop * out_itemsize            # out tile (double-buffered)
                  + 2 * w_bytes                            # resident W1 + W2
                  + 2 * 4 * (Dhp + Dop)                    # biases (f32)
                  + 4 * tb * Dhp)                          # f32 hidden activation
    assert vmem_bytes < 32 * 1024 * 1024, (
        f"~{vmem_bytes / 2**20:.1f} MiB exceeds the ~32 MiB scoped-VMEM budget "
        "(v7x has only 64 MiB physical VMEM)")
    # TODO(synk): add a D_hid-tiled accumulator variant for layers too large for VMEM.

    flops = 2 * Bp * (Dip * Dhp + Dhp * Dop)
    bytes_accessed = (x_p.size * x_p.dtype.itemsize + w_bytes
                      + (b1.size + b2.size) * 4 + Bp * Dop * out_itemsize)

    out_p = pl.pallas_call(
        _mlp_kernel,
        out_shape=jax.ShapeDtypeStruct((Bp, Dop), out_dtype),
        grid=(Bp // tb,),
        in_specs=[
            pl.BlockSpec((tb, Dip), lambda i: (i, 0)),    # x: tiled over batch
            pl.BlockSpec((Dip, Dhp), lambda i: (0, 0)),   # W1: VMEM-resident
            pl.BlockSpec((1, Dhp), lambda i: (0, 0)),     # b1: VMEM-resident
            pl.BlockSpec((Dhp, Dop), lambda i: (0, 0)),   # W2: VMEM-resident
            pl.BlockSpec((1, Dop), lambda i: (0, 0)),     # b2: VMEM-resident
        ],
        out_specs=pl.BlockSpec((tb, Dop), lambda i: (i, 0)),
        compiler_params=pltpu.CompilerParams(
            dimension_semantics=("parallel",)),
        cost_estimate=pl.CostEstimate(
            flops=flops, transcendentals=0, bytes_accessed=bytes_accessed),
    )(x_p, w1, b1, w2, b2)

    if pB or (Dop != d_out):
        return out_p[:B, :d_out]
    return out_p


# ----------------------------- Parameter setup --------------------------------


def init_params(key, d_in, d_hid, d_out, dtype=jnp.float32):
    """Deterministic synthetic weights (nn.Linear-like fan_in scaling, 1-D biases)."""
    k1, k2, k3, k4 = jax.random.split(key, 4)
    lim1 = 1.0 / jnp.sqrt(d_in)
    lim2 = 1.0 / jnp.sqrt(d_hid)
    w1 = jax.random.uniform(k1, (d_in, d_hid), dtype, -lim1, lim1)
    b1 = jax.random.uniform(k2, (d_hid,), dtype, -lim1, lim1)
    w2 = jax.random.uniform(k3, (d_hid, d_out), dtype, -lim2, lim2)
    b2 = jax.random.uniform(k4, (d_out,), dtype, -lim2, lim2)
    return w1, b1, w2, b2


# ----------------------------- Main -------------------------------------------

if __name__ == "__main__":
    # Lane/sublane-dense shapes; B=1024 with tb=256 -> 4 parallel grid steps (v7x-friendly).
    B, D_IN, D_HID, D_OUT = 1024, 256, 512, 256

    key = jax.random.PRNGKey(0)
    kx, kp = jax.random.split(key)
    x = jax.random.normal(kx, (B, D_IN), jnp.float32)
    w1, b1, w2, b2 = init_params(kp, D_IN, D_HID, D_OUT)

    params = prepare_params(w1, b1, w2, b2)   # one-time pad + bf16 cast (cache & reuse)

    out = mlp_forward(x, params)
    out = jax.block_until_ready(out)
    assert out.shape == (B, D_OUT)
    assert out.dtype == jnp.bfloat16

    # Reference with the same bf16-operand / f32-accumulate numerics as the kernel.
    # NOTE: bf16 operands intentionally diverge from a pure-f32 torch module; use
    # prepare_params(weight_dtype=jnp.float32) + out_dtype=jnp.float32 for full f32.
    xb = x.astype(jnp.bfloat16)
    w1b = w1.astype(jnp.bfloat16)
    w2b = w2.astype(jnp.bfloat16)
    h_ref = jnp.maximum(
        jnp.dot(xb, w1b, preferred_element_type=jnp.float32) + b1[None, :], 0.0)
    ref = jnp.dot(h_ref.astype(jnp.bfloat16), w2b,
                  preferred_element_type=jnp.float32) + b2[None, :]
    assert jnp.allclose(out.astype(jnp.float32), ref, atol=2e-2, rtol=2e-2), \
        "mismatch vs reference"

    print("KERNEL_OK")
</pallas_src>

<mosaic_0001>
module attributes {stable_mosaic.version = 11 : i64} {
  func.func @_mlp_kernel(%arg0: i32, %arg1: memref<256x256xf32, #tpu.memory_space<vmem>>, %arg2: memref<256x512xbf16, #tpu.memory_space<vmem>>, %arg3: memref<1x512xf32, #tpu.memory_space<vmem>>, %arg4: memref<512x256xbf16, #tpu.memory_space<vmem>>, %arg5: memref<1x256xf32, #tpu.memory_space<vmem>>, %arg6: memref<256x256xbf16, #tpu.memory_space<vmem>>) attributes {dimension_semantics = [#tpu.dimension_semantics<parallel>], iteration_bounds = array<i64: 4>, scalar_prefetch = 0 : i64, scratch_operands = 0 : i64, tpu.core_type = #tpu.core_type<tc>, window_params = [{transform_indices = @transform_0, window_bounds = array<i64: 256, 256>}, {pipeline_mode = #tpu.pipeline_mode<synchronous>, transform_indices = @transform_1, window_bounds = array<i64: 256, 512>}, {pipeline_mode = #tpu.pipeline_mode<synchronous>, transform_indices = @transform_2, window_bounds = array<i64: 1, 512>}, {pipeline_mode = #tpu.pipeline_mode<synchronous>, transform_indices = @transform_3, window_bounds = array<i64: 512, 256>}, {pipeline_mode = #tpu.pipeline_mode<synchronous>, transform_indices = @transform_4, window_bounds = array<i64: 1, 256>}, {transform_indices = @transform_5, window_bounds = array<i64: 256, 256>}]} {
    %c0 = arith.constant 0 : index
    %c0_0 = arith.constant 0 : index
    %0 = vector.load %arg1[%c0, %c0_0] : memref<256x256xf32, #tpu.memory_space<vmem>>, vector<256x256xf32>
    %1 = arith.truncf %0 : vector<256x256xf32> to vector<256x256xbf16>
    %c0_1 = arith.constant 0 : index
    %c0_2 = arith.constant 0 : index
    %2 = vector.load %arg2[%c0_1, %c0_2] : memref<256x512xbf16, #tpu.memory_space<vmem>>, vector<256x512xbf16>
    %cst = arith.constant dense<0.000000e+00> : vector<256x512xf32>
    %3 = tpu.matmul %1, %2, %cst {dimension_numbers = #tpu.dot_dimension_numbers<[1], [0], [0], [1], [0, 0, 1, 1], [], []>} : vector<256x256xbf16>, vector<256x512xbf16>, vector<256x512xf32> -> vector<256x512xf32>
    %c0_3 = arith.constant 0 : index
    %c0_4 = arith.constant 0 : index
    %4 = vector.load %arg3[%c0_3, %c0_4] : memref<1x512xf32, #tpu.memory_space<vmem>>, vector<1x512xf32>
    %5 = vector.broadcast %4 : vector<1x512xf32> to vector<256x512xf32>
    %6 = arith.addf %3, %5 : vector<256x512xf32>
    %cst_5 = arith.constant 0.000000e+00 : f32
    %7 = vector.broadcast %cst_5 : f32 to vector<256x512xf32>
    %8 = arith.maximumf %6, %7 : vector<256x512xf32>
    %9 = arith.truncf %8 : vector<256x512xf32> to vector<256x512xbf16>
    %c0_6 = arith.constant 0 : index
    %c0_7 = arith.constant 0 : index
    %10 = vector.load %arg4[%c0_6, %c0_7] : memref<512x256xbf16, #tpu.memory_space<vmem>>, vector<512x256xbf16>
    %cst_8 = arith.constant dense<0.000000e+00> : vector<256x256xf32>
    %11 = tpu.matmul %9, %10, %cst_8 {dimension_numbers = #tpu.dot_dimension_numbers<[1], [0], [0], [1], [0, 0, 1, 1], [], []>} : vector<256x512xbf16>, vector<512x256xbf16>, vector<256x256xf32> -> vector<256x256xf32>
    %c0_9 = arith.constant 0 : index
    %c0_10 = arith.constant 0 : index
    %12 = vector.load %arg5[%c0_9, %c0_10] : memref<1x256xf32, #tpu.memory_space<vmem>>, vector<1x256xf32>
    %13 = vector.broadcast %12 : vector<1x256xf32> to vector<256x256xf32>
    %14 = arith.addf %11, %13 : vector<256x256xf32>
    %15 = arith.truncf %14 : vector<256x256xf32> to vector<256x256xbf16>
    %c0_11 = arith.constant 0 : index
    %c0_12 = arith.constant 0 : index
    %16 = vector.load %arg6[%c0_11, %c0_12] : memref<256x256xbf16, #tpu.memory_space<vmem>>, vector<256x256xbf16>
    tpu.vector_store %arg6[%c0_11, %c0_12], %15 {strides = array<i32>} : memref<256x256xbf16, #tpu.memory_space<vmem>>, vector<256x256xbf16>,
    return
  }
  func.func @transform_0(%arg0: i32) -> (i32, i32) {
    %c0_i32 = arith.constant 0 : i32
    %c0_i32_0 = arith.constant 0 : i32
    return %arg0, %c0_i32 : i32, i32
  }
  func.func @transform_1(%arg0: i32) -> (i32, i32) {
    %c0_i32 = arith.constant 0 : i32
    %c0_i32_0 = arith.constant 0 : i32
    %c0_i32_1 = arith.constant 0 : i32
    return %c0_i32, %c0_i32_0 : i32, i32
  }
  func.func @transform_2(%arg0: i32) -> (i32, i32) {
    %c0_i32 = arith.constant 0 : i32
    %c0_i32_0 = arith.constant 0 : i32
    %c0_i32_1 = arith.constant 0 : i32
    return %c0_i32, %c0_i32_0 : i32, i32
  }
  func.func @transform_3(%arg0: i32) -> (i32, i32) {
    %c0_i32 = arith.constant 0 : i32
    %c0_i32_0 = arith.constant 0 : i32
    %c0_i32_1 = arith.constant 0 : i32
    return %c0_i32, %c0_i32_0 : i32, i32
  }
  func.func @transform_4(%arg0: i32) -> (i32, i32) {
    %c0_i32 = arith.constant 0 : i32
    %c0_i32_0 = arith.constant 0 : i32
    %c0_i32_1 = arith.constant 0 : i32
    return %c0_i32, %c0_i32_0 : i32, i32
  }
  func.func @transform_5(%arg0: i32) -> (i32, i32) {
    %c0_i32 = arith.constant 0 : i32
    %c0_i32_0 = arith.constant 0 : i32
    return %arg0, %c0_i32 : i32, i32
  }
}

</mosaic_0001>

<bundles_post_ra>
// kernel: tpu_custom_call.1
= control target key start
LH: loop header
LB: loop body
LE: loop exit
PB: predicated region body
PF: predicated region fallthrough
CT: control target
= control target key end

     0   :  { %10 = vsyncpa [#allocation3], 0  ;;  %s4979_s0 = inlined_call_operand.hbm [shape: f32[1024,256], index: 0, kind: input, shape index: {}]   ;;  %s4980_s1 = inlined_call_operand.hbm [shape: bf16[256,512], index: 1, kind: input, shape index: {}]   ;;  %s4981_s2 = inlined_call_operand.hbm [shape: f32[1,512], index: 2, kind: input, shape index: {}]   ;;  %s4982_s3 = inlined_call_operand.hbm [shape: bf16[512,256], index: 3, kind: input, shape index: {}]   ;;  %s4983_s4 = inlined_call_operand.vmem [shape: f32[1,256], index: 4, kind: input, shape index: {}]   ;;  %s4984_s5 = inlined_call_operand.hbm [shape: bf16[1024,256], index: 5, kind: output, shape index: {}]  }
   0x1   :  { %12 = vsyncpa [#allocation3 + $0x1], 0 }
   0x2   :  { %13 = vsyncpa [#allocation6], 0 }
   0x3   :  { %14 = vsyncpa [#allocation9], 0 }
   0x4   :  { %15 = vsyncpa [#allocation4], 0 }
   0x5   :  { %17 = vsyncpa [#allocation4 + $0x1], 0  ;;  %s3960_s18 = smov 0   ;;  %s3962_s19 = smov 0  }
   0x6   :  { %s3964_s20 = smov 0   ;;  %s3966_s21 = smov 0  }
   0x7 LB: > { %s3981_s22 = sadd.s32 4294967295, %s3919_s21   ;;  %s2975_s23 = sadd.s32 4294967294, %s3919_s21   ;;  %s3919_s21 = sphi %s3966_s21, %s5110_s21   ;;  %s3915_s20 = sphi %s3964_s20, %s5109_s20   ;;  %s3911_s19 = sphi %s3962_s19, %s5108_s19   ;;  %s3907_s18 = sphi %s3960_s18, %s5107_s18  }
   0x8   : > { %p43_p0 = scmp.ne.s32.totalorder %s3911_s19, %s3907_s18  ;;  %p44_p1 = scmp.eq.s32.totalorder %s3981_s22, 0 }
   0x9   : > { %p151_p2 = scmp.eq.s32.totalorder %s3981_s22, 3  ;;  %p157_p3 = scmp.eq.s32.totalorder %s2975_s23, 3 }
   0xa   : > { %p3990_p4 = por %p44_p1, %p43_p0  ;;  %p2976_p5 = scmp.ge.s32.totalorder %s3919_s21, 1 }
   0xb   : > { %p3995_p6 = por %p157_p3, %p43_p0  ;;  %p164_p7 = scmp.lt.s32.totalorder %s3919_s21, 5 }
   0xc   : > { %s175_s28 = sshll.u32 %s4980_s1, 4  ;;  %s3921_s30 = smov [#allocation5]   ;;  %s176_s28 = int_to_ptr.hbm [resolvable:$true] %s175_s28 }
   0xd   : > { %p4003_p8 = pnand %p2976_p5, %p164_p7  ;;  %s177_s6 = sshll.u32 %s3921_s30, 4  ;;  %s178_s6 = int_to_ptr.vmem [resolvable:$true] %s177_s6 }
   0xe   : > { %s190_s10 = sshll.u32 %s4981_s2, 4  ;;  %s4985_s11 = smov 256   ;;  %s191_s10 = int_to_ptr.hbm [resolvable:$true] %s190_s10 }
   0xf   : > { %p3657_p9 = pneg %p4003_p8  ;;  %s3923_s12 = smov 16  }
  0x10   : > { %s3924_s13 = smov [#allocation7]   ;;  %s201_s17 = sshll.u32 %s4982_s3, 4  ;;  %s202_s17 = int_to_ptr.hbm [resolvable:$true] %s201_s17 }
  0x11   : > { %p4011_p10 = pnand %p3657_p9, %p44_p1  ;;  %s192_s14 = sshll.u32 %s3924_s13, 4  ;;  %s193_s14 = int_to_ptr.vmem [resolvable:$true] %s192_s14 }
  0x12   : > { %s3925_s23 = smov [#allocation8]   ;;  %s3926_s27 = smov 128  }
  0x13   : > { %3660 = dma.hbm_to_vmem [thread:$0]  (!%p4011_p10), %s176_s28, 8192, %s178_s6, [#allocation6], %s4985_s11, %s4985_s11, %s3923_s12  }
  0x14   : > { %3663 = dma.hbm_to_vmem [thread:$0]  (!%p4011_p10), %s191_s10, 64, %s193_s14, [#allocation6]  }
  0x15   : > { %s203_s26 = sshll.u32 %s3925_s23, 4  ;;  %s3927_s28 = smov 8   ;;  %s204_s26 = int_to_ptr.vmem [resolvable:$true] %s203_s26 }
  0x16   : > { %3666 = dma.hbm_to_vmem [thread:$0]  (!%p4011_p10), %s202_s17, 8192, %s204_s26, [#allocation9], %s3926_s27, %s3926_s27, %s3927_s28  }
  0x17   : > { %s4031_s30 = sadd.s32 1, %s3919_s21   ;;  %s30_s8 = sadd.s32 1, %s3915_s20 }
  0x18   : > { %s27_s6 = ssub.s32 %s3919_s21, %s4031_s30  ;;  %p37_p12 = scmp.ne.s32.totalorder %s3915_s20, %s3911_s19 }
  0x19   : > { %p28_p11 = scmp.eq.s32.totalorder %s27_s6, 0  ;;  %p38_p13 = scmp.eq.s32.totalorder %s3919_s21, 0 }
  0x1a   : > { %p4044_p0 = por %p151_p2, %p37_p12  ;;  %p3678_p3 = scmp.lt.s32.totalorder %s3919_s21, 4 }
  0x1b   : > { %s4040_s9 = scalar_select %p28_p11, %s3915_s20, %s30_s8  }
  0x1c   : > { %s220_s13 = sand.u32 1, %s3915_s20   ;;  %s3510_s14 = sshll.u32 %s3919_s21, 9 }
  0x1d   : > { %p39_p5 = por %p38_p13, %p37_p12  ;;  %s2981_s7 = sshll.u32 %s220_s13, 9 }
  0x1e   : > { %s230_s17 = scalar_lea.hbm %s4979_s0, %s3510_s14  ;;  %s224_s26 = scalar_lea.vmem [#allocation2], %s2981_s7 }
  0x1f   : > { %s231_s23 = sshll.u32 %s230_s17, 4  ;;  %s233_s27 = sshll.u32 %s224_s26, 4  ;;  %s232_s23 = int_to_ptr.hbm [resolvable:$true] %s231_s23  ;;  %s234_s27 = int_to_ptr.vmem [resolvable:$true] %s233_s27 }
  0x20   : > { %p4054_p7 = pnand %p3678_p3, %p39_p5  ;;  %s221_s6 = scalar_lea.sflag [#allocation3], %s220_s13 }
  0x21   : > { %s3815_s8 = sshra.s32 %s232_s23, 4  ;;  %s3822_s7 = scalar_lea.hbm %s4979_s0, 2048  ;;  %s3816_s8 = int_to_ptr.hbm [resolvable:$true] %s3815_s8 }
  0x22   : > { %s3817_s11 = scalar_lea.hbm %s3816_s8, 512  ;;  %p3819_p9 = pneg %p4054_p7 }
  0x23   : > { %p3818_p2 = scmp.ne.s32.totalorder %s3816_s8, %s3817_s11  ;;  %p3823_p12 = scmp.lt.s32.totalorder %s3816_s8, %s4979_s0 }
  0x24   : > { %p3824_p13 = scmp.lt.s32.totalorder %s3822_s7, %s3817_s11 }
  0x25   : > { %p3820_p10 = pnand %p3819_p9, %p3818_p2 }
  0x26   : > { %p3825_p3 = por %p3824_p13, %p3823_p12 }
  0x27   : > { %p3821_p11 = pneg %p3820_p10 }
  0x29   : > { %p3826_p5 = pnand %p3825_p3, %p3821_p11 }
  0x2b   : > { %3829 = shalt.err (!%p3826_p5)
}
  0x2c   : > { %s5025_s13 = smov 256   ;;  %245 = sbr.rel (%p4003_p8) target bundleno = 1251 (0x4e3), region = 40 }
  0x2d   : > { %3670 = dma.hbm_to_vmem [thread:$0]  (!%p4054_p7), %s232_s23, 8192, %s234_s27, %s221_s6, %s5025_s13, %s5025_s13, %s3923_s12  }
  0x31   : > { %s4074_s26 = sand.u32 1, %s3911_s19  }
  0x32   : > { %s2986_s8 = sshll.u32 %s4074_s26, 9  ;;  %s248_s11 = scalar_lea.sflag [#allocation3], %s4074_s26 }
  0x33   : > { %s4078_s14 = scalar_lea.vmem [#allocation2], %s2986_s8 }
  0x34   : > { %3890 = dma.done.wait (%p3990_p4), %s248_s11, 8192  }
  0x35   : > { %3892 = vsyncadd (%p3990_p4), %s248_s11, 4294959104 }
  0x36   : > { %3894 = dma.done.wait (%p44_p1), [#allocation6], 8256  }
  0x37   : > { %3896 = vsyncadd (%p44_p1), [#allocation6], 4294959040 }
  0x38   : > { %3898 = dma.done.wait (%p44_p1), [#allocation9], 8192  }
  0x39   : > { %3900 = vsyncadd (%p44_p1), [#allocation9], 4294959104  ;;  %v3105_v0 = vld [vmem:[#allocation5 + $0xe0] sm:$0xf]  ;;  %v3541_v1 = vld [vmem:[#allocation5 + $0xec] sm:$0xf0] }
  0x3a   : > { %v3233_v2 = vld [vmem:[#allocation5 + $0x1e0] sm:$0xf]  ;;  %v3106_v3 = vor.u32 %v3541_v1, %v3105_v0  ;;  %v3573_v4 = vld [vmem:[#allocation5 + $0x1ec] sm:$0xf0]  ;;  %v3539_v5 = vld [vmem:[#allocation5 + $0xe4] sm:$0xf] }
  0x3b   : > { %v3107_v6 = vld [vmem:[#allocation5 + $0xf0] sm:$0xf0]  ;;  %v3234_v7 = vor.u32 %v3573_v4, %v3233_v2  ;;  %v3571_v9 = vld [vmem:[#allocation5 + $0x1e4] sm:$0xf]  ;;  %v3089_v11 = vld [vmem:[#allocation5 + $0xc0] sm:$0xf] }
  0x3c   : > { %v3110_v8 = vor.u32 %v3539_v5, %v3107_v6  ;;  %v3235_v10 = vld [vmem:[#allocation5 + $0x1f0] sm:$0xf0]  ;;  %786 = vmatpush.bf16.msra.mxu0 %v3106_v3  ;;  %v3537_v13 = vld [vmem:[#allocation5 + $0xcc] sm:$0xf0]  ;;  %v3217_v14 = vld [vmem:[#allocation5 + $0x1c0] sm:$0xf] }
  0x3d   : > { %v3238_v12 = vor.u32 %v3571_v9, %v3235_v10  ;;  %v3569_v15 = vld [vmem:[#allocation5 + $0x1cc] sm:$0xf0]  ;;  %875 = vmatpush.bf16.msra.mxu1 %v3234_v7  ;;  %v3090_v16 = vor.u32 %v3537_v13, %v3089_v11  ;;  %v3535_v18 = vld [vmem:[#allocation5 + $0xc4] sm:$0xf]  ;;  %v3091_v19 = vld [vmem:[#allocation5 + $0xd0] sm:$0xf0] }
  0x3e   : > { %964 = vmatpush.bf16.msra.mxu2 %v3110_v8  ;;  %v3218_v17 = vor.u32 %v3569_v15, %v3217_v14  ;;  %v3567_v20 = vld [vmem:[#allocation5 + $0x1c4] sm:$0xf]  ;;  %v3094_v21 = vor.u32 %v3535_v18, %v3091_v19  ;;  %v3219_v22 = vld [vmem:[#allocation5 + $0x1d0] sm:$0xf0]  ;;  %v3073_v23 = vld [vmem:[#allocation5 + $0xa0] sm:$0xf] }
  0x3f   : > { %1053 = vmatpush.bf16.msra.mxu3 %v3238_v12  ;;  %v3533_v24 = vld [vmem:[#allocation5 + $0xac] sm:$0xf0]  ;;  %v3222_v25 = vor.u32 %v3567_v20, %v3219_v22  ;;  %v3201_v26 = vld [vmem:[#allocation5 + $0x1a0] sm:$0xf]  ;;  %v3531_v28 = vld [vmem:[#allocation5 + $0xa4] sm:$0xf] }
  0x40   : > { %v3565_v27 = vld [vmem:[#allocation5 + $0x1ac] sm:$0xf0]  ;;  %787 = vmatpush.bf16.msra.mxu0 %v3090_v16  ;;  %v3074_v29 = vor.u32 %v3533_v24, %v3073_v23  ;;  %v3075_v30 = vld [vmem:[#allocation5 + $0xb0] sm:$0xf0]  ;;  %v3563_v31 = vld [vmem:[#allocation5 + $0x1a4] sm:$0xf] }
  0x41   : > { %v3203_v32 = vld [vmem:[#allocation5 + $0x1b0] sm:$0xf0]  ;;  %876 = vmatpush.bf16.msra.mxu1 %v3218_v17  ;;  %v3202_v33 = vor.u32 %v3565_v27, %v3201_v26  ;;  %v3078_v34 = vor.u32 %v3531_v28, %v3075_v30  ;;  %v3057_v35 = vld [vmem:[#allocation5 + $0x80] sm:$0xf]  ;;  %v3529_v36 = vld [vmem:[#allocation5 + $0x8c] sm:$0xf0] }
  0x42   : > { %965 = vmatpush.bf16.msra.mxu2 %v3094_v21  ;;  %v3185_v37 = vld [vmem:[#allocation5 + $0x180] sm:$0xf]  ;;  %v3206_v38 = vor.u32 %v3563_v31, %v3203_v32  ;;  %v3561_v39 = vld [vmem:[#allocation5 + $0x18c] sm:$0xf0]  ;;  %v3527_v40 = vld [vmem:[#allocation5 + $0x84] sm:$0xf]  ;;  %v3058_v44 = vor.u32 %v3529_v36, %v3057_v35 }
  0x43   : > { %1054 = vmatpush.bf16.msra.mxu3 %v3222_v25  ;;  %v3059_v41 = vld [vmem:[#allocation5 + $0x90] sm:$0xf0]  ;;  %v3559_v42 = vld [vmem:[#allocation5 + $0x184] sm:$0xf]  ;;  %v3186_v45 = vor.u32 %v3561_v39, %v3185_v37  ;;  %v3041_v47 = vld [vmem:[#allocation5 + $0x60] sm:$0xf] }
  0x44   : > { %v3187_v43 = vld [vmem:[#allocation5 + $0x190] sm:$0xf0]  ;;  %788 = vmatpush.bf16.msra.mxu0 %v3074_v29  ;;  %v3062_v46 = vor.u32 %v3527_v40, %v3059_v41  ;;  %v3525_v48 = vld [vmem:[#allocation5 + $0x6c] sm:$0xf0]  ;;  %v3169_v49 = vld [vmem:[#allocation5 + $0x160] sm:$0xf] }
  0x45   : > { %877 = vmatpush.bf16.msra.mxu1 %v3202_v33  ;;  %v3190_v50 = vor.u32 %v3559_v42, %v3187_v43  ;;  %v3557_v51 = vld [vmem:[#allocation5 + $0x16c] sm:$0xf0]  ;;  %v3523_v52 = vld [vmem:[#allocation5 + $0x64] sm:$0xf]  ;;  %v3043_v53 = vld [vmem:[#allocation5 + $0x70] sm:$0xf0]  ;;  %v3042_v56 = vor.u32 %v3525_v48, %v3041_v47 }
  0x46   : > { %966 = vmatpush.bf16.msra.mxu2 %v3078_v34  ;;  %v3555_v54 = vld [vmem:[#allocation5 + $0x164] sm:$0xf]  ;;  %v3171_v55 = vld [vmem:[#allocation5 + $0x170] sm:$0xf0]  ;;  %v3170_v57 = vor.u32 %v3557_v51, %v3169_v49  ;;  %v3046_v58 = vor.u32 %v3523_v52, %v3043_v53  ;;  %v3025_v59 = vld [vmem:[#allocation5 + $0x40] sm:$0xf] }
  0x47   : > { %1055 = vmatpush.bf16.msra.mxu3 %v3206_v38  ;;  %v3521_v60 = vld [vmem:[#allocation5 + $0x4c] sm:$0xf0]  ;;  %v3153_v61 = vld [vmem:[#allocation5 + $0x140] sm:$0xf]  ;;  %v3174_v62 = vor.u32 %v3555_v54, %v3171_v55  ;;  %v3519_v0 = vld [vmem:[#allocation5 + $0x44] sm:$0xf] }
  0x48   : > { %789 = vmatpush.bf16.msra.mxu0 %v3058_v44  ;;  %v3553_v63 = vld [vmem:[#allocation5 + $0x14c] sm:$0xf0]  ;;  %v3027_v1 = vld [vmem:[#allocation5 + $0x50] sm:$0xf0]  ;;  %v3551_v2 = vld [vmem:[#allocation5 + $0x144] sm:$0xf]  ;;  %v3026_v4 = vor.u32 %v3521_v60, %v3025_v59 }
  0x49   : > { %878 = vmatpush.bf16.msra.mxu1 %v3186_v45  ;;  %v3155_v3 = vld [vmem:[#allocation5 + $0x150] sm:$0xf0]  ;;  %v3154_v5 = vor.u32 %v3553_v63, %v3153_v61  ;;  %v3030_v6 = vor.u32 %v3519_v0, %v3027_v1  ;;  %v3009_v7 = vld [vmem:[#allocation5 + $0x20] sm:$0xf]  ;;  %v3517_v8 = vld [vmem:[#allocation5 + $0x2c] sm:$0xf0] }
  0x4a   : > { %967 = vmatpush.bf16.msra.mxu2 %v3062_v46  ;;  %v3137_v9 = vld [vmem:[#allocation5 + $0x120] sm:$0xf]  ;;  %v3158_v10 = vor.u32 %v3551_v2, %v3155_v3  ;;  %v3549_v11 = vld [vmem:[#allocation5 + $0x12c] sm:$0xf0]  ;;  %v3515_v12 = vld [vmem:[#allocation5 + $0x24] sm:$0xf]  ;;  %v3010_v16 = vor.u32 %v3517_v8, %v3009_v7 }
  0x4b   : > { %1056 = vmatpush.bf16.msra.mxu3 %v3190_v50  ;;  %v3011_v13 = vld [vmem:[#allocation5 + $0x30] sm:$0xf0]  ;;  %v3547_v14 = vld [vmem:[#allocation5 + $0x124] sm:$0xf]  ;;  %v2993_v17 = vld [vmem:[#allocation5] sm:$0xf]  ;;  %v3138_v19 = vor.u32 %v3549_v11, %v3137_v9 }
  0x4c   : > { %790 = vmatpush.bf16.msra.mxu0 %v3042_v56  ;;  %v3139_v15 = vld [vmem:[#allocation5 + $0x130] sm:$0xf0]  ;;  %v3513_v18 = vld [vmem:[#allocation5 + $0xc] sm:$0xf0]  ;;  %v3014_v20 = vor.u32 %v3515_v12, %v3011_v13  ;;  %v3121_v21 = vld [vmem:[#allocation5 + $0x100] sm:$0xf] }
  0x4d   : > { %879 = vmatpush.bf16.msra.mxu1 %v3170_v57  ;;  %v3545_v22 = vld [vmem:[#allocation5 + $0x10c] sm:$0xf0]  ;;  %v3511_v23 = vld [vmem:[#allocation5 + $0x4] sm:$0xf]  ;;  %v3142_v24 = vor.u32 %v3547_v14, %v3139_v15  ;;  %v2995_v25 = vld [vmem:[#allocation5 + $0x10] sm:$0xf0]  ;;  %v2994_v31 = vor.u32 %v3513_v18, %v2993_v17 }
  0x4e   : > { %968 = vmatpush.bf16.msra.mxu2 %v3046_v58  ;;  %v3543_v26 = vld [vmem:[#allocation5 + $0x104] sm:$0xf]  ;;  %v3123_v27 = vld [vmem:[#allocation5 + $0x110] sm:$0xf0]  ;;  %v3540_v29 = vld [vmem:[#allocation5 + $0xec] sm:$0xf]  ;;  %v3122_v35 = vor.u32 %v3545_v22, %v3121_v21  ;;  %v2998_v36 = vor.u32 %v3511_v23, %v2995_v25 }
  0x4f   : > { %1057 = vmatpush.bf16.msra.mxu3 %v3174_v62  ;;  %v296_v28 = vld [vmem:[%s4078_s14] sm:$0xff]  ;;  %v3115_v30 = vld [vmem:[#allocation5 + $0xf8] sm:$0xf0]  ;;  %v298_v32 = vld [vmem:[%s4078_s14 + $0x10] sm:$0xff]  ;;  %v3126_v39 = vor.u32 %v3543_v26, %v3123_v27  ;;  %s2990_s12 = sshll.u32 %s4074_s26, 8  ;;  %s3640_s27 = sshll.u32 %s3981_s22, 8 }
  0x50   : > { %791 = vmatpush.bf16.msra.mxu0 %v3026_v4  ;;  %v3572_v33 = vld [vmem:[#allocation5 + $0x1ec] sm:$0xf]  ;;  %v3243_v34 = vld [vmem:[#allocation5 + $0x1f8] sm:$0xf0]  ;;  %v3118_v40 = vor.u32 %v3540_v29, %v3115_v30  ;;  %v3113_v41 = vld [vmem:[#allocation5 + $0xe8] sm:$0xf]  ;;  %v4096_v43 = vpack.c.bf16 %v298_v32, %v296_v28  ;;  %s2869_s15 = scalar_lea.hbm %s4984_s5, %s3640_s27 }
  0x51   : > { %880 = vmatpush.bf16.msra.mxu1 %v3154_v5  ;;  %v297_v37 = vld [vmem:[%s4078_s14 + $0x8] sm:$0xff]  ;;  %v299_v38 = vld [vmem:[%s4078_s14 + $0x18] sm:$0xff]  ;;  %v3246_v44 = vor.u32 %v3572_v33, %v3243_v34  ;;  %v300_v62 = vld [vmem:[%s4078_s14 + $0x20] sm:$0xff]  ;;  %s4823_s23 = scalar_lea.vmem [#allocation10], %s2990_s12  ;;  %s2872_s16 = sshll.u32 %s2869_s15, 4  ;;  %s2873_s16 = int_to_ptr.hbm [resolvable:$true] %s2872_s16 }
  0x52   : > { %969 = vmatpush.bf16.msra.mxu2 %v3030_v6  ;;  %v3542_v42 = vld [vmem:[#allocation5 + $0xf4] sm:$0xf0]  ;;  %v3241_v45 = vld [vmem:[#allocation5 + $0x1e8] sm:$0xf]  ;;  %v4098_v47 = vpack.c.bf16 %v299_v38, %v297_v37  ;;  %v3536_v50 = vld [vmem:[#allocation5 + $0xcc] sm:$0xf] }
  0x53   : > { %1058 = vmatpush.bf16.msra.mxu3 %v3158_v10  ;;  %v3574_v46 = vld [vmem:[#allocation5 + $0x1f4] sm:$0xf0]  ;;  %v3114_v48 = vor.u32 %v3542_v42, %v3113_v41  ;;  %v3099_v51 = vld [vmem:[#allocation5 + $0xd8] sm:$0xf0]  ;;  %v3097_v52 = vld [vmem:[#allocation5 + $0xc8] sm:$0xf] }
  0x54   : > { %792 = vmatpush.bf16.msra.mxu0 %v3010_v16  ;;  %v3242_v49 = vor.u32 %v3574_v46, %v3241_v45  ;;  %v3102_v53 = vor.u32 %v3536_v50, %v3099_v51  ;;  %v3538_v54 = vld [vmem:[#allocation5 + $0xd4] sm:$0xf0]  ;;  %v3568_v55 = vld [vmem:[#allocation5 + $0x1cc] sm:$0xf]  ;;  %v3227_v56 = vld [vmem:[#allocation5 + $0x1d8] sm:$0xf0] }
  0x55   : > { %881 = vmatpush.bf16.msra.mxu1 %v3138_v19  ;;  %v3098_v57 = vor.u32 %v3538_v54, %v3097_v52  ;;  %v3230_v58 = vor.u32 %v3568_v55, %v3227_v56  ;;  %v3225_v59 = vld [vmem:[#allocation5 + $0x1c8] sm:$0xf]  ;;  %v3570_v60 = vld [vmem:[#allocation5 + $0x1d4] sm:$0xf0]  ;;  %v302_v63 = vld [vmem:[%s4078_s14 + $0x30] sm:$0xff]  ;;  %s2870_s7 = sshll.u32 %s4823_s23, 4  ;;  %s2871_s7 = int_to_ptr.vmem [resolvable:$true] %s2870_s7 }
  0x56   : > { %970 = vmatpush.bf16.msra.mxu2 %v3014_v20  ;;  %v3226_v61 = vor.u32 %v3570_v60, %v3225_v59  ;;  %v301_v0 = vld [vmem:[%s4078_s14 + $0x28] sm:$0xff]  ;;  %v303_v1 = vld [vmem:[%s4078_s14 + $0x38] sm:$0xff]  ;;  %v4108_v2 = vpack.c.bf16 %v302_v63, %v300_v62  ;;  %v304_v4 = vld [vmem:[%s4078_s14 + $0x40] sm:$0xff]  ;;  %s2857_s22 = scalar_lea.sflag [#allocation4], %s4074_s26  ;;  %s3859_s17 = sshra.s32 %s2873_s16, 4  ;;  %s3860_s17 = int_to_ptr.hbm [resolvable:$true] %s3859_s17 }
  0x57   : > { %1059 = vmatpush.bf16.msra.mxu3 %v3142_v24  ;;  %v4110_v3 = vpack.c.bf16 %v303_v1, %v301_v0  ;;  %v306_v5 = vld [vmem:[%s4078_s14 + $0x50] sm:$0xff]  ;;  %v305_v6 = vld [vmem:[%s4078_s14 + $0x48] sm:$0xff]  ;;  %v307_v7 = vld [vmem:[%s4078_s14 + $0x58] sm:$0xff]  ;;  %s3861_s13 = scalar_lea.hbm %s3860_s17, 256  ;;  %p3866_p7 = scmp.lt.s32.totalorder %s3860_s17, %s4984_s5 }
  0x58   : > { %793 = vmatpush.bf16.msra.mxu0 %v2994_v31  ;;  %v4120_v8 = vpack.c.bf16 %v306_v5, %v304_v4  ;;  %v4122_v9 = vpack.c.bf16 %v307_v7, %v305_v6  ;;  %v3532_v10 = vld [vmem:[#allocation5 + $0xac] sm:$0xf]  ;;  %v3083_v11 = vld [vmem:[#allocation5 + $0xb8] sm:$0xf0]  ;;  %v3081_v12 = vld [vmem:[#allocation5 + $0xa8] sm:$0xf]  ;;  %p3862_p1 = scmp.ne.s32.totalorder %s3860_s17, %s3861_s13 }
  0x59   : > { %882 = vmatpush.bf16.msra.mxu1 %v3122_v35  ;;  %v3086_v13 = vor.u32 %v3532_v10, %v3083_v11  ;;  %v3534_v14 = vld [vmem:[#allocation5 + $0xb4] sm:$0xf0]  ;;  %v3564_v15 = vld [vmem:[#allocation5 + $0x1ac] sm:$0xf]  ;;  %v3211_v16 = vld [vmem:[#allocation5 + $0x1b8] sm:$0xf0] }
  0x5a   : > { %971 = vmatpush.bf16.msra.mxu2 %v2998_v36  ;;  %v3082_v17 = vor.u32 %v3534_v14, %v3081_v12  ;;  %v3214_v18 = vor.u32 %v3564_v15, %v3211_v16  ;;  %v3209_v19 = vld [vmem:[#allocation5 + $0x1a8] sm:$0xf]  ;;  %v3566_v20 = vld [vmem:[#allocation5 + $0x1b4] sm:$0xf0]  ;;  %v308_v22 = vld [vmem:[%s4078_s14 + $0x60] sm:$0xff]  ;;  %p3863_p4 = pnand %p3862_p1, %p4044_p0 }
  0x5b   : > { %1060 = vmatpush.bf16.msra.mxu3 %v3126_v39  ;;  %794 = vmatmul.bf16.vlgmr.msra.gmra.mxu0 %v4096_v43  ;;  %v3210_v21 = vor.u32 %v3566_v20, %v3209_v19  ;;  %v310_v23 = vld [vmem:[%s4078_s14 + $0x70] sm:$0xff]  ;;  %v309_v24 = vld [vmem:[%s4078_s14 + $0x68] sm:$0xff]  ;;  %v311_v25 = vld [vmem:[%s4078_s14 + $0x78] sm:$0xff] }
  0x5c   : > { %883 = vmatmul.bf16.vlgmr.msra.gmra.mxu1 %v4098_v47  ;;  %1142 = vmatpush.bf16.msrb.mxu0 %v3114_v48  ;;  %v4132_v26 = vpack.c.bf16 %v310_v23, %v308_v22  ;;  %v4134_v27 = vpack.c.bf16 %v311_v25, %v309_v24  ;;  %v312_v28 = vld [vmem:[%s4078_s14 + $0x80] sm:$0xff]  ;;  %v314_v29 = vld [vmem:[%s4078_s14 + $0x90] sm:$0xff]  ;;  %v313_v30 = vld [vmem:[%s4078_s14 + $0x88] sm:$0xff]  ;;  %p3864_p8 = pneg %p3863_p4 }
  0x5d   : > { %972 = vmatmul.bf16.vlgmr.msra.gmra.mxu2 %v4096_v43  ;;  %1231 = vmatpush.bf16.msrb.mxu1 %v3242_v49  ;;  %v315_v31 = vld [vmem:[%s4078_s14 + $0x98] sm:$0xff]  ;;  %v4144_v32 = vpack.c.bf16 %v314_v29, %v312_v28  ;;  %v3528_v34 = vld [vmem:[#allocation5 + $0x8c] sm:$0xf]  ;;  %v3065_v36 = vld [vmem:[#allocation5 + $0x88] sm:$0xf] }
  0x5e   : > { %1320 = vmatpush.bf16.msrb.mxu2 %v3118_v40  ;;  %1061 = vmatmul.bf16.vlgmr.msra.gmra.mxu3 %v4098_v47  ;;  %v4146_v33 = vpack.c.bf16 %v315_v31, %v313_v30  ;;  %v3067_v35 = vld [vmem:[#allocation5 + $0x98] sm:$0xf0]  ;;  %v3530_v38 = vld [vmem:[#allocation5 + $0x94] sm:$0xf0]  ;;  %v3560_v39 = vld [vmem:[#allocation5 + $0x18c] sm:$0xf] }
  0x5f   : > { %1409 = vmatpush.bf16.msrb.mxu3 %v3246_v44  ;;  %v3070_v37 = vor.u32 %v3528_v34, %v3067_v35  ;;  %v3195_v40 = vld [vmem:[#allocation5 + $0x198] sm:$0xf0]  ;;  %v3066_v41 = vor.u32 %v3530_v38, %v3065_v36  ;;  %v3193_v44 = vld [vmem:[#allocation5 + $0x188] sm:$0xf]  ;;  %v3562_v45 = vld [vmem:[#allocation5 + $0x194] sm:$0xf0] }
  0x60   : > { %1143 = vmatpush.bf16.msrb.mxu0 %v3098_v57  ;;  %v3198_v42 = vor.u32 %v3560_v39, %v3195_v40  ;;  %v3194_v46 = vor.u32 %v3562_v45, %v3193_v44  ;;  %v316_v48 = vld [vmem:[%s4078_s14 + $0xa0] sm:$0xff]  ;;  %v318_v49 = vld [vmem:[%s4078_s14 + $0xb0] sm:$0xff]  ;;  %v317_v50 = vld [vmem:[%s4078_s14 + $0xa8] sm:$0xff] }
  0x61   : > { %1232 = vmatpush.bf16.msrb.mxu1 %v3226_v61  ;;  %v319_v51 = vld [vmem:[%s4078_s14 + $0xb8] sm:$0xff]  ;;  %v4156_v52 = vpack.c.bf16 %v318_v49, %v316_v48  ;;  %v320_v54 = vld [vmem:[%s4078_s14 + $0xc0] sm:$0xff]  ;;  %v322_v55 = vld [vmem:[%s4078_s14 + $0xd0] sm:$0xff] }
  0x62   : > { %1321 = vmatpush.bf16.msrb.mxu2 %v3102_v53  ;;  %v4158_v53 = vpack.c.bf16 %v319_v51, %v317_v50  ;;  %v321_v56 = vld [vmem:[%s4078_s14 + $0xc8] sm:$0xff]  ;;  %v323_v57 = vld [vmem:[%s4078_s14 + $0xd8] sm:$0xff]  ;;  %v324_v7 = vld [vmem:[%s4078_s14 + $0xe0] sm:$0xff] }
  0x63   : > { %1410 = vmatpush.bf16.msrb.mxu3 %v3230_v58  ;;  %v4168_v58 = vpack.c.bf16 %v322_v55, %v320_v54  ;;  %v4170_v59 = vpack.c.bf16 %v323_v57, %v321_v56  ;;  %v3524_v60 = vld [vmem:[#allocation5 + $0x6c] sm:$0xf]  ;;  %v3051_v61 = vld [vmem:[#allocation5 + $0x78] sm:$0xf0]  ;;  %v3049_v62 = vld [vmem:[#allocation5 + $0x68] sm:$0xf] }
  0x64   : > { %1144 = vmatpush.bf16.msrb.mxu0 %v3082_v17  ;;  %v3054_v63 = vor.u32 %v3524_v60, %v3051_v61  ;;  %v3526_v0 = vld [vmem:[#allocation5 + $0x74] sm:$0xf0]  ;;  %v3556_v1 = vld [vmem:[#allocation5 + $0x16c] sm:$0xf]  ;;  %v3179_v4 = vld [vmem:[#allocation5 + $0x178] sm:$0xf0] }
  0x65   : > { %1233 = vmatpush.bf16.msrb.mxu1 %v3210_v21  ;;  %v3050_v5 = vor.u32 %v3526_v0, %v3049_v62  ;;  %v3182_v6 = vor.u32 %v3556_v1, %v3179_v4  ;;  %v326_v10 = vld [vmem:[%s4078_s14 + $0xf0] sm:$0xff]  ;;  %v3177_v11 = vld [vmem:[#allocation5 + $0x168] sm:$0xf]  ;;  %v3558_v12 = vld [vmem:[#allocation5 + $0x174] sm:$0xf0] }
  0x66   : > { %1322 = vmatpush.bf16.msrb.mxu2 %v3086_v13  ;;  %v325_v13 = vld [vmem:[%s4078_s14 + $0xe8] sm:$0xff]  ;;  %v327_v14 = vld [vmem:[%s4078_s14 + $0xf8] sm:$0xff]  ;;  %v3178_v15 = vor.u32 %v3558_v12, %v3177_v11  ;;  %v4180_v16 = vpack.c.bf16 %v326_v10, %v324_v7  ;;  %v328_v19 = vld [vmem:[%s4078_s14 + $0x100] sm:$0xff] }
  0x67   : > { %1411 = vmatpush.bf16.msrb.mxu3 %v3214_v18  ;;  %v4182_v17 = vpack.c.bf16 %v327_v14, %v325_v13  ;;  %v456_v18 = vld [vmem:[#allocation7] sm:$0xf]  ;;  %v330_v20 = vld [vmem:[%s4078_s14 + $0x110] sm:$0xff]  ;;  %v329_v22 = vld [vmem:[%s4078_s14 + $0x108] sm:$0xff] }
  0x68   : > { %1145 = vmatpush.bf16.msrb.mxu0 %v3066_v41  ;;  %v4190_v21 = vperm.slane %v456_v18, 0  ;;  %v331_v23 = vld [vmem:[%s4078_s14 + $0x118] sm:$0xff]  ;;  %v4194_v24 = vpack.c.bf16 %v330_v20, %v328_v19  ;;  %v4202_v34 = vperm.slane %v456_v18, 1  ;;  %v3520_v35 = vld [vmem:[#allocation5 + $0x4c] sm:$0xf]  ;;  %v332_v56 = vld [vmem:[%s4078_s14 + $0x120] sm:$0xff] }
  0x69   : > { %1234 = vmatpush.bf16.msrb.mxu1 %v3194_v46  ;;  %v4196_v28 = vpack.c.bf16 %v331_v23, %v329_v22  ;;  %v3035_v36 = vld [vmem:[#allocation5 + $0x58] sm:$0xf0]  ;;  %v3033_v38 = vld [vmem:[#allocation5 + $0x48] sm:$0xf]  ;;  %v3522_v39 = vld [vmem:[#allocation5 + $0x54] sm:$0xf0] }
  0x6a   : > { %1323 = vmatpush.bf16.msrb.mxu2 %v3070_v37  ;;  %v3038_v37 = vor.u32 %v3520_v35, %v3035_v36  ;;  %v3552_v40 = vld [vmem:[#allocation5 + $0x14c] sm:$0xf]  ;;  %v3163_v44 = vld [vmem:[#allocation5 + $0x158] sm:$0xf0]  ;;  %v334_v57 = vld [vmem:[%s4078_s14 + $0x130] sm:$0xff] }
  0x6b   : > { %799 = vmatmul.bf16.gmra.mxu0 %v4108_v2  ;;  %1412 = vmatpush.bf16.msrb.mxu3 %v3198_v42  ;;  %v3034_v42 = vor.u32 %v3522_v39, %v3033_v38  ;;  %v3166_v49 = vor.u32 %v3552_v40, %v3163_v44  ;;  %v3161_v60 = vld [vmem:[#allocation5 + $0x148] sm:$0xf]  ;;  %v3554_v61 = vld [vmem:[#allocation5 + $0x154] sm:$0xf0]  ;;  %v4213_v7 = vpack.c.bf16 %v334_v57, %v332_v56  ;;  %v336_v39 = vld [vmem:[%s4078_s14 + $0x140] sm:$0xff] }
  0x6c   : > { %888 = vmatmul.bf16.gmra.mxu1 %v4110_v3  ;;  %1146 = vmatpush.bf16.msrb.mxu0 %v3050_v5  ;;  %v333_v0 = vld [vmem:[%s4078_s14 + $0x128] sm:$0xff]  ;;  %v335_v1 = vld [vmem:[%s4078_s14 + $0x138] sm:$0xff]  ;;  %v3162_v4 = vor.u32 %v3554_v61, %v3161_v60  ;;  %v338_v40 = vld [vmem:[%s4078_s14 + $0x150] sm:$0xff] }
  0x6d   : > { %977 = vmatmul.bf16.gmra.mxu2 %v4108_v2  ;;  %1235 = vmatpush.bf16.msrb.mxu1 %v3178_v15  ;;  %v4216_v13 = vpack.c.bf16 %v335_v1, %v333_v0  ;;  %v337_v44 = vld [vmem:[%s4078_s14 + $0x148] sm:$0xff]  ;;  %v3019_v1 = vld [vmem:[#allocation5 + $0x38] sm:$0xf0] }
  0x6e   : > { %1066 = vmatmul.bf16.gmra.mxu3 %v4110_v3  ;;  %1324 = vmatpush.bf16.msrb.mxu2 %v3054_v63  ;;  %v3516_v0 = vld [vmem:[#allocation5 + $0x2c] sm:$0xf] }
  0x6f   : > { %1413 = vmatpush.bf16.msrb.mxu3 %v3182_v6 }
  0x70   : > { %1147 = vmatpush.bf16.msrb.mxu0 %v3034_v42 }
  0x71   : > { %1236 = vmatpush.bf16.msrb.mxu1 %v3162_v4  ;;  %v3022_v4 = vor.u32 %v3516_v0, %v3019_v1 }
  0x72   : > { %1325 = vmatpush.bf16.msrb.mxu2 %v3038_v37 }
  0x73   : > { %1414 = vmatpush.bf16.msrb.mxu3 %v3166_v49 }
  0x76   : > { %1326 = vmatpush.bf16.msrb.mxu2 %v3022_v4 }
  0x7b   : > { %804 = vmatmul.bf16.gmra.mxu0 %v4120_v8 }
  0x7c   : > { %893 = vmatmul.bf16.gmra.mxu1 %v4122_v9 }
  0x7d   : > { %982 = vmatmul.bf16.gmra.mxu2 %v4120_v8 }
  0x7e   : > { %1071 = vmatmul.bf16.gmra.mxu3 %v4122_v9 }
  0x8b   : > { %809 = vmatmul.bf16.gmra.mxu0 %v4132_v26 }
  0x8c   : > { %898 = vmatmul.bf16.gmra.mxu1 %v4134_v27 }
  0x8d   : > { %987 = vmatmul.bf16.gmra.mxu2 %v4132_v26 }
  0x8e   : > { %1076 = vmatmul.bf16.gmra.mxu3 %v4134_v27 }
  0x9b   : > { %814 = vmatmul.bf16.gmra.mxu0 %v4144_v32 }
  0x9c   : > { %903 = vmatmul.bf16.gmra.mxu1 %v4146_v33 }
  0x9d   : > { %992 = vmatmul.bf16.gmra.mxu2 %v4144_v32 }
  0x9e   : > { %1081 = vmatmul.bf16.gmra.mxu3 %v4146_v33 }
  0xab   : > { %819 = vmatmul.bf16.gmra.mxu0 %v4156_v52 }
  0xac   : > { %908 = vmatmul.bf16.gmra.mxu1 %v4158_v53 }
  0xad   : > { %997 = vmatmul.bf16.gmra.mxu2 %v4156_v52 }
  0xae   : > { %1086 = vmatmul.bf16.gmra.mxu3 %v4158_v53 }
  0xbb   : > { %824 = vmatmul.bf16.gmra.mxu0 %v4168_v58 }
  0xbc   : > { %913 = vmatmul.bf16.gmra.mxu1 %v4170_v59 }
  0xbd   : > { %1002 = vmatmul.bf16.gmra.mxu2 %v4168_v58 }
  0xbe   : > { %1091 = vmatmul.bf16.gmra.mxu3 %v4170_v59 }
  0xcb   : > { %829 = vmatmul.bf16.gmra.mxu0 %v4180_v16 }
  0xcc   : > { %918 = vmatmul.bf16.gmra.mxu1 %v4182_v17 }
  0xcd   : > { %1007 = vmatmul.bf16.gmra.mxu2 %v4180_v16 }
  0xce   : > { %1096 = vmatmul.bf16.gmra.mxu3 %v4182_v17 }
  0xd8   : > { %v795_v25 = vpop.f32.mrf.mxu0 }
  0xd9   : > { %v796_v29 = vadd.f32 %v795_v25, %v4190_v21  ;;  %v884_v30 = vpop.f32.mrf.mxu1 }
  0xdb   : > { %v885_v31 = vadd.f32 %v884_v30, %v796_v29  ;;  %834 = vmatmul.bf16.gmra.mxu0 %v4194_v24 }
  0xdc   : > { %923 = vmatmul.bf16.gmra.mxu1 %v4196_v28 }
  0xdd   : > { %1012 = vmatmul.bf16.gmra.mxu2 %v4194_v24  ;;  %v1498_v62 = vmax.f32 %v885_v31, 0.0 }
  0xde   : > { %1101 = vmatmul.bf16.gmra.mxu3 %v4196_v28 }
  0xe0   : > { %v973_v41 = vpop.f32.mrf.mxu2  ;;  %v797_v48 = vpop.f32.mrf.mxu0 }
  0xe1   : > { %v974_v45 = vadd.f32 %v973_v41, %v4202_v34  ;;  %v1062_v46 = vpop.f32.mrf.mxu3  ;;  %v798_v50 = vadd.f32 %v797_v48, %v4190_v21  ;;  %v886_v51 = vpop.f32.mrf.mxu1  ;;  %v4231_v48 = vpack.c.bf16 %v338_v40, %v336_v39  ;;  %v3550_v39 = vld [vmem:[#allocation5 + $0x134] sm:$0xf0] }
  0xe3   : > { %v1063_v54 = vadd.f32 %v1062_v46, %v974_v45  ;;  %v887_v55 = vadd.f32 %v886_v51, %v798_v50  ;;  %v339_v45 = vld [vmem:[%s4078_s14 + $0x158] sm:$0xff] }
  0xe5   : > { %v1502_v63 = vmax.f32 %v887_v55, 0.0  ;;  %v1499_v20 = vmax.f32 %v1063_v54, 0.0  ;;  %v4236_v55 = vpack.c.bf16 %v339_v45, %v337_v44  ;;  %v343_v44 = vld [vmem:[%s4078_s14 + $0x178] sm:$0xff] }
  0xe7   : > { %v4211_v5 = vpack.c.bf16 %v1502_v63, %v1498_v62 }
  0xe8   : > { %v975_v6 = vpop.f32.mrf.mxu2  ;;  %v800_v12 = vpop.f32.mrf.mxu0 }
  0xe9   : > { %v976_v10 = vadd.f32 %v975_v6, %v4202_v34  ;;  %v1064_v11 = vpop.f32.mrf.mxu3  ;;  %v801_v14 = vadd.f32 %v800_v12, %v4190_v21  ;;  %v889_v15 = vpop.f32.mrf.mxu1  ;;  %v3017_v6 = vld [vmem:[#allocation5 + $0x28] sm:$0xf] }
  0xeb   : > { %v1065_v18 = vadd.f32 %v1064_v11, %v976_v10  ;;  %v890_v19 = vadd.f32 %v889_v15, %v801_v14  ;;  %839 = vmatmul.bf16.gmra.mxu0 %v4213_v7  ;;  %v3518_v10 = vld [vmem:[#allocation5 + $0x34] sm:$0xf0]  ;;  %v3548_v11 = vld [vmem:[#allocation5 + $0x12c] sm:$0xf] }
  0xec   : > { %928 = vmatmul.bf16.gmra.mxu1 %v4216_v13  ;;  %v3018_v15 = vor.u32 %v3518_v10, %v3017_v6 }
  0xed   : > { %v1503_v22 = vmax.f32 %v1065_v18, 0.0  ;;  %1017 = vmatmul.bf16.gmra.mxu2 %v4213_v7  ;;  %v1506_v41 = vmax.f32 %v890_v19, 0.0  ;;  %v3147_v18 = vld [vmem:[#allocation5 + $0x138] sm:$0xf0] }
  0xee   : > { %1106 = vmatmul.bf16.gmra.mxu3 %v4216_v13  ;;  %1148 = vmatpush.bf16.msrb.mxu0 %v3018_v15 }
  0xef   : > { %v4223_v23 = vpack.c.bf16 %v1503_v22, %v1499_v20 }
  0xf0   : > { %v978_v25 = vpop.f32.mrf.mxu2  ;;  %v802_v31 = vpop.f32.mrf.mxu0 }
  0xf1   : > { %v979_v29 = vadd.f32 %v978_v25, %v4202_v34  ;;  %v1067_v30 = vpop.f32.mrf.mxu3  ;;  %v803_v35 = vadd.f32 %v802_v31, %v4190_v21  ;;  %v891_v36 = vpop.f32.mrf.mxu1  ;;  %v3150_v25 = vor.u32 %v3548_v11, %v3147_v18 }
  0xf3   : > { %v1068_v37 = vadd.f32 %v1067_v30, %v979_v29  ;;  %v892_v38 = vadd.f32 %v891_v36, %v803_v35  ;;  %1415 = vmatpush.bf16.msrb.mxu3 %v3150_v25  ;;  %v340_v36 = vld [vmem:[%s4078_s14 + $0x160] sm:$0xff] }
  0xf4   : > { %v344_v25 = vld [vmem:[%s4078_s14 + $0x180] sm:$0xff] }
  0xf5   : > { %v1510_v42 = vmax.f32 %v892_v38, 0.0  ;;  %v1507_v62 = vmax.f32 %v1068_v37, 0.0  ;;  %v342_v37 = vld [vmem:[%s4078_s14 + $0x170] sm:$0xff]  ;;  %v3145_v38 = vld [vmem:[#allocation5 + $0x128] sm:$0xf] }
  0xf6   : > { %v3146_v45 = vor.u32 %v3550_v39, %v3145_v38 }
  0xf7   : > { %v4233_v49 = vpack.c.bf16 %v1510_v42, %v1506_v41  ;;  %v341_v42 = vld [vmem:[%s4078_s14 + $0x168] sm:$0xff] }
  0xf8   : > { %v980_v46 = vpop.f32.mrf.mxu2  ;;  %v805_v54 = vpop.f32.mrf.mxu0  ;;  %1237 = vmatpush.bf16.msrb.mxu1 %v3146_v45 }
  0xf9   : > { %v981_v50 = vadd.f32 %v980_v46, %v4202_v34  ;;  %v1069_v51 = vpop.f32.mrf.mxu3  ;;  %v806_v56 = vadd.f32 %v805_v54, %v4190_v21  ;;  %v894_v57 = vpop.f32.mrf.mxu1 }
  0xfb   : > { %v1070_v60 = vadd.f32 %v1069_v51, %v981_v50  ;;  %v895_v61 = vadd.f32 %v894_v57, %v806_v56  ;;  %844 = vmatmul.bf16.gmra.mxu0 %v4231_v48  ;;  %v4251_v50 = vpack.c.bf16 %v342_v37, %v340_v36  ;;  %v347_v36 = vld [vmem:[%s4078_s14 + $0x198] sm:$0xff] }
  0xfc   : > { %933 = vmatmul.bf16.gmra.mxu1 %v4236_v55 }
  0xfd   : > { %v1511_v63 = vmax.f32 %v1070_v60, 0.0  ;;  %1022 = vmatmul.bf16.gmra.mxu2 %v4231_v48  ;;  %v1514_v40 = vmax.f32 %v895_v61, 0.0  ;;  %v4256_v60 = vpack.c.bf16 %v343_v44, %v341_v42 }
  0xfe   : > { %1111 = vmatmul.bf16.gmra.mxu3 %v4236_v55 }
  0xff   : > { %v4243_v12 = vpack.c.bf16 %v1511_v63, %v1507_v62 }
 0x100   : > { %v983_v14 = vpop.f32.mrf.mxu2  ;;  %v807_v22 = vpop.f32.mrf.mxu0 }
 0x101   : > { %v984_v19 = vadd.f32 %v983_v14, %v4202_v34  ;;  %v1072_v20 = vpop.f32.mrf.mxu3  ;;  %v808_v29 = vadd.f32 %v807_v22, %v4190_v21  ;;  %v896_v30 = vpop.f32.mrf.mxu1 }
 0x103   : > { %v1073_v31 = vadd.f32 %v1072_v20, %v984_v19  ;;  %v897_v35 = vadd.f32 %v896_v30, %v808_v29  ;;  %v346_v29 = vld [vmem:[%s4078_s14 + $0x190] sm:$0xff] }
 0x104   : > { %v4271_v38 = vpack.c.bf16 %v346_v29, %v344_v25 }
 0x105   : > { %v1518_v41 = vmax.f32 %v897_v35, 0.0  ;;  %v1515_v1 = vmax.f32 %v1073_v31, 0.0  ;;  %v345_v35 = vld [vmem:[%s4078_s14 + $0x188] sm:$0xff] }
 0x106   : > { %v4276_v44 = vpack.c.bf16 %v347_v36, %v345_v35  ;;  %v348_v36 = vld [vmem:[%s4078_s14 + $0x1a0] sm:$0xff] }
 0x107   : > { %v4253_v51 = vpack.c.bf16 %v1518_v41, %v1514_v40 }
 0x108   : > { %v985_v46 = vpop.f32.mrf.mxu2  ;;  %v810_v57 = vpop.f32.mrf.mxu0 }
 0x109   : > { %v986_v54 = vadd.f32 %v985_v46, %v4202_v34  ;;  %v1074_v56 = vpop.f32.mrf.mxu3  ;;  %v811_v62 = vadd.f32 %v810_v57, %v4190_v21  ;;  %v899_v63 = vpop.f32.mrf.mxu1 }
 0x10b   : > { %v1075_v61 = vadd.f32 %v1074_v56, %v986_v54  ;;  %v900_v0 = vadd.f32 %v899_v63, %v811_v62  ;;  %849 = vmatmul.bf16.gmra.mxu0 %v4251_v50  ;;  %v3512_v63 = vld [vmem:[#allocation5 + $0xc] sm:$0xf] }
 0x10c   : > { %938 = vmatmul.bf16.gmra.mxu1 %v4256_v60 }
 0x10d   : > { %v1519_v4 = vmax.f32 %v1075_v61, 0.0  ;;  %1027 = vmatmul.bf16.gmra.mxu2 %v4251_v50  ;;  %v1522_v30 = vmax.f32 %v900_v0, 0.0  ;;  %v3003_v61 = vld [vmem:[#allocation5 + $0x18] sm:$0xf0] }
 0x10e   : > { %1116 = vmatmul.bf16.gmra.mxu3 %v4256_v60  ;;  %v3006_v0 = vor.u32 %v3512_v63, %v3003_v61 }
 0x10f   : > { %v4263_v6 = vpack.c.bf16 %v1519_v4, %v1515_v1  ;;  %v3001_v1 = vld [vmem:[#allocation5 + $0x8] sm:$0xf]  ;;  %v3514_v4 = vld [vmem:[#allocation5 + $0x14] sm:$0xf0] }
 0x110   : > { %v988_v10 = vpop.f32.mrf.mxu2  ;;  %v812_v15 = vpop.f32.mrf.mxu0  ;;  %1327 = vmatpush.bf16.msrb.mxu2 %v3006_v0 }
 0x111   : > { %5026 = vst [vmem:[#allocation15_spill] sm:$0xff] %v4263_v6  ;;  %v989_v11 = vadd.f32 %v988_v10, %v4202_v34  ;;  %v1077_v14 = vpop.f32.mrf.mxu3  ;;  %v813_v18 = vadd.f32 %v812_v15, %v4190_v21  ;;  %v901_v19 = vpop.f32.mrf.mxu1  ;;  %v3544_v10 = vld [vmem:[#allocation5 + $0x10c] sm:$0xf]  ;;  %v3002_v15 = vor.u32 %v3514_v4, %v3001_v1 }
 0x113   : > { %v1078_v20 = vadd.f32 %v1077_v14, %v989_v11  ;;  %v902_v22 = vadd.f32 %v901_v19, %v813_v18  ;;  %v3131_v18 = vld [vmem:[#allocation5 + $0x118] sm:$0xf0]  ;;  %1149 = vmatpush.bf16.msrb.mxu0 %v3002_v15 }
 0x114   : > { %v3134_v25 = vor.u32 %v3544_v10, %v3131_v18 }
 0x115   : > { %v1526_v31 = vmax.f32 %v902_v22, 0.0  ;;  %v1523_v57 = vmax.f32 %v1078_v20, 0.0 }
 0x116   : > { %1416 = vmatpush.bf16.msrb.mxu3 %v3134_v25 }
 0x117   : > { %v4273_v39 = vpack.c.bf16 %v1526_v31, %v1522_v30 }
 0x118   : > { %v990_v37 = vpop.f32.mrf.mxu2  ;;  %v815_v42 = vpop.f32.mrf.mxu0 }
 0x119   : > { %v991_v40 = vadd.f32 %v990_v37, %v4202_v34  ;;  %v1079_v41 = vpop.f32.mrf.mxu3  ;;  %v816_v45 = vadd.f32 %v815_v42, %v4190_v21  ;;  %v904_v46 = vpop.f32.mrf.mxu1  ;;  %v350_v37 = vld [vmem:[%s4078_s14 + $0x1b0] sm:$0xff] }
 0x11a   : > { %v4291_v63 = vpack.c.bf16 %v350_v37, %v348_v36 }
 0x11b   : > { %v1080_v54 = vadd.f32 %v1079_v41, %v991_v40  ;;  %v905_v56 = vadd.f32 %v904_v46, %v816_v45  ;;  %854 = vmatmul.bf16.gmra.mxu0 %v4271_v38  ;;  %v3129_v40 = vld [vmem:[#allocation5 + $0x108] sm:$0xf]  ;;  %v3546_v41 = vld [vmem:[#allocation5 + $0x114] sm:$0xf0] }
 0x11c   : > { %943 = vmatmul.bf16.gmra.mxu1 %v4276_v44  ;;  %v349_v46 = vld [vmem:[%s4078_s14 + $0x1a8] sm:$0xff] }
 0x11d   : > { %v1527_v62 = vmax.f32 %v1080_v54, 0.0  ;;  %1032 = vmatmul.bf16.gmra.mxu2 %v4271_v38  ;;  %v1530_v42 = vmax.f32 %v905_v56, 0.0  ;;  %v351_v54 = vld [vmem:[%s4078_s14 + $0x1b8] sm:$0xff] }
 0x11e   : > { %1121 = vmatmul.bf16.gmra.mxu3 %v4276_v44  ;;  %v4296_v10 = vpack.c.bf16 %v351_v54, %v349_v46  ;;  %v353_v54 = vld [vmem:[%s4078_s14 + $0x1c8] sm:$0xff] }
 0x11f   : > { %v4283_v11 = vpack.c.bf16 %v1527_v62, %v1523_v57  ;;  %v3130_v57 = vor.u32 %v3546_v41, %v3129_v40  ;;  %v352_v41 = vld [vmem:[%s4078_s14 + $0x1c0] sm:$0xff] }
 0x120   : > { %v993_v14 = vpop.f32.mrf.mxu2  ;;  %v817_v22 = vpop.f32.mrf.mxu0 }
 0x121   : > { %v994_v19 = vadd.f32 %v993_v14, %v4202_v34  ;;  %v1082_v20 = vpop.f32.mrf.mxu3  ;;  %v818_v29 = vadd.f32 %v817_v22, %v4190_v21  ;;  %v906_v30 = vpop.f32.mrf.mxu1  ;;  %1238 = vmatpush.bf16.msrb.mxu1 %v3130_v57  ;;  %v355_v57 = vld [vmem:[%s4078_s14 + $0x1d8] sm:$0xff] }
 0x123   : > { %v1083_v31 = vadd.f32 %v1082_v20, %v994_v19  ;;  %v907_v35 = vadd.f32 %v906_v30, %v818_v29 }
 0x125   : > { %v1534_v45 = vmax.f32 %v907_v35, 0.0  ;;  %v1531_v19 = vmax.f32 %v1083_v31, 0.0 }
 0x127   : > { %v4293_v61 = vpack.c.bf16 %v1534_v45, %v1530_v42  ;;  %v354_v42 = vld [vmem:[%s4078_s14 + $0x1d0] sm:$0xff] }
 0x128   : > { %v995_v62 = vpop.f32.mrf.mxu2  ;;  %v820_v4 = vpop.f32.mrf.mxu0 }
 0x129   : > { %5027 = vst [vmem:[#allocation16_spill] sm:$0xff] %v4293_v61  ;;  %v996_v0 = vadd.f32 %v995_v62, %v4202_v34  ;;  %v1084_v1 = vpop.f32.mrf.mxu3  ;;  %v821_v14 = vadd.f32 %v820_v4, %v4190_v21  ;;  %v909_v15 = vpop.f32.mrf.mxu1 }
 0x12b   : > { %v1085_v56 = vadd.f32 %v1084_v1, %v996_v0  ;;  %v910_v18 = vadd.f32 %v909_v15, %v821_v14  ;;  %859 = vmatmul.bf16.gmra.mxu0 %v4291_v63  ;;  %v4311_v0 = vpack.c.bf16 %v354_v42, %v352_v41  ;;  %v3590_v41 = vld [vmem:[#allocation8 + $0x74] sm:$0xf0]  ;;  %v3497_v42 = vld [vmem:[#allocation8 + $0x1f0] sm:$0xf] }
 0x12c   : > { %948 = vmatmul.bf16.gmra.mxu1 %v4296_v10 }
 0x12d   : > { %v1535_v20 = vmax.f32 %v1085_v56, 0.0  ;;  %1037 = vmatmul.bf16.gmra.mxu2 %v4291_v63  ;;  %v1538_v45 = vmax.f32 %v910_v18, 0.0  ;;  %v4316_v56 = vpack.c.bf16 %v355_v57, %v353_v54 }
 0x12e   : > { %1126 = vmatmul.bf16.gmra.mxu3 %v4296_v10 }
 0x12f   : > { %v4303_v22 = vpack.c.bf16 %v1535_v20, %v1531_v19 }
 0x130   : > { %v998_v25 = vpop.f32.mrf.mxu2  ;;  %v822_v35 = vpop.f32.mrf.mxu0 }
 0x131   : > { %5028 = vst [vmem:[#allocation17_spill] sm:$0xff] %v4303_v22  ;;  %v999_v29 = vadd.f32 %v998_v25, %v4202_v34  ;;  %v1087_v30 = vpop.f32.mrf.mxu3  ;;  %v823_v36 = vadd.f32 %v822_v35, %v4190_v21  ;;  %v911_v37 = vpop.f32.mrf.mxu1  ;;  %v3433_v35 = vld [vmem:[#allocation8 + $0x170] sm:$0xf] }
 0x133   : > { %v1088_v31 = vadd.f32 %v1087_v30, %v999_v29  ;;  %v912_v40 = vadd.f32 %v911_v37, %v823_v36  ;;  %v3622_v36 = vld [vmem:[#allocation8 + $0x174] sm:$0xf0] }
 0x134   : > { %v3434_v37 = vor.u32 %v3622_v36, %v3433_v35  ;;  %v3369_v35 = vld [vmem:[#allocation8 + $0xf0] sm:$0xf]  ;;  %v3606_v36 = vld [vmem:[#allocation8 + $0xf4] sm:$0xf0] }
 0x135   : > { %v1542_v46 = vmax.f32 %v912_v40, 0.0  ;;  %v1539_v18 = vmax.f32 %v1088_v31, 0.0  ;;  %v3305_v40 = vld [vmem:[#allocation8 + $0x70] sm:$0xf]  ;;  %v3638_v31 = vld [vmem:[#allocation8 + $0x1f4] sm:$0xf0] }
 0x136   : > { %v3306_v54 = vor.u32 %v3590_v41, %v3305_v40  ;;  %2258 = vmatpush.bf16.msra.mxu2 %v3434_v37 }
 0x137   : > { %v4313_v1 = vpack.c.bf16 %v1542_v46, %v1538_v45 }
 0x138   : > { %v1000_v62 = vpop.f32.mrf.mxu2  ;;  %v825_v15 = vpop.f32.mrf.mxu0  ;;  %2080 = vmatpush.bf16.msra.mxu0 %v3306_v54 }
 0x139   : > { %5029 = vst [vmem:[#allocation18_spill] sm:$0xff] %v4313_v1  ;;  %v1001_v4 = vadd.f32 %v1000_v62, %v4202_v34  ;;  %v1089_v14 = vpop.f32.mrf.mxu3  ;;  %v826_v19 = vadd.f32 %v825_v15, %v4190_v21  ;;  %v914_v20 = vpop.f32.mrf.mxu1  ;;  %v3370_v1 = vor.u32 %v3606_v36, %v3369_v35 }
 0x13b   : > { %v1090_v25 = vadd.f32 %v1089_v14, %v1001_v4  ;;  %v915_v29 = vadd.f32 %v914_v20, %v826_v19  ;;  %864 = vmatmul.bf16.gmra.mxu0 %v4311_v0  ;;  %v3498_v14 = vor.u32 %v3638_v31, %v3497_v42  ;;  %2169 = vmatpush.bf16.msra.mxu1 %v3370_v1 }
 0x13c   : > { %953 = vmatmul.bf16.gmra.mxu1 %v4316_v56 }
 0x13d   : > { %v1543_v30 = vmax.f32 %v1090_v25, 0.0  ;;  %1042 = vmatmul.bf16.gmra.mxu2 %v4311_v0  ;;  %2347 = vmatpush.bf16.msra.mxu3 %v3498_v14  ;;  %v1546_v40 = vmax.f32 %v915_v29, 0.0 }
 0x13e   : > { %1131 = vmatmul.bf16.gmra.mxu3 %v4316_v56 }
 0x13f   : > { %v4323_v45 = vpack.c.bf16 %v1543_v30, %v1539_v18  ;;  %v356_v18 = vld [vmem:[%s4078_s14 + $0x1e0] sm:$0xff]  ;;  %v358_v30 = vld [vmem:[%s4078_s14 + $0x1f0] sm:$0xff] }
 0x140   : > { %v1003_v46 = vpop.f32.mrf.mxu2  ;;  %v827_v4 = vpop.f32.mrf.mxu0  ;;  %v4331_v61 = vpack.c.bf16 %v358_v30, %v356_v18 }
 0x141   : > { %5030 = vst [vmem:[#allocation19_spill] sm:$0xff] %v4323_v45  ;;  %v1004_v57 = vadd.f32 %v1003_v46, %v4202_v34  ;;  %v1092_v62 = vpop.f32.mrf.mxu3  ;;  %v828_v15 = vadd.f32 %v827_v4, %v4190_v21  ;;  %v916_v19 = vpop.f32.mrf.mxu1  ;;  %v357_v46 = vld [vmem:[%s4078_s14 + $0x1e8] sm:$0xff]  ;;  %v359_v45 = vld [vmem:[%s4078_s14 + $0x1f8] sm:$0xff]  ;;  %s3865_s14 = scalar_lea.hbm %s4984_s5, 1024 }
 0x142   : > { %p3867_p2 = scmp.lt.s32.totalorder %s3865_s14, %s3861_s13 }
 0x143   : > { %v1093_v20 = vadd.f32 %v1092_v62, %v1004_v57  ;;  %v917_v25 = vadd.f32 %v916_v19, %v828_v15  ;;  %v4336_v57 = vpack.c.bf16 %v359_v45, %v357_v46 }
 0x144   : > { %p3868_p9 = por %p3867_p2, %p3866_p7 }
 0x145   : > { %v1550_v41 = vmax.f32 %v917_v25, 0.0  ;;  %v1547_v15 = vmax.f32 %v1093_v20, 0.0 }
 0x146   : > { %p3869_p10 = pnand %p3868_p9, %p3864_p8 }
 0x147   : > { %v4333_v37 = vpack.c.bf16 %v1550_v41, %v1546_v40 }
 0x148   : > { %v1005_v22 = vpop.f32.mrf.mxu2  ;;  %v830_v31 = vpop.f32.mrf.mxu0 }
 0x149   : > { %v1006_v42 = vadd.f32 %v1005_v22, %v4202_v34  ;;  %v1094_v54 = vpop.f32.mrf.mxu3  ;;  %v831_v62 = vadd.f32 %v830_v31, %v4190_v21  ;;  %v919_v4 = vpop.f32.mrf.mxu1 }
 0x14b   : > { %v1095_v29 = vadd.f32 %v1094_v54, %v1006_v42  ;;  %v920_v14 = vadd.f32 %v919_v4, %v831_v62  ;;  %869 = vmatmul.bf16.gmra.mxu0 %v4331_v61 }
 0x14c   : > { %958 = vmatmul.bf16.gmra.mxu1 %v4336_v57 }
 0x14d   : > { %v1551_v19 = vmax.f32 %v1095_v29, 0.0  ;;  %1047 = vmatmul.bf16.gmra.mxu2 %v4331_v61  ;;  %v1554_v20 = vmax.f32 %v920_v14, 0.0  ;;  %v3425_v14 = vld [vmem:[#allocation8 + $0x160] sm:$0xf] }
 0x14e   : > { %1136 = vmatmul.bf16.gmra.mxu3 %v4336_v57 }
 0x14f   : > { %v4343_v22 = vpack.c.bf16 %v1551_v19, %v1547_v15 }
 0x150   : > { %v1008_v1 = vpop.f32.mrf.mxu2  ;;  %v832_v18 = vpop.f32.mrf.mxu0 }
 0x151   : > { %5031 = vst [vmem:[#allocation20_spill] sm:$0xff] %v4343_v22  ;;  %v1009_v45 = vadd.f32 %v1008_v1, %v4202_v34  ;;  %v1097_v25 = vpop.f32.mrf.mxu3  ;;  %v833_v30 = vadd.f32 %v832_v18, %v4190_v21  ;;  %v921_v35 = vpop.f32.mrf.mxu1 }
 0x153   : > { %v1098_v36 = vadd.f32 %v1097_v25, %v1009_v45  ;;  %v922_v40 = vadd.f32 %v921_v35, %v833_v30  ;;  %v3620_v45 = vld [vmem:[#allocation8 + $0x164] sm:$0xf0]  ;;  %v3297_v30 = vld [vmem:[#allocation8 + $0x60] sm:$0xf] }
 0x154   : > { %v3426_v25 = vor.u32 %v3620_v45, %v3425_v14  ;;  %v3588_v35 = vld [vmem:[#allocation8 + $0x64] sm:$0xf0]  ;;  %v3361_v14 = vld [vmem:[#allocation8 + $0xe0] sm:$0xf] }
 0x155   : > { %v1558_v41 = vmax.f32 %v922_v40, 0.0  ;;  %v1555_v1 = vmax.f32 %v1098_v36, 0.0  ;;  %v3489_v40 = vld [vmem:[#allocation8 + $0x1e0] sm:$0xf]  ;;  %v3604_v45 = vld [vmem:[#allocation8 + $0xe4] sm:$0xf0] }
 0x156   : > { %2259 = vmatpush.bf16.msra.mxu2 %v3426_v25 }
 0x157   : > { %v4347_v42 = vpack.c.bf16 %v1558_v41, %v1554_v20 }
 0x158   : > { %v1010_v46 = vpop.f32.mrf.mxu2  ;;  %v835_v62 = vpop.f32.mrf.mxu0 }
 0x159   : > { %v1011_v54 = vadd.f32 %v1010_v46, %v4202_v34  ;;  %v1099_v31 = vpop.f32.mrf.mxu3  ;;  %v836_v4 = vadd.f32 %v835_v62, %v4190_v21  ;;  %v924_v29 = vpop.f32.mrf.mxu1  ;;  %v3298_v46 = vor.u32 %v3588_v35, %v3297_v30 }
 0x15b   : > { %v1100_v15 = vadd.f32 %v1099_v31, %v1011_v54  ;;  %v925_v19 = vadd.f32 %v924_v29, %v836_v4  ;;  %1150 = vmatmul.bf16.vlgmr.msrb.gmra.mxu0 %v4096_v43  ;;  %v3636_v54 = vld [vmem:[#allocation8 + $0x1e4] sm:$0xf0] }
 0x15c   : > { %1239 = vmatmul.bf16.vlgmr.msrb.gmra.mxu1 %v4098_v47  ;;  %v3490_v4 = vor.u32 %v3636_v54, %v3489_v40  ;;  %2081 = vmatpush.bf16.msra.mxu0 %v3298_v46 }
 0x15d   : > { %v1559_v18 = vmax.f32 %v1100_v15, 0.0  ;;  %1328 = vmatmul.bf16.vlgmr.msrb.gmra.mxu2 %v4096_v43 }
 0x15e   : > { %1417 = vmatmul.bf16.vlgmr.msrb.gmra.mxu3 %v4098_v47 }
 0x15f   : > { %v4355_v20 = vpack.c.bf16 %v1559_v18, %v1555_v1  ;;  %2348 = vmatpush.bf16.msra.mxu3 %v3490_v4  ;;  %v1562_v1 = vmax.f32 %v925_v19, 0.0 }
 0x160   : > { %v1013_v41 = vpop.f32.mrf.mxu2  ;;  %v837_v62 = vpop.f32.mrf.mxu0 }
 0x161   : > { %5032 = vst [vmem:[#allocation21_spill] sm:$0xff] %v4355_v20  ;;  %v1014_v36 = vadd.f32 %v1013_v41, %v4202_v34  ;;  %v1102_v31 = vpop.f32.mrf.mxu3  ;;  %v838_v43 = vadd.f32 %v837_v62, %v4190_v21  ;;  %v926_v47 = vpop.f32.mrf.mxu1  ;;  %v3362_v20 = vor.u32 %v3604_v45, %v3361_v14 }
 0x163   : > { %v1103_v29 = vadd.f32 %v1102_v31, %v1014_v36  ;;  %v927_v15 = vadd.f32 %v926_v47, %v838_v43  ;;  %2170 = vmatpush.bf16.msra.mxu1 %v3362_v20 }
 0x165   : > { %v1566_v18 = vmax.f32 %v927_v15, 0.0  ;;  %v1563_v31 = vmax.f32 %v1103_v29, 0.0 }
 0x167   : > { %v4359_v35 = vpack.c.bf16 %v1566_v18, %v1562_v1 }
 0x168   : > { %v1015_v30 = vpop.f32.mrf.mxu2  ;;  %v840_v40 = vpop.f32.mrf.mxu0 }
 0x169   : > { %5033 = vst [vmem:[#allocation22_spill] sm:$0xff] %v4359_v35  ;;  %v1016_v41 = vadd.f32 %v1015_v30, %v4202_v34  ;;  %v1104_v25 = vpop.f32.mrf.mxu3  ;;  %v841_v54 = vadd.f32 %v840_v40, %v4190_v21  ;;  %v929_v62 = vpop.f32.mrf.mxu1 }
 0x16b   : > { %v1105_v46 = vadd.f32 %v1104_v25, %v1016_v41  ;;  %v930_v36 = vadd.f32 %v929_v62, %v841_v54  ;;  %1155 = vmatmul.bf16.gmra.mxu0 %v4108_v2 }
 0x16c   : > { %1244 = vmatmul.bf16.gmra.mxu1 %v4110_v3 }
 0x16d   : > { %v1567_v4 = vmax.f32 %v1105_v46, 0.0  ;;  %1333 = vmatmul.bf16.gmra.mxu2 %v4108_v2  ;;  %v1570_v29 = vmax.f32 %v930_v36, 0.0  ;;  %v3417_v36 = vld [vmem:[#allocation8 + $0x150] sm:$0xf] }
 0x16e   : > { %1422 = vmatmul.bf16.gmra.mxu3 %v4110_v3 }
 0x16f   : > { %v4367_v19 = vpack.c.bf16 %v1567_v4, %v1563_v31 }
 0x170   : > { %v1018_v20 = vpop.f32.mrf.mxu2  ;;  %v842_v15 = vpop.f32.mrf.mxu0 }
 0x171   : > { %5034 = vst [vmem:[#allocation23_spill] sm:$0xff] %v4367_v19  ;;  %v1019_v43 = vadd.f32 %v1018_v20, %v4202_v34  ;;  %v1107_v47 = vpop.f32.mrf.mxu3  ;;  %v843_v14 = vadd.f32 %v842_v15, %v4190_v21  ;;  %v931_v45 = vpop.f32.mrf.mxu1  ;;  %v3289_v15 = vld [vmem:[#allocation8 + $0x50] sm:$0xf] }
 0x173   : > { %v1108_v1 = vadd.f32 %v1107_v47, %v1019_v43  ;;  %v932_v18 = vadd.f32 %v931_v45, %v843_v14  ;;  %v3618_v43 = vld [vmem:[#allocation8 + $0x154] sm:$0xf0]  ;;  %v3481_v45 = vld [vmem:[#allocation8 + $0x1d0] sm:$0xf] }
 0x174   : > { %v3418_v47 = vor.u32 %v3618_v43, %v3417_v36  ;;  %v3586_v14 = vld [vmem:[#allocation8 + $0x54] sm:$0xf0] }
 0x175   : > { %v1574_v30 = vmax.f32 %v932_v18, 0.0  ;;  %v1571_v4 = vmax.f32 %v1108_v1, 0.0  ;;  %v3602_v36 = vld [vmem:[#allocation8 + $0xd4] sm:$0xf0] }
 0x176   : > { %2260 = vmatpush.bf16.msra.mxu2 %v3418_v47 }
 0x177   : > { %v4371_v25 = vpack.c.bf16 %v1574_v30, %v1570_v29  ;;  %v3290_v30 = vor.u32 %v3586_v14, %v3289_v15 }
 0x178   : > { %v1020_v41 = vpop.f32.mrf.mxu2  ;;  %v845_v40 = vpop.f32.mrf.mxu0 }
 0x179   : > { %v1021_v2 = vadd.f32 %v1020_v41, %v4202_v34  ;;  %v1109_v3 = vpop.f32.mrf.mxu3  ;;  %v846_v54 = vadd.f32 %v845_v40, %v4190_v21  ;;  %v934_v62 = vpop.f32.mrf.mxu1  ;;  %v3634_v41 = vld [vmem:[#allocation8 + $0x1d4] sm:$0xf0]  ;;  %2082 = vmatpush.bf16.msra.mxu0 %v3290_v30 }
 0x17a   : > { %v3482_v40 = vor.u32 %v3634_v41, %v3481_v45 }
 0x17b   : > { %v1110_v46 = vadd.f32 %v1109_v3, %v1021_v2  ;;  %v935_v31 = vadd.f32 %v934_v62, %v846_v54  ;;  %1160 = vmatmul.bf16.gmra.mxu0 %v4120_v8 }
 0x17c   : > { %1249 = vmatmul.bf16.gmra.mxu1 %v4122_v9  ;;  %2349 = vmatpush.bf16.msra.mxu3 %v3482_v40 }
 0x17d   : > { %v1575_v20 = vmax.f32 %v1110_v46, 0.0  ;;  %1338 = vmatmul.bf16.gmra.mxu2 %v4120_v8  ;;  %v3353_v46 = vld [vmem:[#allocation8 + $0xd0] sm:$0xf] }
 0x17e   : > { %1427 = vmatmul.bf16.gmra.mxu3 %v4122_v9  ;;  %v3354_v43 = vor.u32 %v3602_v36, %v3353_v46 }
 0x17f   : > { %v4379_v18 = vpack.c.bf16 %v1575_v20, %v1571_v4  ;;  %v1578_v4 = vmax.f32 %v935_v31, 0.0 }
 0x180   : > { %v1023_v29 = vpop.f32.mrf.mxu2  ;;  %v847_v3 = vpop.f32.mrf.mxu0  ;;  %2171 = vmatpush.bf16.msra.mxu1 %v3354_v43 }
 0x181   : > { %v1024_v1 = vadd.f32 %v1023_v29, %v4202_v34  ;;  %v1112_v2 = vpop.f32.mrf.mxu3  ;;  %v848_v8 = vadd.f32 %v847_v3, %v4190_v21  ;;  %v936_v9 = vpop.f32.mrf.mxu1 }
 0x183   : > { %v1113_v54 = vadd.f32 %v1112_v2, %v1024_v1  ;;  %v937_v62 = vadd.f32 %v936_v9, %v848_v8 }
 0x185   : > { %v1582_v20 = vmax.f32 %v937_v62, 0.0  ;;  %v1579_v2 = vmax.f32 %v1113_v54, 0.0 }
 0x187   : > { %v4383_v14 = vpack.c.bf16 %v1582_v20, %v1578_v4 }
 0x188   : > { %v1025_v15 = vpop.f32.mrf.mxu2  ;;  %v850_v45 = vpop.f32.mrf.mxu0 }
 0x189   : > { %v1026_v29 = vadd.f32 %v1025_v15, %v4202_v34  ;;  %v1114_v47 = vpop.f32.mrf.mxu3  ;;  %v851_v41 = vadd.f32 %v850_v45, %v4190_v21  ;;  %v939_v3 = vpop.f32.mrf.mxu1 }
 0x18b   : > { %v1115_v30 = vadd.f32 %v1114_v47, %v1026_v29  ;;  %v940_v1 = vadd.f32 %v939_v3, %v851_v41  ;;  %1165 = vmatmul.bf16.gmra.mxu0 %v4132_v26 }
 0x18c   : > { %1254 = vmatmul.bf16.gmra.mxu1 %v4134_v27 }
 0x18d   : > { %v1583_v40 = vmax.f32 %v1115_v30, 0.0  ;;  %1343 = vmatmul.bf16.gmra.mxu2 %v4132_v26  ;;  %v1586_v54 = vmax.f32 %v940_v1, 0.0  ;;  %v3409_v1 = vld [vmem:[#allocation8 + $0x140] sm:$0xf] }
 0x18e   : > { %1432 = vmatmul.bf16.gmra.mxu3 %v4134_v27 }
 0x18f   : > { %v4391_v31 = vpack.c.bf16 %v1583_v40, %v1579_v2 }
 0x190   : > { %v1028_v8 = vpop.f32.mrf.mxu2  ;;  %v852_v46 = vpop.f32.mrf.mxu0 }
 0x191   : > { %5035 = vst [vmem:[#allocation24_spill] sm:$0xff] %v4391_v31  ;;  %v1029_v9 = vadd.f32 %v1028_v8, %v4202_v34  ;;  %v1117_v62 = vpop.f32.mrf.mxu3  ;;  %v853_v36 = vadd.f32 %v852_v46, %v4190_v21  ;;  %v941_v4 = vpop.f32.mrf.mxu1  ;;  %v3281_v46 = vld [vmem:[#allocation8 + $0x40] sm:$0xf] }
 0x193   : > { %v1118_v20 = vadd.f32 %v1117_v62, %v1029_v9  ;;  %v942_v43 = vadd.f32 %v941_v4, %v853_v36  ;;  %v3616_v9 = vld [vmem:[#allocation8 + $0x144] sm:$0xf0]  ;;  %v3473_v4 = vld [vmem:[#allocation8 + $0x1c0] sm:$0xf] }
 0x194   : > { %v3410_v62 = vor.u32 %v3616_v9, %v3409_v1  ;;  %v3584_v36 = vld [vmem:[#allocation8 + $0x44] sm:$0xf0] }
 0x195   : > { %v1590_v15 = vmax.f32 %v942_v43, 0.0  ;;  %v1587_v40 = vmax.f32 %v1118_v20, 0.0  ;;  %v3600_v1 = vld [vmem:[#allocation8 + $0xc4] sm:$0xf0] }
 0x196   : > { %2261 = vmatpush.bf16.msra.mxu2 %v3410_v62 }
 0x197   : > { %v4395_v47 = vpack.c.bf16 %v1590_v15, %v1586_v54  ;;  %v3282_v15 = vor.u32 %v3584_v36, %v3281_v46 }
 0x198   : > { %v1030_v29 = vpop.f32.mrf.mxu2  ;;  %v855_v45 = vpop.f32.mrf.mxu0 }
 0x199   : > { %v1031_v26 = vadd.f32 %v1030_v29, %v4202_v34  ;;  %v1119_v27 = vpop.f32.mrf.mxu3  ;;  %v856_v41 = vadd.f32 %v855_v45, %v4190_v21  ;;  %v944_v3 = vpop.f32.mrf.mxu1  ;;  %v3632_v29 = vld [vmem:[#allocation8 + $0x1c4] sm:$0xf0]  ;;  %2083 = vmatpush.bf16.msra.mxu0 %v3282_v15 }
 0x19a   : > { %v3474_v45 = vor.u32 %v3632_v29, %v3473_v4 }
 0x19b   : > { %v1120_v30 = vadd.f32 %v1119_v27, %v1031_v26  ;;  %v945_v2 = vadd.f32 %v944_v3, %v856_v41  ;;  %1170 = vmatmul.bf16.gmra.mxu0 %v4144_v32 }
 0x19c   : > { %1259 = vmatmul.bf16.gmra.mxu1 %v4146_v33  ;;  %2350 = vmatpush.bf16.msra.mxu3 %v3474_v45 }
 0x19d   : > { %v1591_v8 = vmax.f32 %v1120_v30, 0.0  ;;  %1348 = vmatmul.bf16.gmra.mxu2 %v4144_v32  ;;  %v3345_v30 = vld [vmem:[#allocation8 + $0xc0] sm:$0xf] }
 0x19e   : > { %1437 = vmatmul.bf16.gmra.mxu3 %v4146_v33  ;;  %v3346_v9 = vor.u32 %v3600_v1, %v3345_v30 }
 0x19f   : > { %v4403_v43 = vpack.c.bf16 %v1591_v8, %v1587_v40  ;;  %v1594_v40 = vmax.f32 %v945_v2, 0.0 }
 0x1a0   : > { %v1033_v54 = vpop.f32.mrf.mxu2  ;;  %v857_v27 = vpop.f32.mrf.mxu0  ;;  %2172 = vmatpush.bf16.msra.mxu1 %v3346_v9 }
 0x1a1   : > { %v1034_v20 = vadd.f32 %v1033_v54, %v4202_v34  ;;  %v1122_v26 = vpop.f32.mrf.mxu3  ;;  %v858_v32 = vadd.f32 %v857_v27, %v4190_v21  ;;  %v946_v33 = vpop.f32.mrf.mxu1 }
 0x1a3   : > { %v1123_v41 = vadd.f32 %v1122_v26, %v1034_v20  ;;  %v947_v3 = vadd.f32 %v946_v33, %v858_v32 }
 0x1a5   : > { %v1598_v8 = vmax.f32 %v947_v3, 0.0  ;;  %v1595_v26 = vmax.f32 %v1123_v41, 0.0 }
 0x1a7   : > { %v4407_v36 = vpack.c.bf16 %v1598_v8, %v1594_v40 }
 0x1a8   : > { %v1035_v46 = vpop.f32.mrf.mxu2  ;;  %v860_v4 = vpop.f32.mrf.mxu0 }
 0x1a9   : > { %v1036_v54 = vadd.f32 %v1035_v46, %v4202_v34  ;;  %v1124_v62 = vpop.f32.mrf.mxu3  ;;  %v861_v29 = vadd.f32 %v860_v4, %v4190_v21  ;;  %v949_v27 = vpop.f32.mrf.mxu1 }
 0x1ab   : > { %v1125_v15 = vadd.f32 %v1124_v62, %v1036_v54  ;;  %v950_v20 = vadd.f32 %v949_v27, %v861_v29  ;;  %1175 = vmatmul.bf16.gmra.mxu0 %v4156_v52 }
 0x1ac   : > { %1264 = vmatmul.bf16.gmra.mxu1 %v4158_v53 }
 0x1ad   : > { %v1599_v45 = vmax.f32 %v1125_v15, 0.0  ;;  %1353 = vmatmul.bf16.gmra.mxu2 %v4156_v52  ;;  %v1602_v41 = vmax.f32 %v950_v20, 0.0  ;;  %v3401_v20 = vld [vmem:[#allocation8 + $0x130] sm:$0xf] }
 0x1ae   : > { %1442 = vmatmul.bf16.gmra.mxu3 %v4158_v53 }
 0x1af   : > { %v4415_v2 = vpack.c.bf16 %v1599_v45, %v1595_v26 }
 0x1b0   : > { %v1038_v32 = vpop.f32.mrf.mxu2  ;;  %v862_v30 = vpop.f32.mrf.mxu0 }
 0x1b1   : > { %5036 = vst [vmem:[#allocation25_spill] sm:$0xff] %v4415_v2  ;;  %v1039_v33 = vadd.f32 %v1038_v32, %v4202_v34  ;;  %v1127_v3 = vpop.f32.mrf.mxu3  ;;  %v863_v1 = vadd.f32 %v862_v30, %v4190_v21  ;;  %v951_v40 = vpop.f32.mrf.mxu1  ;;  %v3273_v30 = vld [vmem:[#allocation8 + $0x30] sm:$0xf] }
 0x1b3   : > { %v1128_v8 = vadd.f32 %v1127_v3, %v1039_v33  ;;  %v952_v9 = vadd.f32 %v951_v40, %v863_v1  ;;  %v3614_v33 = vld [vmem:[#allocation8 + $0x134] sm:$0xf0]  ;;  %v3465_v40 = vld [vmem:[#allocation8 + $0x1b0] sm:$0xf] }
 0x1b4   : > { %v3402_v3 = vor.u32 %v3614_v33, %v3401_v20  ;;  %v3582_v1 = vld [vmem:[#allocation8 + $0x34] sm:$0xf0] }
 0x1b5   : > { %v1606_v46 = vmax.f32 %v952_v9, 0.0  ;;  %v1603_v45 = vmax.f32 %v1128_v8, 0.0  ;;  %v3598_v20 = vld [vmem:[#allocation8 + $0xb4] sm:$0xf0] }
 0x1b6   : > { %2262 = vmatpush.bf16.msra.mxu2 %v3402_v3 }
 0x1b7   : > { %v4419_v62 = vpack.c.bf16 %v1606_v46, %v1602_v41  ;;  %v3274_v46 = vor.u32 %v3582_v1, %v3273_v30 }
 0x1b8   : > { %v1040_v54 = vpop.f32.mrf.mxu2  ;;  %v865_v4 = vpop.f32.mrf.mxu0 }
 0x1b9   : > { %v1041_v52 = vadd.f32 %v1040_v54, %v4202_v34  ;;  %v1129_v53 = vpop.f32.mrf.mxu3  ;;  %v866_v29 = vadd.f32 %v865_v4, %v4190_v21  ;;  %v954_v27 = vpop.f32.mrf.mxu1  ;;  %v3630_v54 = vld [vmem:[#allocation8 + $0x1b4] sm:$0xf0]  ;;  %2084 = vmatpush.bf16.msra.mxu0 %v3274_v46 }
 0x1ba   : > { %v3466_v4 = vor.u32 %v3630_v54, %v3465_v40 }
 0x1bb   : > { %v1130_v15 = vadd.f32 %v1129_v53, %v1041_v52  ;;  %v955_v26 = vadd.f32 %v954_v27, %v866_v29  ;;  %1180 = vmatmul.bf16.gmra.mxu0 %v4168_v58 }
 0x1bc   : > { %1269 = vmatmul.bf16.gmra.mxu1 %v4170_v59  ;;  %2351 = vmatpush.bf16.msra.mxu3 %v3466_v4 }
 0x1bd   : > { %v1607_v32 = vmax.f32 %v1130_v15, 0.0  ;;  %1358 = vmatmul.bf16.gmra.mxu2 %v4168_v58  ;;  %v3337_v15 = vld [vmem:[#allocation8 + $0xb0] sm:$0xf] }
 0x1be   : > { %1447 = vmatmul.bf16.gmra.mxu3 %v4170_v59  ;;  %v3338_v33 = vor.u32 %v3598_v20, %v3337_v15 }
 0x1bf   : > { %v4427_v9 = vpack.c.bf16 %v1607_v32, %v1603_v45  ;;  %v1610_v45 = vmax.f32 %v955_v26, 0.0 }
 0x1c0   : > { %v1043_v41 = vpop.f32.mrf.mxu2  ;;  %v867_v53 = vpop.f32.mrf.mxu0  ;;  %2173 = vmatpush.bf16.msra.mxu1 %v3338_v33 }
 0x1c1   : > { %v1044_v8 = vadd.f32 %v1043_v41, %v4202_v34  ;;  %v1132_v52 = vpop.f32.mrf.mxu3  ;;  %v868_v58 = vadd.f32 %v867_v53, %v4190_v21  ;;  %v956_v59 = vpop.f32.mrf.mxu1 }
 0x1c3   : > { %v1133_v29 = vadd.f32 %v1132_v52, %v1044_v8  ;;  %v957_v27 = vadd.f32 %v956_v59, %v868_v58 }
 0x1c5   : > { %v1614_v32 = vmax.f32 %v957_v27, 0.0  ;;  %v1611_v52 = vmax.f32 %v1133_v29, 0.0 }
 0x1c7   : > { %v4431_v1 = vpack.c.bf16 %v1614_v32, %v1610_v45 }
 0x1c8   : > { %v1045_v30 = vpop.f32.mrf.mxu2  ;;  %v870_v40 = vpop.f32.mrf.mxu0 }
 0x1c9   : > { %v1046_v41 = vadd.f32 %v1045_v30, %v4202_v34  ;;  %v1134_v3 = vpop.f32.mrf.mxu3  ;;  %v871_v54 = vadd.f32 %v870_v40, %v4190_v21  ;;  %v959_v53 = vpop.f32.mrf.mxu1 }
 0x1cb   : > { %v1135_v46 = vadd.f32 %v1134_v3, %v1046_v41  ;;  %v960_v8 = vadd.f32 %v959_v53, %v871_v54  ;;  %1185 = vmatmul.bf16.gmra.mxu0 %v4180_v16  ;;  %v3724_v41 = vld [vmem:[#allocation7] sm:$0xf] }
 0x1cc   : > { %1274 = vmatmul.bf16.gmra.mxu1 %v4182_v17  ;;  %v4443_v3 = vperm.slane %v3724_v41, 2 }
 0x1cd   : > { %v1615_v4 = vmax.f32 %v1135_v46, 0.0  ;;  %1363 = vmatmul.bf16.gmra.mxu2 %v4180_v16  ;;  %v1618_v29 = vmax.f32 %v960_v8, 0.0 }
 0x1ce   : > { %1452 = vmatmul.bf16.gmra.mxu3 %v4182_v17 }
 0x1cf   : > { %v4439_v26 = vpack.c.bf16 %v1615_v4, %v1611_v52 }
 0x1d0   : > { %v1048_v58 = vpop.f32.mrf.mxu2  ;;  %v872_v15 = vpop.f32.mrf.mxu0 }
 0x1d1   : > { %v1049_v59 = vadd.f32 %v1048_v58, %v4202_v34  ;;  %v1137_v27 = vpop.f32.mrf.mxu3  ;;  %v873_v20 = vadd.f32 %v872_v15, %v4190_v21  ;;  %v961_v45 = vpop.f32.mrf.mxu1 }
 0x1d3   : > { %v1138_v32 = vadd.f32 %v1137_v27, %v1049_v59  ;;  %v962_v33 = vadd.f32 %v961_v45, %v873_v20  ;;  %v4452_v59 = vperm.slane %v3724_v41, 3  ;;  %v3612_v27 = vld [vmem:[#allocation8 + $0x124] sm:$0xf0]  ;;  %v3265_v20 = vld [vmem:[#allocation8 + $0x20] sm:$0xf] }
 0x1d4   : > { %v3580_v45 = vld [vmem:[#allocation8 + $0x24] sm:$0xf0] }
 0x1d5   : > { %v1622_v30 = vmax.f32 %v962_v33, 0.0  ;;  %v1619_v58 = vmax.f32 %v1138_v32, 0.0  ;;  %v3457_v33 = vld [vmem:[#allocation8 + $0x1a0] sm:$0xf]  ;;  %v3628_v32 = vld [vmem:[#allocation8 + $0x1a4] sm:$0xf0] }
 0x1d7   : > { %v4445_v40 = vpack.c.bf16 %v1622_v30, %v1618_v29 }
 0x1d8   : > { %v1050_v16 = vpop.f32.mrf.mxu2  ;;  %v1151_v53 = vpop.f32.mrf.mxu0 }
 0x1d9   : > { %v1051_v17 = vadd.f32 %v1050_v16, %v4202_v34  ;;  %v1139_v54 = vpop.f32.mrf.mxu3  ;;  %v1152_v46 = vadd.f32 %v1151_v53, %v4443_v3  ;;  %v1240_v52 = vpop.f32.mrf.mxu1  ;;  %v3393_v34 = vld [vmem:[#allocation8 + $0x120] sm:$0xf]  ;;  %v3266_v16 = vor.u32 %v3580_v45, %v3265_v20 }
 0x1da   : > { %v3394_v15 = vor.u32 %v3612_v27, %v3393_v34  ;;  %v3596_v34 = vld [vmem:[#allocation8 + $0xa4] sm:$0xf0] }
 0x1db   : > { %v1140_v4 = vadd.f32 %v1139_v54, %v1051_v17  ;;  %v1241_v21 = vadd.f32 %v1240_v52, %v1152_v46  ;;  %1190 = vmatmul.bf16.gmra.mxu0 %v4194_v24 }
 0x1dc   : > { %1279 = vmatmul.bf16.gmra.mxu1 %v4196_v28  ;;  %2263 = vmatpush.bf16.msra.mxu2 %v3394_v15 }
 0x1dd   : > { %v1623_v8 = vmax.f32 %v1140_v4, 0.0  ;;  %1368 = vmatmul.bf16.gmra.mxu2 %v4194_v24  ;;  %v3458_v24 = vor.u32 %v3628_v32, %v3457_v33  ;;  %2085 = vmatpush.bf16.msra.mxu0 %v3266_v16  ;;  %v3329_v4 = vld [vmem:[#allocation8 + $0xa0] sm:$0xf] }
 0x1de   : > { %1457 = vmatmul.bf16.gmra.mxu3 %v4196_v28  ;;  %v3330_v27 = vor.u32 %v3596_v34, %v3329_v4 }
 0x1df   : > { %v4455_v29 = vpack.c.bf16 %v1623_v8, %v1619_v58  ;;  %2352 = vmatpush.bf16.msra.mxu3 %v3458_v24  ;;  %v1500_v58 = vmax.f32 %v1241_v21, 0.0 }
 0x1e0   : > { %v1329_v30 = vpop.f32.mrf.mxu2  ;;  %v1153_v53 = vpop.f32.mrf.mxu0  ;;  %2174 = vmatpush.bf16.msra.mxu1 %v3330_v27 }
 0x1e1   : > { %v1330_v17 = vadd.f32 %v1329_v30, %v4452_v59  ;;  %v1418_v54 = vpop.f32.mrf.mxu3  ;;  %v1154_v41 = vadd.f32 %v1153_v53, %v4443_v3  ;;  %v1242_v28 = vpop.f32.mrf.mxu1 }
 0x1e3   : > { %v1419_v46 = vadd.f32 %v1418_v54, %v1330_v17  ;;  %v1243_v52 = vadd.f32 %v1242_v28, %v1154_v41 }
 0x1e5   : > { %v1504_v8 = vmax.f32 %v1243_v52, 0.0  ;;  %v1501_v54 = vmax.f32 %v1419_v46, 0.0 }
 0x1e7   : > { %v4459_v20 = vpack.c.bf16 %v1504_v8, %v1500_v58 }
 0x1e8   : > { %v1331_v45 = vpop.f32.mrf.mxu2  ;;  %v1156_v33 = vpop.f32.mrf.mxu0 }
 0x1e9   : > { %5037 = vst [vmem:[#allocation26_spill] sm:$0xff] %v4459_v20  ;;  %v1332_v30 = vadd.f32 %v1331_v45, %v4452_v59  ;;  %v1420_v15 = vpop.f32.mrf.mxu3  ;;  %v1157_v32 = vadd.f32 %v1156_v33, %v4443_v3  ;;  %v1245_v53 = vpop.f32.mrf.mxu1 }
 0x1eb   : > { %v1421_v16 = vadd.f32 %v1420_v15, %v1332_v30  ;;  %v1246_v17 = vadd.f32 %v1245_v53, %v1157_v32  ;;  %1195 = vmatmul.bf16.gmra.mxu0 %v4213_v7 }
 0x1ec   : > { %1284 = vmatmul.bf16.gmra.mxu1 %v4216_v13 }
 0x1ed   : > { %v1505_v24 = vmax.f32 %v1421_v16, 0.0  ;;  %1373 = vmatmul.bf16.gmra.mxu2 %v4213_v7  ;;  %v1508_v46 = vmax.f32 %v1246_v17, 0.0  ;;  %v3385_v17 = vld [vmem:[#allocation8 + $0x110] sm:$0xf] }
 0x1ee   : > { %1462 = vmatmul.bf16.gmra.mxu3 %v4216_v13 }
 0x1ef   : > { %v4467_v21 = vpack.c.bf16 %v1505_v24, %v1501_v54 }
 0x1f0   : > { %v1334_v41 = vpop.f32.mrf.mxu2  ;;  %v1158_v4 = vpop.f32.mrf.mxu0 }
 0x1f1   : > { %5038 = vst [vmem:[#allocation27_spill] sm:$0xff] %v4467_v21  ;;  %v1335_v28 = vadd.f32 %v1334_v41, %v4452_v59  ;;  %v1423_v52 = vpop.f32.mrf.mxu3  ;;  %v1159_v34 = vadd.f32 %v1158_v4, %v4443_v3  ;;  %v1247_v58 = vpop.f32.mrf.mxu1  ;;  %v3257_v4 = vld [vmem:[#allocation8 + $0x10] sm:$0xf] }
 0x1f3   : > { %v1424_v8 = vadd.f32 %v1423_v52, %v1335_v28  ;;  %v1248_v27 = vadd.f32 %v1247_v58, %v1159_v34  ;;  %v3610_v28 = vld [vmem:[#allocation8 + $0x114] sm:$0xf0]  ;;  %v3449_v58 = vld [vmem:[#allocation8 + $0x190] sm:$0xf] }
 0x1f4   : > { %v3386_v52 = vor.u32 %v3610_v28, %v3385_v17  ;;  %v3578_v34 = vld [vmem:[#allocation8 + $0x14] sm:$0xf0] }
 0x1f5   : > { %v1512_v45 = vmax.f32 %v1248_v27, 0.0  ;;  %v1509_v24 = vmax.f32 %v1424_v8, 0.0  ;;  %v3594_v17 = vld [vmem:[#allocation8 + $0x94] sm:$0xf0] }
 0x1f6   : > { %2264 = vmatpush.bf16.msra.mxu2 %v3386_v52 }
 0x1f7   : > { %v4471_v15 = vpack.c.bf16 %v1512_v45, %v1508_v46  ;;  %v3258_v45 = vor.u32 %v3578_v34, %v3257_v4 }
 0x1f8   : > { %v1336_v30 = vpop.f32.mrf.mxu2  ;;  %v1161_v33 = vpop.f32.mrf.mxu0 }
 0x1f9   : > { %v1337_v7 = vadd.f32 %v1336_v30, %v4452_v59  ;;  %v1425_v13 = vpop.f32.mrf.mxu3  ;;  %v1162_v32 = vadd.f32 %v1161_v33, %v4443_v3  ;;  %v1250_v53 = vpop.f32.mrf.mxu1  ;;  %v3626_v30 = vld [vmem:[#allocation8 + $0x194] sm:$0xf0]  ;;  %2086 = vmatpush.bf16.msra.mxu0 %v3258_v45 }
 0x1fa   : > { %v3450_v33 = vor.u32 %v3626_v30, %v3449_v58 }
 0x1fb   : > { %v1426_v16 = vadd.f32 %v1425_v13, %v1337_v7  ;;  %v1251_v54 = vadd.f32 %v1250_v53, %v1162_v32  ;;  %1200 = vmatmul.bf16.gmra.mxu0 %v4231_v48 }
 0x1fc   : > { %1289 = vmatmul.bf16.gmra.mxu1 %v4236_v55  ;;  %2353 = vmatpush.bf16.msra.mxu3 %v3450_v33 }
 0x1fd   : > { %v1513_v41 = vmax.f32 %v1426_v16, 0.0  ;;  %1378 = vmatmul.bf16.gmra.mxu2 %v4231_v48  ;;  %v3321_v16 = vld [vmem:[#allocation8 + $0x90] sm:$0xf] }
 0x1fe   : > { %1467 = vmatmul.bf16.gmra.mxu3 %v4236_v55  ;;  %v3322_v28 = vor.u32 %v3594_v17, %v3321_v16 }
 0x1ff   : > { %v4479_v27 = vpack.c.bf16 %v1513_v41, %v1509_v24  ;;  %v1516_v24 = vmax.f32 %v1251_v54, 0.0 }
 0x200   : > { %v1339_v46 = vpop.f32.mrf.mxu2  ;;  %v1163_v13 = vpop.f32.mrf.mxu0  ;;  %2175 = vmatpush.bf16.msra.mxu1 %v3322_v28 }
 0x201   : > { %5039 = vst [vmem:[#allocation28_spill] sm:$0xff] %v4479_v27  ;;  %v1340_v8 = vadd.f32 %v1339_v46, %v4452_v59  ;;  %v1428_v7 = vpop.f32.mrf.mxu3  ;;  %v1164_v48 = vadd.f32 %v1163_v13, %v4443_v3  ;;  %v1252_v55 = vpop.f32.mrf.mxu1 }
 0x203   : > { %v1429_v32 = vadd.f32 %v1428_v7, %v1340_v8  ;;  %v1253_v53 = vadd.f32 %v1252_v55, %v1164_v48 }
 0x205   : > { %v1520_v41 = vmax.f32 %v1253_v53, 0.0  ;;  %v1517_v7 = vmax.f32 %v1429_v32, 0.0 }
 0x207   : > { %v4483_v34 = vpack.c.bf16 %v1520_v41, %v1516_v24 }
 0x208   : > { %v1341_v4 = vpop.f32.mrf.mxu2  ;;  %v1166_v58 = vpop.f32.mrf.mxu0 }
 0x209   : > { %5040 = vst [vmem:[#allocation29_spill] sm:$0xff] %v4483_v34  ;;  %v1342_v46 = vadd.f32 %v1341_v4, %v4452_v59  ;;  %v1430_v52 = vpop.f32.mrf.mxu3  ;;  %v1167_v30 = vadd.f32 %v1166_v58, %v4443_v3  ;;  %v1255_v13 = vpop.f32.mrf.mxu1 }
 0x20b   : > { %v1431_v45 = vadd.f32 %v1430_v52, %v1342_v46  ;;  %v1256_v8 = vadd.f32 %v1255_v13, %v1167_v30  ;;  %1205 = vmatmul.bf16.gmra.mxu0 %v4251_v50 }
 0x20c   : > { %1294 = vmatmul.bf16.gmra.mxu1 %v4256_v60 }
 0x20d   : > { %v1521_v33 = vmax.f32 %v1431_v45, 0.0  ;;  %1383 = vmatmul.bf16.gmra.mxu2 %v4251_v50  ;;  %v1524_v32 = vmax.f32 %v1256_v8, 0.0  ;;  %v3377_v8 = vld [vmem:[#allocation8 + $0x100] sm:$0xf] }
 0x20e   : > { %1472 = vmatmul.bf16.gmra.mxu3 %v4256_v60 }
 0x20f   : > { %v4491_v54 = vpack.c.bf16 %v1521_v33, %v1517_v7 }
 0x210   : > { %v1344_v48 = vpop.f32.mrf.mxu2  ;;  %v1168_v16 = vpop.f32.mrf.mxu0 }
 0x211   : > { %5041 = vst [vmem:[#allocation30_spill] sm:$0xff] %v4491_v54  ;;  %v1345_v55 = vadd.f32 %v1344_v48, %v4452_v59  ;;  %v1433_v53 = vpop.f32.mrf.mxu3  ;;  %v1169_v17 = vadd.f32 %v1168_v16, %v4443_v3  ;;  %v1257_v24 = vpop.f32.mrf.mxu1  ;;  %v3249_v16 = vld [vmem:[#allocation8] sm:$0xf] }
 0x213   : > { %v1434_v41 = vadd.f32 %v1433_v53, %v1345_v55  ;;  %v1258_v28 = vadd.f32 %v1257_v24, %v1169_v17  ;;  %v3608_v55 = vld [vmem:[#allocation8 + $0x104] sm:$0xf0]  ;;  %v3441_v24 = vld [vmem:[#allocation8 + $0x180] sm:$0xf] }
 0x214   : > { %v3378_v53 = vor.u32 %v3608_v55, %v3377_v8  ;;  %v3576_v17 = vld [vmem:[#allocation8 + $0x4] sm:$0xf0] }
 0x215   : > { %v1528_v4 = vmax.f32 %v1258_v28, 0.0  ;;  %v1525_v33 = vmax.f32 %v1434_v41, 0.0  ;;  %v3592_v8 = vld [vmem:[#allocation8 + $0x84] sm:$0xf0] }
 0x216   : > { %2265 = vmatpush.bf16.msra.mxu2 %v3378_v53 }
 0x217   : > { %v4495_v52 = vpack.c.bf16 %v1528_v4, %v1524_v32  ;;  %v3250_v4 = vor.u32 %v3576_v17, %v3249_v16 }
 0x218   : > { %v1346_v46 = vpop.f32.mrf.mxu2  ;;  %v1171_v58 = vpop.f32.mrf.mxu0 }
 0x219   : > { %5042 = vst [vmem:[#allocation31_spill] sm:$0xff] %v4495_v52  ;;  %v1347_v50 = vadd.f32 %v1346_v46, %v4452_v59  ;;  %v1435_v60 = vpop.f32.mrf.mxu3  ;;  %v1172_v30 = vadd.f32 %v1171_v58, %v4443_v3  ;;  %v1260_v13 = vpop.f32.mrf.mxu1  ;;  %v3624_v46 = vld [vmem:[#allocation8 + $0x184] sm:$0xf0]  ;;  %2087 = vmatpush.bf16.msra.mxu0 %v3250_v4 }
 0x21a   : > { %v3442_v58 = vor.u32 %v3624_v46, %v3441_v24 }
 0x21b   : > { %v1436_v45 = vadd.f32 %v1435_v60, %v1347_v50  ;;  %v1261_v7 = vadd.f32 %v1260_v13, %v1172_v30  ;;  %1210 = vmatmul.bf16.gmra.mxu0 %v4271_v38 }
 0x21c   : > { %1299 = vmatmul.bf16.gmra.mxu1 %v4276_v44  ;;  %2354 = vmatpush.bf16.msra.mxu3 %v3442_v58 }
 0x21d   : > { %v1529_v48 = vmax.f32 %v1436_v45, 0.0  ;;  %1388 = vmatmul.bf16.gmra.mxu2 %v4271_v38  ;;  %v3313_v45 = vld [vmem:[#allocation8 + $0x80] sm:$0xf] }
 0x21e   : > { %1477 = vmatmul.bf16.gmra.mxu3 %v4276_v44  ;;  %v3314_v55 = vor.u32 %v3592_v8, %v3313_v45 }
 0x21f   : > { %v4503_v28 = vpack.c.bf16 %v1529_v48, %v1525_v33  ;;  %v1532_v33 = vmax.f32 %v1261_v7, 0.0 }
 0x220   : > { %v1349_v32 = vpop.f32.mrf.mxu2  ;;  %v1173_v60 = vpop.f32.mrf.mxu0  ;;  %2176 = vmatpush.bf16.msra.mxu1 %v3314_v55 }
 0x221   : > { %5043 = vst [vmem:[#allocation32_spill] sm:$0xff] %v4503_v28  ;;  %v1350_v41 = vadd.f32 %v1349_v32, %v4452_v59  ;;  %v1438_v50 = vpop.f32.mrf.mxu3  ;;  %v1174_v38 = vadd.f32 %v1173_v60, %v4443_v3  ;;  %v1262_v44 = vpop.f32.mrf.mxu1 }
 0x223   : > { %v1439_v30 = vadd.f32 %v1438_v50, %v1350_v41  ;;  %v1263_v13 = vadd.f32 %v1262_v44, %v1174_v38 }
 0x225   : > { %v1536_v48 = vmax.f32 %v1263_v13, 0.0  ;;  %v1533_v50 = vmax.f32 %v1439_v30, 0.0 }
 0x227   : > { %v4507_v17 = vpack.c.bf16 %v1536_v48, %v1532_v33 }
 0x228   : > { %v1351_v16 = vpop.f32.mrf.mxu2  ;;  %v1176_v24 = vpop.f32.mrf.mxu0 }
 0x229   : > { %5044 = vst [vmem:[#allocation33_spill] sm:$0xff] %v4507_v17  ;;  %v1352_v32 = vadd.f32 %v1351_v16, %v4452_v59  ;;  %v1440_v53 = vpop.f32.mrf.mxu3  ;;  %v1177_v46 = vadd.f32 %v1176_v24, %v4443_v3  ;;  %v1265_v60 = vpop.f32.mrf.mxu1 }
 0x22b   : > { %v1441_v4 = vadd.f32 %v1440_v53, %v1352_v32  ;;  %v1266_v41 = vadd.f32 %v1265_v60, %v1177_v46  ;;  %1215 = vmatmul.bf16.gmra.mxu0 %v4291_v63 }
 0x22c   : > { %1304 = vmatmul.bf16.gmra.mxu1 %v4296_v10 }
 0x22d   : > { %v1537_v58 = vmax.f32 %v1441_v4, 0.0  ;;  %1393 = vmatmul.bf16.gmra.mxu2 %v4291_v63  ;;  %v1540_v30 = vmax.f32 %v1266_v41, 0.0  ;;  %v3621_v41 = vld [vmem:[#allocation8 + $0x174] sm:$0xf] }
 0x22e   : > { %1482 = vmatmul.bf16.gmra.mxu3 %v4296_v10 }
 0x22f   : > { %v4515_v7 = vpack.c.bf16 %v1537_v58, %v1533_v50 }
 0x230   : > { %v1354_v38 = vpop.f32.mrf.mxu2  ;;  %v1178_v45 = vpop.f32.mrf.mxu0 }
 0x231   : > { %5045 = vst [vmem:[#allocation34_spill] sm:$0xff] %v4515_v7  ;;  %v1355_v44 = vadd.f32 %v1354_v38, %v4452_v59  ;;  %v1443_v13 = vpop.f32.mrf.mxu3  ;;  %v1179_v8 = vadd.f32 %v1178_v45, %v4443_v3  ;;  %v1267_v33 = vpop.f32.mrf.mxu1  ;;  %v3589_v45 = vld [vmem:[#allocation8 + $0x74] sm:$0xf] }
 0x233   : > { %v1444_v48 = vadd.f32 %v1443_v13, %v1355_v44  ;;  %v1268_v55 = vadd.f32 %v1267_v33, %v1179_v8  ;;  %v3435_v44 = vld [vmem:[#allocation8 + $0x178] sm:$0xf0]  ;;  %v3637_v33 = vld [vmem:[#allocation8 + $0x1f4] sm:$0xf] }
 0x234   : > { %v3438_v13 = vor.u32 %v3621_v41, %v3435_v44  ;;  %v3307_v8 = vld [vmem:[#allocation8 + $0x78] sm:$0xf0] }
 0x235   : > { %v1544_v16 = vmax.f32 %v1268_v55, 0.0  ;;  %v1541_v58 = vmax.f32 %v1444_v48, 0.0  ;;  %v3371_v41 = vld [vmem:[#allocation8 + $0xf8] sm:$0xf0] }
 0x236   : > { %2614 = vmatpush.bf16.msrb.mxu2 %v3438_v13 }
 0x237   : > { %v4519_v53 = vpack.c.bf16 %v1544_v16, %v1540_v30  ;;  %v3310_v16 = vor.u32 %v3589_v45, %v3307_v8 }
 0x238   : > { %v1356_v32 = vpop.f32.mrf.mxu2  ;;  %v1181_v24 = vpop.f32.mrf.mxu0 }
 0x239   : > { %5046 = vst [vmem:[#allocation35_spill] sm:$0xff] %v4519_v53  ;;  %v1357_v63 = vadd.f32 %v1356_v32, %v4452_v59  ;;  %v1445_v10 = vpop.f32.mrf.mxu3  ;;  %v1182_v46 = vadd.f32 %v1181_v24, %v4443_v3  ;;  %v1270_v60 = vpop.f32.mrf.mxu1  ;;  %v3499_v32 = vld [vmem:[#allocation8 + $0x1f8] sm:$0xf0]  ;;  %2436 = vmatpush.bf16.msrb.mxu0 %v3310_v16 }
 0x23a   : > { %v3502_v24 = vor.u32 %v3637_v33, %v3499_v32 }
 0x23b   : > { %v1446_v4 = vadd.f32 %v1445_v10, %v1357_v63  ;;  %v1271_v50 = vadd.f32 %v1270_v60, %v1182_v46  ;;  %1220 = vmatmul.bf16.gmra.mxu0 %v4311_v0 }
 0x23c   : > { %1309 = vmatmul.bf16.gmra.mxu1 %v4316_v56  ;;  %2703 = vmatpush.bf16.msrb.mxu3 %v3502_v24 }
 0x23d   : > { %v1545_v38 = vmax.f32 %v1446_v4, 0.0  ;;  %1398 = vmatmul.bf16.gmra.mxu2 %v4311_v0  ;;  %v3605_v4 = vld [vmem:[#allocation8 + $0xf4] sm:$0xf] }
 0x23e   : > { %1487 = vmatmul.bf16.gmra.mxu3 %v4316_v56  ;;  %v3374_v44 = vor.u32 %v3605_v4, %v3371_v41 }
 0x23f   : > { %v4527_v55 = vpack.c.bf16 %v1545_v38, %v1541_v58  ;;  %v1548_v58 = vmax.f32 %v1271_v50, 0.0 }
 0x240   : > { %v1359_v30 = vpop.f32.mrf.mxu2  ;;  %v1183_v10 = vpop.f32.mrf.mxu0  ;;  %2525 = vmatpush.bf16.msrb.mxu1 %v3374_v44 }
 0x241   : > { %5047 = vst [vmem:[#allocation36_spill] sm:$0xff] %v4527_v55  ;;  %v1360_v48 = vadd.f32 %v1359_v30, %v4452_v59  ;;  %v1448_v63 = vpop.f32.mrf.mxu3  ;;  %v1184_v0 = vadd.f32 %v1183_v10, %v4443_v3  ;;  %v1272_v56 = vpop.f32.mrf.mxu1 }
 0x243   : > { %v1449_v46 = vadd.f32 %v1448_v63, %v1360_v48  ;;  %v1273_v60 = vadd.f32 %v1272_v56, %v1184_v0 }
 0x245   : > { %v1552_v38 = vmax.f32 %v1273_v60, 0.0  ;;  %v1549_v63 = vmax.f32 %v1449_v46, 0.0 }
 0x247   : > { %v4531_v8 = vpack.c.bf16 %v1552_v38, %v1548_v58 }
 0x248   : > { %v1361_v45 = vpop.f32.mrf.mxu2  ;;  %v1186_v33 = vpop.f32.mrf.mxu0 }
 0x249   : > { %5048 = vst [vmem:[#allocation37_spill] sm:$0xff] %v4531_v8  ;;  %v1362_v30 = vadd.f32 %v1361_v45, %v4452_v59  ;;  %v1450_v13 = vpop.f32.mrf.mxu3  ;;  %v1187_v32 = vadd.f32 %v1186_v33, %v4443_v3  ;;  %v1275_v10 = vpop.f32.mrf.mxu1 }
 0x24b   : > { %v1451_v16 = vadd.f32 %v1450_v13, %v1362_v30  ;;  %v1276_v48 = vadd.f32 %v1275_v10, %v1187_v32  ;;  %1225 = vmatmul.bf16.gmra.mxu0 %v4331_v61 }
 0x24c   : > { %1314 = vmatmul.bf16.gmra.mxu1 %v4336_v57 }
 0x24d   : > { %v1553_v24 = vmax.f32 %v1451_v16, 0.0  ;;  %1403 = vmatmul.bf16.gmra.mxu2 %v4331_v61  ;;  %v1556_v46 = vmax.f32 %v1276_v48, 0.0  ;;  %v3619_v48 = vld [vmem:[#allocation8 + $0x164] sm:$0xf] }
 0x24e   : > { %1492 = vmatmul.bf16.gmra.mxu3 %v4336_v57 }
 0x24f   : > { %v4539_v50 = vpack.c.bf16 %v1553_v24, %v1549_v63 }
 0x250   : > { %v1364_v0 = vpop.f32.mrf.mxu2  ;;  %v1188_v4 = vpop.f32.mrf.mxu0 }
 0x251   : > { %5049 = vst [vmem:[#allocation38_spill] sm:$0xff] %v4539_v50  ;;  %v1365_v56 = vadd.f32 %v1364_v0, %v4452_v59  ;;  %v1453_v60 = vpop.f32.mrf.mxu3  ;;  %v1189_v41 = vadd.f32 %v1188_v4, %v4443_v3  ;;  %v1277_v58 = vpop.f32.mrf.mxu1  ;;  %v3587_v4 = vld [vmem:[#allocation8 + $0x64] sm:$0xf] }
 0x253   : > { %v1454_v38 = vadd.f32 %v1453_v60, %v1365_v56  ;;  %v1278_v44 = vadd.f32 %v1277_v58, %v1189_v41  ;;  %v3427_v56 = vld [vmem:[#allocation8 + $0x168] sm:$0xf0]  ;;  %v3635_v58 = vld [vmem:[#allocation8 + $0x1e4] sm:$0xf] }
 0x254   : > { %v3430_v60 = vor.u32 %v3619_v48, %v3427_v56  ;;  %v3299_v41 = vld [vmem:[#allocation8 + $0x68] sm:$0xf0]  ;;  %v3603_v56 = vld [vmem:[#allocation8 + $0xe4] sm:$0xf] }
 0x255   : > { %v1560_v45 = vmax.f32 %v1278_v44, 0.0  ;;  %v1557_v24 = vmax.f32 %v1454_v38, 0.0 }
 0x256   : > { %2615 = vmatpush.bf16.msrb.mxu2 %v3430_v60 }
 0x257   : > { %v4543_v13 = vpack.c.bf16 %v1560_v45, %v1556_v46  ;;  %v3302_v45 = vor.u32 %v3587_v4, %v3299_v41 }
 0x258   : > { %v1366_v30 = vpop.f32.mrf.mxu2  ;;  %v1191_v33 = vpop.f32.mrf.mxu0 }
 0x259   : > { %v1367_v61 = vadd.f32 %v1366_v30, %v4452_v59  ;;  %v1455_v57 = vpop.f32.mrf.mxu3  ;;  %v1192_v32 = vadd.f32 %v1191_v33, %v4443_v3  ;;  %v1280_v10 = vpop.f32.mrf.mxu1  ;;  %v3491_v30 = vld [vmem:[#allocation8 + $0x1e8] sm:$0xf0]  ;;  %2437 = vmatpush.bf16.msrb.mxu0 %v3302_v45 }
 0x25a   : > { %v3494_v33 = vor.u32 %v3635_v58, %v3491_v30 }
 0x25b   : > { %v1456_v16 = vadd.f32 %v1455_v57, %v1367_v61  ;;  %v1281_v63 = vadd.f32 %v1280_v10, %v1192_v32  ;;  %2088 = vmatmul.bf16.vlgmr.msra.gmra.mxu0 %v4211_v5 }
 0x25c   : > { %2177 = vmatmul.bf16.vlgmr.msra.gmra.mxu1 %v4223_v23  ;;  %2704 = vmatpush.bf16.msrb.mxu3 %v3494_v33 }
 0x25d   : > { %v1561_v0 = vmax.f32 %v1456_v16, 0.0  ;;  %2266 = vmatmul.bf16.vlgmr.msra.gmra.mxu2 %v4459_v20 }
 0x25e   : > { %2355 = vmatmul.bf16.vlgmr.msra.gmra.mxu3 %v4467_v21  ;;  %v3363_v21 = vld [vmem:[#allocation8 + $0xe8] sm:$0xf0] }
 0x25f   : > { %v4551_v44 = vpack.c.bf16 %v1561_v0, %v1557_v24  ;;  %v1564_v24 = vmax.f32 %v1281_v63, 0.0  ;;  %v3366_v20 = vor.u32 %v3603_v56, %v3363_v21 }
 0x260   : > { %v1369_v46 = vpop.f32.mrf.mxu2  ;;  %v1193_v57 = vpop.f32.mrf.mxu0 }
 0x261   : > { %v1370_v38 = vadd.f32 %v1369_v46, %v4452_v59  ;;  %v1458_v61 = vpop.f32.mrf.mxu3  ;;  %v1194_v32 = vadd.f32 %v1193_v57, %v4443_v3  ;;  %v1282_v10 = vpop.f32.mrf.mxu1  ;;  %2526 = vmatpush.bf16.msrb.mxu1 %v3366_v20 }
 0x263   : > { %v1459_v16 = vadd.f32 %v1458_v61, %v1370_v38  ;;  %v1283_v48 = vadd.f32 %v1282_v10, %v1194_v32 }
 0x265   : > { %v1568_v0 = vmax.f32 %v1283_v48, 0.0  ;;  %v1565_v61 = vmax.f32 %v1459_v16, 0.0 }
 0x267   : > { %v4555_v41 = vpack.c.bf16 %v1568_v0, %v1564_v24 }
 0x268   : > { %v1371_v4 = vpop.f32.mrf.mxu2  ;;  %v1196_v58 = vpop.f32.mrf.mxu0 }
 0x269   : > { %5050 = vst [vmem:[#allocation39_spill] sm:$0xff] %v4555_v41  ;;  %v1372_v46 = vadd.f32 %v1371_v4, %v4452_v59  ;;  %v1460_v60 = vpop.f32.mrf.mxu3  ;;  %v1197_v30 = vadd.f32 %v1196_v58, %v4443_v3  ;;  %v1285_v57 = vpop.f32.mrf.mxu1 }
 0x26b   : > { %v1461_v45 = vadd.f32 %v1460_v60, %v1372_v46  ;;  %v1286_v38 = vadd.f32 %v1285_v57, %v1197_v30  ;;  %2093 = vmatmul.bf16.gmra.mxu0 %v4233_v49 }
 0x26c   : > { %2182 = vmatmul.bf16.gmra.mxu1 %v4243_v12 }
 0x26d   : > { %v1569_v33 = vmax.f32 %v1461_v45, 0.0  ;;  %2271 = vmatmul.bf16.gmra.mxu2 %v4471_v15  ;;  %v1572_v16 = vmax.f32 %v1286_v38, 0.0  ;;  %v3617_v38 = vld [vmem:[#allocation8 + $0x154] sm:$0xf] }
 0x26e   : > { %2360 = vmatmul.bf16.gmra.mxu3 %v4479_v27 }
 0x26f   : > { %v4563_v20 = vpack.c.bf16 %v1569_v33, %v1565_v61 }
 0x270   : > { %v1374_v21 = vpop.f32.mrf.mxu2  ;;  %v1198_v10 = vpop.f32.mrf.mxu0 }
 0x271   : > { %5051 = vst [vmem:[#allocation40_spill] sm:$0xff] %v4563_v20  ;;  %v1375_v63 = vadd.f32 %v1374_v21, %v4452_v59  ;;  %v1463_v32 = vpop.f32.mrf.mxu3  ;;  %v1199_v48 = vadd.f32 %v1198_v10, %v4443_v3  ;;  %v1287_v56 = vpop.f32.mrf.mxu1 }
 0x273   : > { %v1464_v24 = vadd.f32 %v1463_v32, %v1375_v63  ;;  %v1288_v0 = vadd.f32 %v1287_v56, %v1199_v48  ;;  %v3419_v63 = vld [vmem:[#allocation8 + $0x158] sm:$0xf0]  ;;  %v3585_v48 = vld [vmem:[#allocation8 + $0x54] sm:$0xf] }
 0x274   : > { %v3422_v32 = vor.u32 %v3617_v38, %v3419_v63  ;;  %v3291_v56 = vld [vmem:[#allocation8 + $0x58] sm:$0xf0]  ;;  %v3601_v63 = vld [vmem:[#allocation8 + $0xd4] sm:$0xf] }
 0x275   : > { %v1576_v4 = vmax.f32 %v1288_v0, 0.0  ;;  %v1573_v10 = vmax.f32 %v1464_v24, 0.0  ;;  %v3633_v0 = vld [vmem:[#allocation8 + $0x1d4] sm:$0xf] }
 0x276   : > { %2616 = vmatpush.bf16.msrb.mxu2 %v3422_v32 }
 0x277   : > { %v4567_v60 = vpack.c.bf16 %v1576_v4, %v1572_v16 }
 0x278   : > { %v1376_v46 = vpop.f32.mrf.mxu2  ;;  %v1201_v57 = vpop.f32.mrf.mxu0 }
 0x279   : > { %v1377_v58 = vadd.f32 %v1376_v46, %v4452_v59  ;;  %v1465_v30 = vpop.f32.mrf.mxu3  ;;  %v1202_v45 = vadd.f32 %v1201_v57, %v4443_v3  ;;  %v1290_v61 = vpop.f32.mrf.mxu1  ;;  %v3294_v46 = vor.u32 %v3585_v48, %v3291_v56 }
 0x27b   : > { %v1466_v33 = vadd.f32 %v1465_v30, %v1377_v58  ;;  %v1291_v21 = vadd.f32 %v1290_v61, %v1202_v45  ;;  %2098 = vmatmul.bf16.gmra.mxu0 %v4253_v51  ;;  %v3483_v58 = vld [vmem:[#allocation8 + $0x1d8] sm:$0xf0] }
 0x27c   : > { %2187 = vmatmul.bf16.gmra.mxu1 %v4263_v6  ;;  %v3486_v45 = vor.u32 %v3633_v0, %v3483_v58  ;;  %2438 = vmatpush.bf16.msrb.mxu0 %v3294_v46 }
 0x27d   : > { %v1577_v27 = vmax.f32 %v1466_v33, 0.0  ;;  %2276 = vmatmul.bf16.gmra.mxu2 %v4483_v34  ;;  %v3355_v34 = vld [vmem:[#allocation8 + $0xd8] sm:$0xf0] }
 0x27e   : > { %2365 = vmatmul.bf16.gmra.mxu3 %v4491_v54  ;;  %v3358_v6 = vor.u32 %v3601_v63, %v3355_v34 }
 0x27f   : > { %v4575_v16 = vpack.c.bf16 %v1577_v27, %v1573_v10  ;;  %2705 = vmatpush.bf16.msrb.mxu3 %v3486_v45  ;;  %v1580_v27 = vmax.f32 %v1291_v21, 0.0 }
 0x280   : > { %v1379_v4 = vpop.f32.mrf.mxu2  ;;  %v1203_v57 = vpop.f32.mrf.mxu0  ;;  %2527 = vmatpush.bf16.msrb.mxu1 %v3358_v6 }
 0x281   : > { %v1380_v24 = vadd.f32 %v1379_v4, %v4452_v59  ;;  %v1468_v30 = vpop.f32.mrf.mxu3  ;;  %v1204_v61 = vadd.f32 %v1203_v57, %v4443_v3  ;;  %v1292_v33 = vpop.f32.mrf.mxu1 }
 0x283   : > { %v1469_v54 = vadd.f32 %v1468_v30, %v1380_v24  ;;  %v1293_v38 = vadd.f32 %v1292_v33, %v1204_v61 }
 0x285   : > { %v1584_v10 = vmax.f32 %v1293_v38, 0.0  ;;  %v1581_v30 = vmax.f32 %v1469_v54, 0.0 }
 0x287   : > { %v4579_v56 = vpack.c.bf16 %v1584_v10, %v1580_v27 }
 0x288   : > { %v1381_v48 = vpop.f32.mrf.mxu2  ;;  %v1206_v0 = vpop.f32.mrf.mxu0 }
 0x289   : > { %5052 = vst [vmem:[#allocation41_spill] sm:$0xff] %v4579_v56  ;;  %v1382_v4 = vadd.f32 %v1381_v48, %v4452_v59  ;;  %v1470_v32 = vpop.f32.mrf.mxu3  ;;  %v1207_v58 = vadd.f32 %v1206_v0, %v4443_v3  ;;  %v1295_v57 = vpop.f32.mrf.mxu1 }
 0x28b   : > { %v1471_v46 = vadd.f32 %v1470_v32, %v1382_v4  ;;  %v1296_v24 = vadd.f32 %v1295_v57, %v1207_v58  ;;  %2103 = vmatmul.bf16.gmra.mxu0 %v4273_v39 }
 0x28c   : > { %2192 = vmatmul.bf16.gmra.mxu1 %v4283_v11 }
 0x28d   : > { %v1585_v45 = vmax.f32 %v1471_v46, 0.0  ;;  %2281 = vmatmul.bf16.gmra.mxu2 %v4495_v52  ;;  %v1588_v54 = vmax.f32 %v1296_v24, 0.0  ;;  %v3615_v24 = vld [vmem:[#allocation8 + $0x144] sm:$0xf] }
 0x28e   : > { %2370 = vmatmul.bf16.gmra.mxu3 %v4503_v28  ;;  %v5054_v28 = vld [vmem:[#allocation16_spill] sm:$0xff] }
 0x28f   : > { %v4587_v6 = vpack.c.bf16 %v1585_v45, %v1581_v30 }
 0x290   : > { %v1384_v34 = vpop.f32.mrf.mxu2  ;;  %v1208_v33 = vpop.f32.mrf.mxu0 }
 0x291   : > { %5053 = vst [vmem:[#allocation42_spill] sm:$0xff] %v4587_v6  ;;  %v1385_v21 = vadd.f32 %v1384_v34, %v4452_v59  ;;  %v1473_v61 = vpop.f32.mrf.mxu3  ;;  %v1209_v38 = vadd.f32 %v1208_v33, %v4443_v3  ;;  %v1297_v63 = vpop.f32.mrf.mxu1 }
 0x293   : > { %v1474_v27 = vadd.f32 %v1473_v61, %v1385_v21  ;;  %v1298_v10 = vadd.f32 %v1297_v63, %v1209_v38  ;;  %v5055_v21 = vld [vmem:[#allocation17_spill] sm:$0xff]  ;;  %v3411_v61 = vld [vmem:[#allocation8 + $0x148] sm:$0xf0]  ;;  %v3583_v63 = vld [vmem:[#allocation8 + $0x44] sm:$0xf] }
 0x294   : > { %v3414_v38 = vor.u32 %v3615_v24, %v3411_v61  ;;  %v3599_v61 = vld [vmem:[#allocation8 + $0xc4] sm:$0xf] }
 0x295   : > { %v1592_v48 = vmax.f32 %v1298_v10, 0.0  ;;  %v1589_v33 = vmax.f32 %v1474_v27, 0.0  ;;  %v3283_v10 = vld [vmem:[#allocation8 + $0x48] sm:$0xf0] }
 0x296   : > { %2617 = vmatpush.bf16.msrb.mxu2 %v3414_v38 }
 0x297   : > { %v4591_v32 = vpack.c.bf16 %v1592_v48, %v1588_v54  ;;  %v3631_v54 = vld [vmem:[#allocation8 + $0x1c4] sm:$0xf] }
 0x298   : > { %v1386_v4 = vpop.f32.mrf.mxu2  ;;  %v1211_v57 = vpop.f32.mrf.mxu0 }
 0x299   : > { %v1387_v0 = vadd.f32 %v1386_v4, %v4452_v59  ;;  %v1475_v58 = vpop.f32.mrf.mxu3  ;;  %v1212_v46 = vadd.f32 %v1211_v57, %v4443_v3  ;;  %v1300_v30 = vpop.f32.mrf.mxu1 }
 0x29b   : > { %v1476_v45 = vadd.f32 %v1475_v58, %v1387_v0  ;;  %v1301_v34 = vadd.f32 %v1300_v30, %v1212_v46  ;;  %2108 = vmatmul.bf16.gmra.mxu0 %v5054_v28  ;;  %v3286_v0 = vor.u32 %v3583_v63, %v3283_v10  ;;  %v3475_v58 = vld [vmem:[#allocation8 + $0x1c8] sm:$0xf0] }
 0x29c   : > { %2197 = vmatmul.bf16.gmra.mxu1 %v5055_v21  ;;  %v3478_v30 = vor.u32 %v3631_v54, %v3475_v58  ;;  %v3347_v21 = vld [vmem:[#allocation8 + $0xc8] sm:$0xf0] }
 0x29d   : > { %v1593_v52 = vmax.f32 %v1476_v45, 0.0  ;;  %2286 = vmatmul.bf16.gmra.mxu2 %v4507_v17  ;;  %2439 = vmatpush.bf16.msrb.mxu0 %v3286_v0  ;;  %v3350_v28 = vor.u32 %v3599_v61, %v3347_v21 }
 0x29e   : > { %2375 = vmatmul.bf16.gmra.mxu3 %v4515_v7 }
 0x29f   : > { %v4599_v48 = vpack.c.bf16 %v1593_v52, %v1589_v33  ;;  %2706 = vmatpush.bf16.msrb.mxu3 %v3478_v30  ;;  %v1596_v52 = vmax.f32 %v1301_v34, 0.0  ;;  %2528 = vmatpush.bf16.msrb.mxu1 %v3350_v28  ;;  %v5058_v34 = vld [vmem:[#allocation19_spill] sm:$0xff] }
 0x2a0   : > { %v1389_v4 = vpop.f32.mrf.mxu2  ;;  %v1213_v46 = vpop.f32.mrf.mxu0 }
 0x2a1   : > { %v1390_v27 = vadd.f32 %v1389_v4, %v4452_v59  ;;  %v1478_v57 = vpop.f32.mrf.mxu3  ;;  %v1214_v45 = vadd.f32 %v1213_v46, %v4443_v3  ;;  %v1302_v7 = vpop.f32.mrf.mxu1 }
 0x2a3   : > { %v1479_v17 = vadd.f32 %v1478_v57, %v1390_v27  ;;  %v1303_v24 = vadd.f32 %v1302_v7, %v1214_v45  ;;  %v5057_v57 = vld [vmem:[#allocation18_spill] sm:$0xff] }
 0x2a5   : > { %v1600_v33 = vmax.f32 %v1303_v24, 0.0  ;;  %v1597_v7 = vmax.f32 %v1479_v17, 0.0 }
 0x2a7   : > { %v4603_v10 = vpack.c.bf16 %v1600_v33, %v1596_v52 }
 0x2a8   : > { %v1391_v63 = vpop.f32.mrf.mxu2  ;;  %v1216_v54 = vpop.f32.mrf.mxu0 }
 0x2a9   : > { %5056 = vst [vmem:[#allocation43_spill] sm:$0xff] %v4603_v10  ;;  %v1392_v4 = vadd.f32 %v1391_v63, %v4452_v59  ;;  %v1480_v38 = vpop.f32.mrf.mxu3  ;;  %v1217_v58 = vadd.f32 %v1216_v54, %v4443_v3  ;;  %v1305_v46 = vpop.f32.mrf.mxu1 }
 0x2ab   : > { %v1481_v0 = vadd.f32 %v1480_v38, %v1392_v4  ;;  %v1306_v27 = vadd.f32 %v1305_v46, %v1217_v58  ;;  %2113 = vmatmul.bf16.gmra.mxu0 %v5057_v57 }
 0x2ac   : > { %2202 = vmatmul.bf16.gmra.mxu1 %v5058_v34 }
 0x2ad   : > { %v1601_v30 = vmax.f32 %v1481_v0, 0.0  ;;  %2291 = vmatmul.bf16.gmra.mxu2 %v4519_v53  ;;  %v1604_v17 = vmax.f32 %v1306_v27, 0.0  ;;  %v3613_v27 = vld [vmem:[#allocation8 + $0x134] sm:$0xf] }
 0x2ae   : > { %2380 = vmatmul.bf16.gmra.mxu3 %v4527_v55 }
 0x2af   : > { %v4611_v28 = vpack.c.bf16 %v1601_v30, %v1597_v7 }
 0x2b0   : > { %v1394_v21 = vpop.f32.mrf.mxu2  ;;  %v1218_v61 = vpop.f32.mrf.mxu0 }
 0x2b1   : > { %5059 = vst [vmem:[#allocation18_spill] sm:$0xff] %v4611_v28  ;;  %v1395_v45 = vadd.f32 %v1394_v21, %v4452_v59  ;;  %v1483_v24 = vpop.f32.mrf.mxu3  ;;  %v1219_v52 = vadd.f32 %v1218_v61, %v4443_v3  ;;  %v1307_v33 = vpop.f32.mrf.mxu1 }
 0x2b3   : > { %v1484_v63 = vadd.f32 %v1483_v24, %v1395_v45  ;;  %v1308_v4 = vadd.f32 %v1307_v33, %v1219_v52  ;;  %v3403_v45 = vld [vmem:[#allocation8 + $0x138] sm:$0xf0]  ;;  %v3581_v52 = vld [vmem:[#allocation8 + $0x34] sm:$0xf] }
 0x2b4   : > { %v3406_v24 = vor.u32 %v3613_v27, %v3403_v45  ;;  %v3275_v33 = vld [vmem:[#allocation8 + $0x38] sm:$0xf0]  ;;  %v3597_v27 = vld [vmem:[#allocation8 + $0xb4] sm:$0xf] }
 0x2b5   : > { %v1608_v38 = vmax.f32 %v1308_v4, 0.0  ;;  %v1605_v61 = vmax.f32 %v1484_v63, 0.0  ;;  %v3629_v4 = vld [vmem:[#allocation8 + $0x1b4] sm:$0xf]  ;;  %v3339_v45 = vld [vmem:[#allocation8 + $0xb8] sm:$0xf0] }
 0x2b6   : > { %2618 = vmatpush.bf16.msrb.mxu2 %v3406_v24 }
 0x2b7   : > { %v4615_v58 = vpack.c.bf16 %v1608_v38, %v1604_v17 }
 0x2b8   : > { %v1396_v54 = vpop.f32.mrf.mxu2  ;;  %v1221_v7 = vpop.f32.mrf.mxu0 }
 0x2b9   : > { %v1397_v46 = vadd.f32 %v1396_v54, %v4452_v59  ;;  %v1485_v0 = vpop.f32.mrf.mxu3  ;;  %v1222_v30 = vadd.f32 %v1221_v7, %v4443_v3  ;;  %v1310_v55 = vpop.f32.mrf.mxu1  ;;  %v3467_v54 = vld [vmem:[#allocation8 + $0x1b8] sm:$0xf0] }
 0x2ba   : > { %v3470_v7 = vor.u32 %v3629_v4, %v3467_v54 }
 0x2bb   : > { %v1486_v21 = vadd.f32 %v1485_v0, %v1397_v46  ;;  %v1311_v53 = vadd.f32 %v1310_v55, %v1222_v30  ;;  %2118 = vmatmul.bf16.gmra.mxu0 %v4333_v37  ;;  %v3278_v55 = vor.u32 %v3581_v52, %v3275_v33 }
 0x2bc   : > { %2207 = vmatmul.bf16.gmra.mxu1 %v4343_v22  ;;  %2707 = vmatpush.bf16.msrb.mxu3 %v3470_v7 }
 0x2bd   : > { %v1609_v34 = vmax.f32 %v1486_v21, 0.0  ;;  %2296 = vmatmul.bf16.gmra.mxu2 %v4531_v8  ;;  %2440 = vmatpush.bf16.msrb.mxu0 %v3278_v55 }
 0x2be   : > { %2385 = vmatmul.bf16.gmra.mxu3 %v4539_v50 }
 0x2bf   : > { %v4623_v17 = vpack.c.bf16 %v1609_v34, %v1605_v61  ;;  %v3342_v34 = vor.u32 %v3597_v27, %v3339_v45  ;;  %v1612_v61 = vmax.f32 %v1311_v53, 0.0 }
 0x2c0   : > { %v1399_v38 = vpop.f32.mrf.mxu2  ;;  %v1223_v0 = vpop.f32.mrf.mxu0 }
 0x2c1   : > { %v1400_v63 = vadd.f32 %v1399_v38, %v4452_v59  ;;  %v1488_v46 = vpop.f32.mrf.mxu3  ;;  %v1224_v30 = vadd.f32 %v1223_v0, %v4443_v3  ;;  %v1312_v21 = vpop.f32.mrf.mxu1  ;;  %2529 = vmatpush.bf16.msrb.mxu1 %v3342_v34 }
 0x2c3   : > { %v1489_v50 = vadd.f32 %v1488_v46, %v1400_v63  ;;  %v1313_v8 = vadd.f32 %v1312_v21, %v1224_v30  ;;  %v5060_v30 = vld [vmem:[#allocation21_spill] sm:$0xff] }
 0x2c5   : > { %v1616_v22 = vmax.f32 %v1313_v8, 0.0  ;;  %v1613_v46 = vmax.f32 %v1489_v50, 0.0  ;;  %v4642_v50 = vld [vmem:[%s4983_s4] sm:$0x3] }
 0x2c6   : > { %5061 = vst [vmem:[#allocation21_spill] sm:$0xff] %v4642_v50 }
 0x2c7   : > { %v4627_v33 = vpack.c.bf16 %v1616_v22, %v1612_v61 }
 0x2c8   : > { %v1401_v52 = vpop.f32.mrf.mxu2  ;;  %v1226_v4 = vpop.f32.mrf.mxu0 }
 0x2c9   : > { %v1402_v38 = vadd.f32 %v1401_v52, %v4452_v59  ;;  %v1490_v24 = vpop.f32.mrf.mxu3  ;;  %v1227_v54 = vadd.f32 %v1226_v4, %v4443_v3  ;;  %v1315_v0 = vpop.f32.mrf.mxu1  ;;  %v4645_v4 = vperm.slane %v4642_v50, 0 }
 0x2cb   : > { %v1491_v55 = vadd.f32 %v1490_v24, %v1402_v38  ;;  %v1316_v63 = vadd.f32 %v1315_v0, %v1227_v54  ;;  %2123 = vmatmul.bf16.gmra.mxu0 %v4347_v42 }
 0x2cc   : > { %2212 = vmatmul.bf16.gmra.mxu1 %v5060_v30 }
 0x2cd   : > { %v1617_v7 = vmax.f32 %v1491_v55, 0.0  ;;  %2301 = vmatmul.bf16.gmra.mxu2 %v4543_v13  ;;  %v1620_v38 = vmax.f32 %v1316_v63, 0.0 }
 0x2ce   : > { %2390 = vmatmul.bf16.gmra.mxu3 %v4551_v44 }
 0x2cf   : > { %v4635_v22 = vpack.c.bf16 %v1617_v7, %v1613_v46 }
 0x2d0   : > { %v1404_v53 = vpop.f32.mrf.mxu2  ;;  %v1228_v27 = vpop.f32.mrf.mxu0 }
 0x2d1   : > { %v1405_v8 = vadd.f32 %v1404_v53, %v4452_v59  ;;  %v1493_v21 = vpop.f32.mrf.mxu3  ;;  %v1229_v45 = vadd.f32 %v1228_v27, %v4443_v3  ;;  %v1317_v34 = vpop.f32.mrf.mxu1 }
 0x2d3   : > { %v1494_v61 = vadd.f32 %v1493_v21, %v1405_v8  ;;  %v1318_v52 = vadd.f32 %v1317_v34, %v1229_v45  ;;  %v3611_v45 = vld [vmem:[#allocation8 + $0x124] sm:$0xf]  ;;  %v3395_v34 = vld [vmem:[#allocation8 + $0x128] sm:$0xf0] }
 0x2d5   : > { %v1624_v24 = vmax.f32 %v1318_v52, 0.0  ;;  %v1621_v27 = vmax.f32 %v1494_v61, 0.0  ;;  %v3398_v52 = vor.u32 %v3611_v45, %v3395_v34  ;;  %v3595_v45 = vld [vmem:[#allocation8 + $0xa4] sm:$0xf]  ;;  %v3331_v34 = vld [vmem:[#allocation8 + $0xa8] sm:$0xf0] }
 0x2d6   : > { %v3334_v50 = vor.u32 %v3595_v45, %v3331_v34 }
 0x2d7   : > { %v4647_v0 = vpack.c.bf16 %v1624_v24, %v1620_v38  ;;  %v3267_v38 = vld [vmem:[#allocation8 + $0x28] sm:$0xf0]  ;;  %v3627_v24 = vld [vmem:[#allocation8 + $0x1a4] sm:$0xf]  ;;  %2619 = vmatpush.bf16.msrb.mxu2 %v3398_v52 }
 0x2d8   : > { %v1406_v54 = vpop.f32.mrf.mxu2  ;;  %v2089_v3 = vpop.f32.mrf.mxu0  ;;  %2530 = vmatpush.bf16.msrb.mxu1 %v3334_v50 }
 0x2d9   : > { %5062 = vst [vmem:[#allocation44_spill] sm:$0xff] %v4647_v0  ;;  %v1407_v55 = vadd.f32 %v1406_v54, %v4452_v59  ;;  %v1495_v46 = vpop.f32.mrf.mxu3  ;;  %v2090_v7 = vadd.f32 %v2089_v3, %v4645_v4  ;;  %v2178_v53 = vpop.f32.mrf.mxu1  ;;  %v3579_v59 = vld [vmem:[#allocation8 + $0x24] sm:$0xf]  ;;  %v3459_v54 = vld [vmem:[#allocation8 + $0x1a8] sm:$0xf0] }
 0x2db   : > { %v1496_v8 = vadd.f32 %v1495_v46, %v1407_v55  ;;  %v2179_v21 = vadd.f32 %v2178_v53, %v2090_v7  ;;  %2128 = vmatmul.bf16.gmra.mxu0 %v4359_v35  ;;  %v3270_v46 = vor.u32 %v3579_v59, %v3267_v38  ;;  %v3462_v7 = vor.u32 %v3627_v24, %v3459_v54 }
 0x2dc   : > { %2217 = vmatmul.bf16.gmra.mxu1 %v4367_v19 }
 0x2dd   : > { %v1625_v63 = vmax.f32 %v1496_v8, 0.0  ;;  %2306 = vmatmul.bf16.gmra.mxu2 %v4555_v41  ;;  %2441 = vmatpush.bf16.msrb.mxu0 %v3270_v46 }
 0x2de   : > { %2395 = vmatmul.bf16.gmra.mxu3 %v4563_v20 }
 0x2df   : > { %v4655_v3 = vpack.c.bf16 %v1625_v63, %v1621_v27  ;;  %2708 = vmatpush.bf16.msrb.mxu3 %v3462_v7 }
 0x2e0   : > { %v2267_v55 = vpop.f32.mrf.mxu2  ;;  %v2091_v8 = vpop.f32.mrf.mxu0 }
 0x2e1   : > { %5063 = vst [vmem:[#allocation45_spill] sm:$0xff] %v4655_v3  ;;  %v2268_v61 = vadd.f32 %v2267_v55, %v2179_v21  ;;  %v2356_v53 = vpop.f32.mrf.mxu3  ;;  %v2092_v41 = vadd.f32 %v2091_v8, %v4645_v4  ;;  %v2180_v19 = vpop.f32.mrf.mxu1 }
 0x2e3   : > { %v4658_v20 = vadd.f32 %v2356_v53, %v2268_v61  ;;  %v2181_v35 = vadd.f32 %v2180_v19, %v2092_v41 }
 0x2e8   : > { %v2269_v27 = vpop.f32.mrf.mxu2  ;;  %v2094_v38 = vpop.f32.mrf.mxu0 }
 0x2e9   : > { %v2270_v63 = vadd.f32 %v2269_v27, %v2181_v35  ;;  %v2358_v59 = vpop.f32.mrf.mxu3  ;;  %v2095_v21 = vadd.f32 %v2094_v38, %v4645_v4  ;;  %v2183_v24 = vpop.f32.mrf.mxu1 }
 0x2eb   : > { %v4661_v52 = vadd.f32 %v2358_v59, %v2270_v63  ;;  %v2184_v54 = vadd.f32 %v2183_v24, %v2095_v21  ;;  %2133 = vmatmul.bf16.gmra.mxu0 %v4371_v25  ;;  %v3609_v21 = vld [vmem:[#allocation8 + $0x114] sm:$0xf]  ;;  %v3387_v24 = vld [vmem:[#allocation8 + $0x118] sm:$0xf0] }
 0x2ec   : > { %2222 = vmatmul.bf16.gmra.mxu1 %v4379_v18 }
 0x2ed   : > { %2311 = vmatmul.bf16.gmra.mxu2 %v4567_v60 }
 0x2ee   : > { %2400 = vmatmul.bf16.gmra.mxu3 %v4575_v16 }
 0x2f0   : > { %v2272_v19 = vpop.f32.mrf.mxu2  ;;  %v2096_v35 = vpop.f32.mrf.mxu0 }
 0x2f1   : > { %v2273_v41 = vadd.f32 %v2272_v19, %v2184_v54  ;;  %v2361_v50 = vpop.f32.mrf.mxu3  ;;  %v2097_v55 = vadd.f32 %v2096_v35, %v4645_v4  ;;  %v2185_v46 = vpop.f32.mrf.mxu1  ;;  %v3577_v54 = vld [vmem:[#allocation8 + $0x14] sm:$0xf]  ;;  %v3390_v19 = vor.u32 %v3609_v21, %v3387_v24  ;;  %v3451_v35 = vld [vmem:[#allocation8 + $0x198] sm:$0xf0] }
 0x2f3   : > { %v4668_v7 = vadd.f32 %v2361_v50, %v2273_v41  ;;  %v2186_v61 = vadd.f32 %v2185_v46, %v2097_v55  ;;  %v3259_v41 = vld [vmem:[#allocation8 + $0x18] sm:$0xf0]  ;;  %v3625_v50 = vld [vmem:[#allocation8 + $0x194] sm:$0xf]  ;;  %2620 = vmatpush.bf16.msrb.mxu2 %v3390_v19 }
 0x2f4   : > { %v3262_v46 = vor.u32 %v3577_v54, %v3259_v41 }
 0x2f6   : > { %2442 = vmatpush.bf16.msrb.mxu0 %v3262_v46 }
 0x2f8   : > { %v2274_v53 = vpop.f32.mrf.mxu2  ;;  %v2099_v34 = vpop.f32.mrf.mxu0 }
 0x2f9   : > { %v2275_v8 = vadd.f32 %v2274_v53, %v2186_v61  ;;  %v2363_v45 = vpop.f32.mrf.mxu3  ;;  %v2100_v27 = vadd.f32 %v2099_v34, %v4645_v4  ;;  %v2188_v63 = vpop.f32.mrf.mxu1  ;;  %v3454_v61 = vor.u32 %v3625_v50, %v3451_v35 }
 0x2fb   : > { %v4671_v59 = vadd.f32 %v2363_v45, %v2275_v8  ;;  %v2189_v38 = vadd.f32 %v2188_v63, %v2100_v27  ;;  %2138 = vmatmul.bf16.gmra.mxu0 %v4383_v14  ;;  %2709 = vmatpush.bf16.msrb.mxu3 %v3454_v61 }
 0x2fc   : > { %2227 = vmatmul.bf16.gmra.mxu1 %v4391_v31 }
 0x2fd   : > { %5064 = vst [vmem:[#allocation46_spill] sm:$0xff] %v4671_v59  ;;  %2316 = vmatmul.bf16.gmra.mxu2 %v4579_v56  ;;  %v3323_v56 = vld [vmem:[#allocation8 + $0x98] sm:$0xf0] }
 0x2fe   : > { %2405 = vmatmul.bf16.gmra.mxu3 %v4587_v6  ;;  %v3593_v6 = vld [vmem:[#allocation8 + $0x94] sm:$0xf] }
 0x2ff   : > { %v3326_v24 = vor.u32 %v3593_v6, %v3323_v56 }
 0x300   : > { %v2277_v55 = vpop.f32.mrf.mxu2  ;;  %v2101_v45 = vpop.f32.mrf.mxu0 }
 0x301   : > { %v2278_v53 = vadd.f32 %v2277_v55, %v2189_v38  ;;  %v2366_v8 = vpop.f32.mrf.mxu3  ;;  %v2102_v34 = vadd.f32 %v2101_v45, %v4645_v4  ;;  %v2190_v27 = vpop.f32.mrf.mxu1  ;;  %2531 = vmatpush.bf16.msrb.mxu1 %v3326_v24 }
 0x303   : > { %v4678_v63 = vadd.f32 %v2366_v8, %v2278_v53  ;;  %v2191_v21 = vadd.f32 %v2190_v27, %v2102_v34 }
 0x308   : > { %v2279_v31 = vpop.f32.mrf.mxu2  ;;  %v2104_v41 = vpop.f32.mrf.mxu0 }
 0x309   : > { %v2280_v59 = vadd.f32 %v2279_v31, %v2191_v21  ;;  %v2368_v54 = vpop.f32.mrf.mxu3  ;;  %v2105_v38 = vadd.f32 %v2104_v41, %v4645_v4  ;;  %v2193_v50 = vpop.f32.mrf.mxu1 }
 0x30b   : > { %v4681_v19 = vadd.f32 %v2368_v54, %v2280_v59  ;;  %v2194_v35 = vadd.f32 %v2193_v50, %v2105_v38  ;;  %2143 = vmatmul.bf16.gmra.mxu0 %v4395_v47  ;;  %v3607_v38 = vld [vmem:[#allocation8 + $0x104] sm:$0xf]  ;;  %v3379_v50 = vld [vmem:[#allocation8 + $0x108] sm:$0xf0] }
 0x30c   : > { %2232 = vmatmul.bf16.gmra.mxu1 %v4403_v43 }
 0x30d   : > { %2321 = vmatmul.bf16.gmra.mxu2 %v4591_v32 }
 0x30e   : > { %2410 = vmatmul.bf16.gmra.mxu3 %v4599_v48 }
 0x310   : > { %v2282_v56 = vpop.f32.mrf.mxu2  ;;  %v2106_v31 = vpop.f32.mrf.mxu0 }
 0x311   : > { %v2283_v6 = vadd.f32 %v2282_v56, %v2194_v35  ;;  %v2371_v55 = vpop.f32.mrf.mxu3  ;;  %v2107_v46 = vadd.f32 %v2106_v31, %v4645_v4  ;;  %v2195_v61 = vpop.f32.mrf.mxu1  ;;  %v3575_v35 = vld [vmem:[#allocation8 + $0x4] sm:$0xf]  ;;  %v3382_v56 = vor.u32 %v3607_v38, %v3379_v50  ;;  %v3443_v31 = vld [vmem:[#allocation8 + $0x188] sm:$0xf0] }
 0x313   : > { %v4688_v53 = vadd.f32 %v2371_v55, %v2283_v6  ;;  %v2196_v59 = vadd.f32 %v2195_v61, %v2107_v46  ;;  %v3251_v6 = vld [vmem:[#allocation8 + $0x8] sm:$0xf0]  ;;  %v3623_v55 = vld [vmem:[#allocation8 + $0x184] sm:$0xf]  ;;  %2621 = vmatpush.bf16.msrb.mxu2 %v3382_v56 }
 0x314   : > { %v3254_v61 = vor.u32 %v3575_v35, %v3251_v6 }
 0x316   : > { %2443 = vmatpush.bf16.msrb.mxu0 %v3254_v61 }
 0x318   : > { %v2284_v8 = vpop.f32.mrf.mxu2  ;;  %v2109_v27 = vpop.f32.mrf.mxu0 }
 0x319   : > { %v2285_v45 = vadd.f32 %v2284_v8, %v2196_v59  ;;  %v2373_v34 = vpop.f32.mrf.mxu3  ;;  %v2110_v21 = vadd.f32 %v2109_v27, %v4645_v4  ;;  %v2198_v24 = vpop.f32.mrf.mxu1  ;;  %v3446_v59 = vor.u32 %v3623_v55, %v3443_v31 }
 0x31b   : > { %v4691_v54 = vadd.f32 %v2373_v34, %v2285_v45  ;;  %v2199_v41 = vadd.f32 %v2198_v24, %v2110_v21  ;;  %2148 = vmatmul.bf16.gmra.mxu0 %v4407_v36  ;;  %2710 = vmatpush.bf16.msrb.mxu3 %v3446_v59 }
 0x31c   : > { %2237 = vmatmul.bf16.gmra.mxu1 %v4415_v2 }
 0x31d   : > { %5065 = vst [vmem:[#allocation47_spill] sm:$0xff] %v4691_v54  ;;  %2326 = vmatmul.bf16.gmra.mxu2 %v4603_v10  ;;  %v3315_v10 = vld [vmem:[#allocation8 + $0x88] sm:$0xf0] }
 0x31e   : > { %2415 = vmatmul.bf16.gmra.mxu3 %v4611_v28  ;;  %v3591_v28 = vld [vmem:[#allocation8 + $0x84] sm:$0xf] }
 0x31f   : > { %v3318_v50 = vor.u32 %v3591_v28, %v3315_v10 }
 0x320   : > { %v2287_v46 = vpop.f32.mrf.mxu2  ;;  %v2111_v34 = vpop.f32.mrf.mxu0 }
 0x321   : > { %v2288_v8 = vadd.f32 %v2287_v46, %v2199_v41  ;;  %v2376_v45 = vpop.f32.mrf.mxu3  ;;  %v2112_v27 = vadd.f32 %v2111_v34, %v4645_v4  ;;  %v2200_v21 = vpop.f32.mrf.mxu1  ;;  %2532 = vmatpush.bf16.msrb.mxu1 %v3318_v50 }
 0x323   : > { %v4698_v24 = vadd.f32 %v2376_v45, %v2288_v8  ;;  %v2201_v38 = vadd.f32 %v2200_v21, %v2112_v27 }
 0x328   : > { %v2289_v2 = vpop.f32.mrf.mxu2  ;;  %v2114_v6 = vpop.f32.mrf.mxu0 }
 0x329   : > { %v2290_v54 = vadd.f32 %v2289_v2, %v2201_v38  ;;  %v2378_v35 = vpop.f32.mrf.mxu3  ;;  %v2115_v41 = vadd.f32 %v2114_v6, %v4645_v4  ;;  %v2203_v55 = vpop.f32.mrf.mxu1 }
 0x32b   : > { %v4701_v56 = vadd.f32 %v2378_v35, %v2290_v54  ;;  %v2204_v31 = vadd.f32 %v2203_v55, %v2115_v41  ;;  %2153 = vmatmul.bf16.gmra.mxu0 %v4419_v62 }
 0x32c   : > { %2242 = vmatmul.bf16.gmra.mxu1 %v4427_v9 }
 0x32d   : > { %2331 = vmatmul.bf16.gmra.mxu2 %v4615_v58 }
 0x32e   : > { %2420 = vmatmul.bf16.gmra.mxu3 %v4623_v17 }
 0x330   : > { %v2292_v10 = vpop.f32.mrf.mxu2  ;;  %v2116_v2 = vpop.f32.mrf.mxu0 }
 0x331   : > { %v2293_v28 = vadd.f32 %v2292_v10, %v2204_v31  ;;  %v2381_v46 = vpop.f32.mrf.mxu3  ;;  %v2117_v61 = vadd.f32 %v2116_v2, %v4645_v4  ;;  %v2205_v59 = vpop.f32.mrf.mxu1 }
 0x333   : > { %v4708_v8 = vadd.f32 %v2381_v46, %v2293_v28  ;;  %v2206_v54 = vadd.f32 %v2205_v59, %v2117_v61 }
 0x338   : > { %v2294_v45 = vpop.f32.mrf.mxu2  ;;  %v2119_v21 = vpop.f32.mrf.mxu0 }
 0x339   : > { %v2295_v34 = vadd.f32 %v2294_v45, %v2206_v54  ;;  %v2383_v27 = vpop.f32.mrf.mxu3  ;;  %v2120_v38 = vadd.f32 %v2119_v21, %v4645_v4  ;;  %v2208_v50 = vpop.f32.mrf.mxu1 }
 0x33b   : > { %v4711_v35 = vadd.f32 %v2383_v27, %v2295_v34  ;;  %v2209_v6 = vadd.f32 %v2208_v50, %v2120_v38  ;;  %2158 = vmatmul.bf16.gmra.mxu0 %v4431_v1 }
 0x33c   : > { %2247 = vmatmul.bf16.gmra.mxu1 %v4439_v26 }
 0x33d   : > { %2336 = vmatmul.bf16.gmra.mxu2 %v4627_v33 }
 0x33e   : > { %2425 = vmatmul.bf16.gmra.mxu3 %v4635_v22 }
 0x340   : > { %v2297_v41 = vpop.f32.mrf.mxu2  ;;  %v2121_v10 = vpop.f32.mrf.mxu0 }
 0x341   : > { %v2298_v55 = vadd.f32 %v2297_v41, %v2209_v6  ;;  %v2386_v31 = vpop.f32.mrf.mxu3  ;;  %v2122_v28 = vadd.f32 %v2121_v10, %v4645_v4  ;;  %v2210_v46 = vpop.f32.mrf.mxu1 }
 0x343   : > { %v4718_v2 = vadd.f32 %v2386_v31, %v2298_v55  ;;  %v2211_v61 = vadd.f32 %v2210_v46, %v2122_v28 }
 0x348   : > { %v2299_v59 = vpop.f32.mrf.mxu2  ;;  %v2124_v34 = vpop.f32.mrf.mxu0 }
 0x349   : > { %v2300_v54 = vadd.f32 %v2299_v59, %v2211_v61  ;;  %v2388_v45 = vpop.f32.mrf.mxu3  ;;  %v2125_v27 = vadd.f32 %v2124_v34, %v4645_v4  ;;  %v2213_v21 = vpop.f32.mrf.mxu1 }
 0x34b   : > { %v4721_v38 = vadd.f32 %v2388_v45, %v2300_v54  ;;  %v2214_v50 = vadd.f32 %v2213_v21, %v2125_v27  ;;  %2163 = vmatmul.bf16.gmra.mxu0 %v4445_v40 }
 0x34c   : > { %2252 = vmatmul.bf16.gmra.mxu1 %v4455_v29 }
 0x34d   : > { %2341 = vmatmul.bf16.gmra.mxu2 %v4647_v0 }
 0x34e   : > { %2430 = vmatmul.bf16.gmra.mxu3 %v4655_v3 }
 0x350   : > { %v2302_v6 = vpop.f32.mrf.mxu2  ;;  %v2126_v31 = vpop.f32.mrf.mxu0 }
 0x351   : > { %v2303_v41 = vadd.f32 %v2302_v6, %v2214_v50  ;;  %v2391_v55 = vpop.f32.mrf.mxu3  ;;  %v2127_v10 = vadd.f32 %v2126_v31, %v4645_v4  ;;  %v2215_v28 = vpop.f32.mrf.mxu1  ;;  %v5066_v50 = vld [vmem:[#allocation26_spill] sm:$0xff]  ;;  %v5067_v6 = vld [vmem:[#allocation27_spill] sm:$0xff] }
 0x353   : > { %v4728_v46 = vadd.f32 %v2391_v55, %v2303_v41  ;;  %v2216_v61 = vadd.f32 %v2215_v28, %v2127_v10 }
 0x358   : > { %v2304_v59 = vpop.f32.mrf.mxu2  ;;  %v2129_v34 = vpop.f32.mrf.mxu0 }
 0x359   : > { %v2305_v54 = vadd.f32 %v2304_v59, %v2216_v61  ;;  %v2393_v45 = vpop.f32.mrf.mxu3  ;;  %v2130_v27 = vadd.f32 %v2129_v34, %v4645_v4  ;;  %v2218_v21 = vpop.f32.mrf.mxu1 }
 0x35b   : > { %v4731_v0 = vadd.f32 %v2393_v45, %v2305_v54  ;;  %v2219_v3 = vadd.f32 %v2218_v21, %v2130_v27  ;;  %2444 = vmatmul.bf16.vlgmr.msrb.gmra.mxu0 %v4211_v5 }
 0x35c   : > { %2533 = vmatmul.bf16.vlgmr.msrb.gmra.mxu1 %v4223_v23 }
 0x35d   : > { %2622 = vmatmul.bf16.vlgmr.msrb.gmra.mxu2 %v5066_v50 }
 0x35e   : > { %2711 = vmatmul.bf16.vlgmr.msrb.gmra.mxu3 %v5067_v6 }
 0x360   : > { %v2307_v41 = vpop.f32.mrf.mxu2  ;;  %v2131_v10 = vpop.f32.mrf.mxu0 }
 0x361   : > { %v2308_v55 = vadd.f32 %v2307_v41, %v2219_v3  ;;  %v2396_v31 = vpop.f32.mrf.mxu3  ;;  %v2132_v28 = vadd.f32 %v2131_v10, %v4645_v4  ;;  %v2220_v61 = vpop.f32.mrf.mxu1  ;;  %v5068_v3 = vld [vmem:[#allocation28_spill] sm:$0xff] }
 0x363   : > { %v4738_v59 = vadd.f32 %v2396_v31, %v2308_v55  ;;  %v2221_v54 = vadd.f32 %v2220_v61, %v2132_v28 }
 0x368   : > { %v2309_v45 = vpop.f32.mrf.mxu2  ;;  %v2134_v5 = vpop.f32.mrf.mxu0 }
 0x369   : > { %v2310_v34 = vadd.f32 %v2309_v45, %v2221_v54  ;;  %v2398_v27 = vpop.f32.mrf.mxu3  ;;  %v2135_v23 = vadd.f32 %v2134_v5, %v4645_v4  ;;  %v2223_v21 = vpop.f32.mrf.mxu1 }
 0x36b   : > { %v4741_v50 = vadd.f32 %v2398_v27, %v2310_v34  ;;  %v2224_v6 = vadd.f32 %v2223_v21, %v2135_v23  ;;  %2449 = vmatmul.bf16.gmra.mxu0 %v4233_v49 }
 0x36c   : > { %2538 = vmatmul.bf16.gmra.mxu1 %v4243_v12 }
 0x36d   : > { %2627 = vmatmul.bf16.gmra.mxu2 %v4471_v15 }
 0x36e   : > { %2716 = vmatmul.bf16.gmra.mxu3 %v5068_v3  ;;  %v5070_v3 = vld [vmem:[#allocation29_spill] sm:$0xff] }
 0x370   : > { %v2312_v41 = vpop.f32.mrf.mxu2  ;;  %v2136_v10 = vpop.f32.mrf.mxu0 }
 0x371   : > { %v2313_v55 = vadd.f32 %v2312_v41, %v2224_v6  ;;  %v2401_v31 = vpop.f32.mrf.mxu3  ;;  %v2137_v28 = vadd.f32 %v2136_v10, %v4645_v4  ;;  %v2225_v61 = vpop.f32.mrf.mxu1  ;;  %v5069_v6 = vld [vmem:[#allocation15_spill] sm:$0xff]  ;;  %v5071_v41 = vld [vmem:[#allocation30_spill] sm:$0xff] }
 0x373   : > { %v4748_v54 = vadd.f32 %v2401_v31, %v2313_v55  ;;  %v2226_v45 = vadd.f32 %v2225_v61, %v2137_v28 }
 0x378   : > { %v2314_v34 = vpop.f32.mrf.mxu2  ;;  %v2139_v49 = vpop.f32.mrf.mxu0 }
 0x379   : > { %v2315_v27 = vadd.f32 %v2314_v34, %v2226_v45  ;;  %v2403_v5 = vpop.f32.mrf.mxu3  ;;  %v2140_v12 = vadd.f32 %v2139_v49, %v4645_v4  ;;  %v2228_v23 = vpop.f32.mrf.mxu1 }
 0x37b   : > { %v4751_v15 = vadd.f32 %v2403_v5, %v2315_v27  ;;  %v2229_v21 = vadd.f32 %v2228_v23, %v2140_v12  ;;  %2454 = vmatmul.bf16.gmra.mxu0 %v4253_v51 }
 0x37c   : > { %2543 = vmatmul.bf16.gmra.mxu1 %v5069_v6 }
 0x37d   : > { %2632 = vmatmul.bf16.gmra.mxu2 %v5070_v3 }
 0x37e   : > { %2721 = vmatmul.bf16.gmra.mxu3 %v5071_v41 }
 0x380   : > { %v2317_v55 = vpop.f32.mrf.mxu2  ;;  %v2141_v28 = vpop.f32.mrf.mxu0 }
 0x381   : > { %v2318_v31 = vadd.f32 %v2317_v55, %v2229_v21  ;;  %v2406_v10 = vpop.f32.mrf.mxu3  ;;  %v2142_v61 = vadd.f32 %v2141_v28, %v4645_v4  ;;  %v2230_v45 = vpop.f32.mrf.mxu1  ;;  %v5073_v21 = vld [vmem:[#allocation31_spill] sm:$0xff]  ;;  %v5074_v55 = vld [vmem:[#allocation32_spill] sm:$0xff] }
 0x383   : > { %v4758_v34 = vadd.f32 %v2406_v10, %v2318_v31  ;;  %v2231_v27 = vadd.f32 %v2230_v45, %v2142_v61 }
 0x388   : > { %v2319_v5 = vpop.f32.mrf.mxu2  ;;  %v2144_v51 = vpop.f32.mrf.mxu0 }
 0x389   : > { %v2320_v49 = vadd.f32 %v2319_v5, %v2231_v27  ;;  %v2408_v12 = vpop.f32.mrf.mxu3  ;;  %v2145_v23 = vadd.f32 %v2144_v51, %v4645_v4  ;;  %v2233_v6 = vpop.f32.mrf.mxu1 }
 0x38b   : > { %v4761_v3 = vadd.f32 %v2408_v12, %v2320_v49  ;;  %v2234_v41 = vadd.f32 %v2233_v6, %v2145_v23  ;;  %2459 = vmatmul.bf16.gmra.mxu0 %v4273_v39 }
 0x38c   : > { %2548 = vmatmul.bf16.gmra.mxu1 %v4283_v11 }
 0x38d   : > { %5072 = vst [vmem:[#allocation26_spill] sm:$0xff] %v4761_v3  ;;  %2637 = vmatmul.bf16.gmra.mxu2 %v5073_v21  ;;  %v5076_v3 = vld [vmem:[#allocation16_spill] sm:$0xff] }
 0x38e   : > { %2726 = vmatmul.bf16.gmra.mxu3 %v5074_v55 }
 0x390   : > { %v2322_v31 = vpop.f32.mrf.mxu2  ;;  %v2146_v61 = vpop.f32.mrf.mxu0 }
 0x391   : > { %v2323_v10 = vadd.f32 %v2322_v31, %v2234_v41  ;;  %v2411_v28 = vpop.f32.mrf.mxu3  ;;  %v2147_v45 = vadd.f32 %v2146_v61, %v4645_v4  ;;  %v2235_v27 = vpop.f32.mrf.mxu1  ;;  %v5077_v41 = vld [vmem:[#allocation17_spill] sm:$0xff]  ;;  %v5079_v61 = vld [vmem:[#allocation34_spill] sm:$0xff] }
 0x392   : > { %v5078_v31 = vld [vmem:[#allocation33_spill] sm:$0xff] }
 0x393   : > { %v4768_v5 = vadd.f32 %v2411_v28, %v2323_v10  ;;  %v2236_v49 = vadd.f32 %v2235_v27, %v2147_v45 }
 0x398   : > { %v2324_v12 = vpop.f32.mrf.mxu2  ;;  %v2149_v39 = vpop.f32.mrf.mxu0 }
 0x399   : > { %v2325_v51 = vadd.f32 %v2324_v12, %v2236_v49  ;;  %v2413_v23 = vpop.f32.mrf.mxu3  ;;  %v2150_v11 = vadd.f32 %v2149_v39, %v4645_v4  ;;  %v2238_v6 = vpop.f32.mrf.mxu1 }
 0x39b   : > { %v4771_v21 = vadd.f32 %v2413_v23, %v2325_v51  ;;  %v2239_v55 = vadd.f32 %v2238_v6, %v2150_v11  ;;  %2464 = vmatmul.bf16.gmra.mxu0 %v5076_v3 }
 0x39c   : > { %2553 = vmatmul.bf16.gmra.mxu1 %v5077_v41 }
 0x39d   : > { %5075 = vst [vmem:[#allocation27_spill] sm:$0xff] %v4771_v21  ;;  %2642 = vmatmul.bf16.gmra.mxu2 %v5078_v31 }
 0x39e   : > { %2731 = vmatmul.bf16.gmra.mxu3 %v5079_v61 }
 0x3a0   : > { %v2327_v10 = vpop.f32.mrf.mxu2  ;;  %v2151_v27 = vpop.f32.mrf.mxu0 }
 0x3a1   : > { %v2328_v28 = vadd.f32 %v2327_v10, %v2239_v55  ;;  %v2416_v45 = vpop.f32.mrf.mxu3  ;;  %v2152_v49 = vadd.f32 %v2151_v27, %v4645_v4  ;;  %v2240_v12 = vpop.f32.mrf.mxu1  ;;  %v5081_v55 = vld [vmem:[#allocation19_spill] sm:$0xff]  ;;  %v5083_v27 = vld [vmem:[#allocation36_spill] sm:$0xff] }
 0x3a2   : > { %v5082_v10 = vld [vmem:[#allocation35_spill] sm:$0xff] }
 0x3a3   : > { %v4778_v39 = vadd.f32 %v2416_v45, %v2328_v28  ;;  %v2241_v51 = vadd.f32 %v2240_v12, %v2152_v49 }
 0x3a8   : > { %v2329_v23 = vpop.f32.mrf.mxu2  ;;  %v2154_v3 = vpop.f32.mrf.mxu0 }
 0x3a9   : > { %v2330_v11 = vadd.f32 %v2329_v23, %v2241_v51  ;;  %v2418_v6 = vpop.f32.mrf.mxu3  ;;  %v2155_v41 = vadd.f32 %v2154_v3, %v4645_v4  ;;  %v2243_v21 = vpop.f32.mrf.mxu1 }
 0x3ab   : > { %v4781_v31 = vadd.f32 %v2418_v6, %v2330_v11  ;;  %v2244_v61 = vadd.f32 %v2243_v21, %v2155_v41  ;;  %2469 = vmatmul.bf16.gmra.mxu0 %v5057_v57 }
 0x3ac   : > { %2558 = vmatmul.bf16.gmra.mxu1 %v5081_v55 }
 0x3ad   : > { %5080 = vst [vmem:[#allocation28_spill] sm:$0xff] %v4781_v31  ;;  %2647 = vmatmul.bf16.gmra.mxu2 %v5082_v10 }
 0x3ae   : > { %2736 = vmatmul.bf16.gmra.mxu3 %v5083_v27 }
 0x3b0   : > { %v2332_v28 = vpop.f32.mrf.mxu2  ;;  %v2156_v12 = vpop.f32.mrf.mxu0 }
 0x3b1   : > { %v2333_v45 = vadd.f32 %v2332_v28, %v2244_v61  ;;  %v2421_v49 = vpop.f32.mrf.mxu3  ;;  %v2157_v51 = vadd.f32 %v2156_v12, %v4645_v4  ;;  %v2245_v23 = vpop.f32.mrf.mxu1  ;;  %v5085_v61 = vld [vmem:[#allocation20_spill] sm:$0xff]  ;;  %v5086_v28 = vld [vmem:[#allocation37_spill] sm:$0xff]  ;;  %v5087_v12 = vld [vmem:[#allocation38_spill] sm:$0xff] }
 0x3b3   : > { %v4788_v3 = vadd.f32 %v2421_v49, %v2333_v45  ;;  %v2246_v11 = vadd.f32 %v2245_v23, %v2157_v51 }
 0x3b8   : > { %v2334_v6 = vpop.f32.mrf.mxu2  ;;  %v2159_v57 = vpop.f32.mrf.mxu0 }
 0x3b9   : > { %v2335_v21 = vadd.f32 %v2334_v6, %v2246_v11  ;;  %v2423_v41 = vpop.f32.mrf.mxu3  ;;  %v2160_v55 = vadd.f32 %v2159_v57, %v4645_v4  ;;  %v2248_v31 = vpop.f32.mrf.mxu1 }
 0x3bb   : > { %v4791_v10 = vadd.f32 %v2423_v41, %v2335_v21  ;;  %v2249_v27 = vadd.f32 %v2248_v31, %v2160_v55  ;;  %2474 = vmatmul.bf16.gmra.mxu0 %v4333_v37 }
 0x3bc   : > { %2563 = vmatmul.bf16.gmra.mxu1 %v5085_v61 }
 0x3bd   : > { %5084 = vst [vmem:[#allocation15_spill] sm:$0xff] %v4791_v10  ;;  %2652 = vmatmul.bf16.gmra.mxu2 %v5086_v28 }
 0x3be   : > { %2741 = vmatmul.bf16.gmra.mxu3 %v5087_v12 }
 0x3c0   : > { %v2337_v45 = vpop.f32.mrf.mxu2  ;;  %v2161_v23 = vpop.f32.mrf.mxu0 }
 0x3c1   : > { %v2338_v49 = vadd.f32 %v2337_v45, %v2249_v27  ;;  %v2426_v51 = vpop.f32.mrf.mxu3  ;;  %v2162_v11 = vadd.f32 %v2161_v23, %v4645_v4  ;;  %v2250_v6 = vpop.f32.mrf.mxu1 }
 0x3c3   : > { %v4798_v57 = vadd.f32 %v2426_v51, %v2338_v49  ;;  %v2251_v21 = vadd.f32 %v2250_v6, %v2162_v11 }
 0x3c8   : > { %v2339_v41 = vpop.f32.mrf.mxu2  ;;  %v2164_v37 = vpop.f32.mrf.mxu0 }
 0x3c9   : > { %v2340_v31 = vadd.f32 %v2339_v41, %v2251_v21  ;;  %v2428_v55 = vpop.f32.mrf.mxu3  ;;  %v2165_v61 = vadd.f32 %v2164_v37, %v4645_v4  ;;  %v2253_v10 = vpop.f32.mrf.mxu1  ;;  %v5088_v41 = vld [vmem:[#allocation21_spill] sm:$0xff] }
 0x3cb   : > { %v4801_v28 = vadd.f32 %v2428_v55, %v2340_v31  ;;  %v2254_v12 = vadd.f32 %v2253_v10, %v2165_v61  ;;  %2479 = vmatmul.bf16.gmra.mxu0 %v4347_v42  ;;  %v4811_v10 = vperm.slane %v5088_v41, 1  ;;  %v5089_v61 = vld [vmem:[#allocation22_spill] sm:$0xff] }
 0x3cc   : > { %2568 = vmatmul.bf16.gmra.mxu1 %v5060_v30 }
 0x3cd   : > { %2657 = vmatmul.bf16.gmra.mxu2 %v4543_v13 }
 0x3ce   : > { %2746 = vmatmul.bf16.gmra.mxu3 %v4551_v44 }
 0x3d0   : > { %v2342_v27 = vpop.f32.mrf.mxu2  ;;  %v2166_v51 = vpop.f32.mrf.mxu0 }
 0x3d1   : > { %v2343_v45 = vadd.f32 %v2342_v27, %v2254_v12  ;;  %v2431_v49 = vpop.f32.mrf.mxu3  ;;  %v2167_v23 = vadd.f32 %v2166_v51, %v4645_v4  ;;  %v2255_v11 = vpop.f32.mrf.mxu1  ;;  %v5090_v4 = vld [vmem:[#allocation23_spill] sm:$0xff]  ;;  %v5092_v27 = vld [vmem:[#allocation40_spill] sm:$0xff] }
 0x3d2   : > { %v5091_v12 = vld [vmem:[#allocation39_spill] sm:$0xff] }
 0x3d3   : > { %v4808_v6 = vadd.f32 %v2431_v49, %v2343_v45  ;;  %v2256_v21 = vadd.f32 %v2255_v11, %v2167_v23 }
 0x3d8   : > { %v2344_v42 = vpop.f32.mrf.mxu2  ;;  %v2445_v13 = vpop.f32.mrf.mxu0 }
 0x3d9   : > { %v2345_v30 = vadd.f32 %v2344_v42, %v2256_v21  ;;  %v2433_v31 = vpop.f32.mrf.mxu3  ;;  %v2534_v55 = vpop.f32.mrf.mxu1  ;;  %v2446_v37 = vadd.f32 %v2445_v13, %v4811_v10 }
 0x3db   : > { %v4813_v44 = vadd.f32 %v2433_v31, %v2345_v30  ;;  %2484 = vmatmul.bf16.gmra.mxu0 %v5089_v61  ;;  %v2535_v45 = vadd.f32 %v2534_v55, %v2446_v37 }
 0x3dc   : > { %2573 = vmatmul.bf16.gmra.mxu1 %v5090_v4 }
 0x3dd   : > { %2662 = vmatmul.bf16.gmra.mxu2 %v5091_v12 }
 0x3de   : > { %2751 = vmatmul.bf16.gmra.mxu3 %v5092_v27 }
 0x3e0   : > { %v2623_v49 = vpop.f32.mrf.mxu2  ;;  %v2447_v11 = vpop.f32.mrf.mxu0 }
 0x3e1   : > { %v2624_v51 = vadd.f32 %v2623_v49, %v2535_v45  ;;  %v2712_v23 = vpop.f32.mrf.mxu3  ;;  %v2536_v21 = vpop.f32.mrf.mxu1  ;;  %v2448_v42 = vadd.f32 %v2447_v11, %v4811_v10 }
 0x3e3   : > { %v2713_v41 = vadd.f32 %v2712_v23, %v2624_v51  ;;  %v2537_v31 = vadd.f32 %v2536_v21, %v2448_v42 }
 0x3e5   : > { %v2792_v30 = vpack.c.bf16 %v2713_v41, %v4658_v20 }
 0x3e7   : > { %2824 = vst [vmem:[%s4823_s23] sm:$0xff] %v2792_v30 }
 0x3e8   : > { %v2625_v13 = vpop.f32.mrf.mxu2  ;;  %v2450_v37 = vpop.f32.mrf.mxu0 }
 0x3e9   : > { %v2626_v61 = vadd.f32 %v2625_v13, %v2537_v31  ;;  %v2714_v55 = vpop.f32.mrf.mxu3  ;;  %v2539_v4 = vpop.f32.mrf.mxu1  ;;  %v2451_v27 = vadd.f32 %v2450_v37, %v4811_v10 }
 0x3eb   : > { %v2715_v12 = vadd.f32 %v2714_v55, %v2626_v61  ;;  %2489 = vmatmul.bf16.gmra.mxu0 %v4371_v25  ;;  %v2540_v20 = vadd.f32 %v2539_v4, %v2451_v27  ;;  %v5093_v55 = vld [vmem:[#allocation46_spill] sm:$0xff]  ;;  %v5094_v4 = vld [vmem:[#allocation24_spill] sm:$0xff] }
 0x3ec   : > { %2578 = vmatmul.bf16.gmra.mxu1 %v4379_v18 }
 0x3ed   : > { %v2793_v45 = vpack.c.bf16 %v2715_v12, %v4661_v52  ;;  %2667 = vmatmul.bf16.gmra.mxu2 %v4567_v60  ;;  %v5095_v12 = vld [vmem:[#allocation41_spill] sm:$0xff] }
 0x3ee   : > { %2756 = vmatmul.bf16.gmra.mxu3 %v4575_v16 }
 0x3ef   : > { %2825 = vst [vmem:[%s4823_s23 + $0x8] sm:$0xff] %v2793_v45 }
 0x3f0   : > { %v2628_v49 = vpop.f32.mrf.mxu2  ;;  %v2452_v11 = vpop.f32.mrf.mxu0 }
 0x3f1   : > { %v2629_v51 = vadd.f32 %v2628_v49, %v2540_v20  ;;  %v2717_v23 = vpop.f32.mrf.mxu3  ;;  %v2541_v21 = vpop.f32.mrf.mxu1  ;;  %v2453_v42 = vadd.f32 %v2452_v11, %v4811_v10 }
 0x3f3   : > { %v2718_v41 = vadd.f32 %v2717_v23, %v2629_v51  ;;  %v2542_v52 = vadd.f32 %v2541_v21, %v2453_v42 }
 0x3f5   : > { %v2794_v25 = vpack.c.bf16 %v2718_v41, %v4668_v7  ;;  %v5096_v7 = vld [vmem:[#allocation42_spill] sm:$0xff] }
 0x3f7   : > { %2826 = vst [vmem:[%s4823_s23 + $0x10] sm:$0xff] %v2794_v25 }
 0x3f8   : > { %v2630_v18 = vpop.f32.mrf.mxu2  ;;  %v2455_v31 = vpop.f32.mrf.mxu0 }
 0x3f9   : > { %v2631_v30 = vadd.f32 %v2630_v18, %v2542_v52  ;;  %v2719_v60 = vpop.f32.mrf.mxu3  ;;  %v2544_v16 = vpop.f32.mrf.mxu1  ;;  %v2456_v61 = vadd.f32 %v2455_v31, %v4811_v10 }
 0x3fb   : > { %v2720_v13 = vadd.f32 %v2719_v60, %v2631_v30  ;;  %2494 = vmatmul.bf16.gmra.mxu0 %v4383_v14  ;;  %v2545_v27 = vadd.f32 %v2544_v16, %v2456_v61 }
 0x3fc   : > { %2583 = vmatmul.bf16.gmra.mxu1 %v5094_v4 }
 0x3fd   : > { %v2795_v37 = vpack.c.bf16 %v2720_v13, %v5093_v55  ;;  %2672 = vmatmul.bf16.gmra.mxu2 %v5095_v12 }
 0x3fe   : > { %2761 = vmatmul.bf16.gmra.mxu3 %v5096_v7 }
 0x3ff   : > { %2827 = vst [vmem:[%s4823_s23 + $0x18] sm:$0xff] %v2795_v37 }
 0x400   : > { %v2633_v45 = vpop.f32.mrf.mxu2  ;;  %v2457_v51 = vpop.f32.mrf.mxu0 }
 0x401   : > { %v2634_v20 = vadd.f32 %v2633_v45, %v2545_v27  ;;  %v2722_v49 = vpop.f32.mrf.mxu3  ;;  %v2546_v23 = vpop.f32.mrf.mxu1  ;;  %v2458_v21 = vadd.f32 %v2457_v51, %v4811_v10  ;;  %v5097_v51 = vld [vmem:[#allocation47_spill] sm:$0xff] }
 0x403   : > { %v2723_v11 = vadd.f32 %v2722_v49, %v2634_v20  ;;  %v2547_v41 = vadd.f32 %v2546_v23, %v2458_v21  ;;  %v5099_v21 = vld [vmem:[#allocation43_spill] sm:$0xff] }
 0x405   : > { %v2796_v14 = vpack.c.bf16 %v2723_v11, %v4678_v63  ;;  %v5098_v11 = vld [vmem:[#allocation25_spill] sm:$0xff] }
 0x407   : > { %2828 = vst [vmem:[%s4823_s23 + $0x20] sm:$0xff] %v2796_v14 }
 0x408   : > { %v2635_v42 = vpop.f32.mrf.mxu2  ;;  %v2460_v18 = vpop.f32.mrf.mxu0 }
 0x409   : > { %v2636_v25 = vadd.f32 %v2635_v42, %v2547_v41  ;;  %v2724_v52 = vpop.f32.mrf.mxu3  ;;  %v2549_v30 = vpop.f32.mrf.mxu1  ;;  %v2461_v31 = vadd.f32 %v2460_v18, %v4811_v10 }
 0x40b   : > { %v2725_v60 = vadd.f32 %v2724_v52, %v2636_v25  ;;  %2499 = vmatmul.bf16.gmra.mxu0 %v4395_v47  ;;  %v2550_v63 = vadd.f32 %v2549_v30, %v2461_v31 }
 0x40c   : > { %2588 = vmatmul.bf16.gmra.mxu1 %v4403_v43 }
 0x40d   : > { %v2797_v16 = vpack.c.bf16 %v2725_v60, %v4681_v19  ;;  %2677 = vmatmul.bf16.gmra.mxu2 %v4591_v32 }
 0x40e   : > { %2766 = vmatmul.bf16.gmra.mxu3 %v4599_v48 }
 0x40f   : > { %2829 = vst [vmem:[%s4823_s23 + $0x28] sm:$0xff] %v2797_v16 }
 0x410   : > { %v2638_v13 = vpop.f32.mrf.mxu2  ;;  %v2462_v37 = vpop.f32.mrf.mxu0 }
 0x411   : > { %v2639_v61 = vadd.f32 %v2638_v13, %v2550_v63  ;;  %v2727_v55 = vpop.f32.mrf.mxu3  ;;  %v2551_v4 = vpop.f32.mrf.mxu1  ;;  %v2463_v7 = vadd.f32 %v2462_v37, %v4811_v10 }
 0x413   : > { %v2728_v12 = vadd.f32 %v2727_v55, %v2639_v61  ;;  %v2552_v19 = vadd.f32 %v2551_v4, %v2463_v7 }
 0x415   : > { %v2798_v47 = vpack.c.bf16 %v2728_v12, %v4688_v53  ;;  %v5100_v53 = vld [vmem:[#allocation18_spill] sm:$0xff] }
 0x417   : > { %2830 = vst [vmem:[%s4823_s23 + $0x30] sm:$0xff] %v2798_v47 }
 0x418   : > { %v2640_v43 = vpop.f32.mrf.mxu2  ;;  %v2465_v45 = vpop.f32.mrf.mxu0 }
 0x419   : > { %v2641_v27 = vadd.f32 %v2640_v43, %v2552_v19  ;;  %v2729_v32 = vpop.f32.mrf.mxu3  ;;  %v2554_v48 = vpop.f32.mrf.mxu1  ;;  %v2466_v49 = vadd.f32 %v2465_v45, %v4811_v10 }
 0x41b   : > { %v2730_v20 = vadd.f32 %v2729_v32, %v2641_v27  ;;  %2504 = vmatmul.bf16.gmra.mxu0 %v4407_v36  ;;  %v2555_v14 = vadd.f32 %v2554_v48, %v2466_v49 }
 0x41c   : > { %2593 = vmatmul.bf16.gmra.mxu1 %v5098_v11 }
 0x41d   : > { %v2799_v23 = vpack.c.bf16 %v2730_v20, %v5097_v51  ;;  %2682 = vmatmul.bf16.gmra.mxu2 %v5099_v21 }
 0x41e   : > { %2771 = vmatmul.bf16.gmra.mxu3 %v5100_v53 }
 0x41f   : > { %2831 = vst [vmem:[%s4823_s23 + $0x38] sm:$0xff] %v2799_v23 }
 0x420   : > { %v2643_v41 = vpop.f32.mrf.mxu2  ;;  %v2467_v52 = vpop.f32.mrf.mxu0 }
 0x421   : > { %v2644_v42 = vadd.f32 %v2643_v41, %v2555_v14  ;;  %v2732_v25 = vpop.f32.mrf.mxu3  ;;  %v2556_v18 = vpop.f32.mrf.mxu1  ;;  %v2468_v60 = vadd.f32 %v2467_v52, %v4811_v10 }
 0x423   : > { %v2733_v30 = vadd.f32 %v2732_v25, %v2644_v42  ;;  %v2557_v31 = vadd.f32 %v2556_v18, %v2468_v60 }
 0x425   : > { %v2800_v36 = vpack.c.bf16 %v2733_v30, %v4698_v24 }
 0x427   : > { %2832 = vst [vmem:[%s4823_s23 + $0x40] sm:$0xff] %v2800_v36 }
 0x428   : > { %v2645_v16 = vpop.f32.mrf.mxu2  ;;  %v2470_v61 = vpop.f32.mrf.mxu0 }
 0x429   : > { %v2646_v63 = vadd.f32 %v2645_v16, %v2557_v31  ;;  %v2734_v13 = vpop.f32.mrf.mxu3  ;;  %v2559_v55 = vpop.f32.mrf.mxu1  ;;  %v2471_v4 = vadd.f32 %v2470_v61, %v4811_v10  ;;  %v5101_v31 = vld [vmem:[#allocation44_spill] sm:$0xff] }
 0x42b   : > { %v2735_v37 = vadd.f32 %v2734_v13, %v2646_v63  ;;  %2509 = vmatmul.bf16.gmra.mxu0 %v4419_v62  ;;  %v2560_v24 = vadd.f32 %v2559_v55, %v2471_v4 }
 0x42c   : > { %2598 = vmatmul.bf16.gmra.mxu1 %v4427_v9 }
 0x42d   : > { %v2801_v12 = vpack.c.bf16 %v2735_v37, %v4701_v56  ;;  %2687 = vmatmul.bf16.gmra.mxu2 %v4615_v58 }
 0x42e   : > { %2776 = vmatmul.bf16.gmra.mxu3 %v4623_v17 }
 0x42f   : > { %2833 = vst [vmem:[%s4823_s23 + $0x48] sm:$0xff] %v2801_v12 }
 0x430   : > { %v2648_v7 = vpop.f32.mrf.mxu2  ;;  %v2472_v43 = vpop.f32.mrf.mxu0 }
 0x431   : > { %v2649_v47 = vadd.f32 %v2648_v7, %v2560_v24  ;;  %v2737_v19 = vpop.f32.mrf.mxu3  ;;  %v2561_v27 = vpop.f32.mrf.mxu1  ;;  %v2473_v45 = vadd.f32 %v2472_v43, %v4811_v10 }
 0x433   : > { %v2738_v32 = vadd.f32 %v2737_v19, %v2649_v47  ;;  %v2562_v56 = vadd.f32 %v2561_v27, %v2473_v45 }
 0x435   : > { %v2802_v62 = vpack.c.bf16 %v2738_v32, %v4708_v8 }
 0x437   : > { %2834 = vst [vmem:[%s4823_s23 + $0x50] sm:$0xff] %v2802_v62 }
 0x438   : > { %v2650_v9 = vpop.f32.mrf.mxu2  ;;  %v2475_v20 = vpop.f32.mrf.mxu0 }
 0x439   : > { %v2651_v48 = vadd.f32 %v2650_v9, %v2562_v56  ;;  %v2739_v58 = vpop.f32.mrf.mxu3  ;;  %v2564_v17 = vpop.f32.mrf.mxu1  ;;  %v2476_v51 = vadd.f32 %v2475_v20, %v4811_v10 }
 0x43b   : > { %v2740_v49 = vadd.f32 %v2739_v58, %v2651_v48  ;;  %2514 = vmatmul.bf16.gmra.mxu0 %v4431_v1  ;;  %v2565_v8 = vadd.f32 %v2564_v17, %v2476_v51 }
 0x43c   : > { %2603 = vmatmul.bf16.gmra.mxu1 %v4439_v26 }
 0x43d   : > { %v2803_v23 = vpack.c.bf16 %v2740_v49, %v4711_v35  ;;  %2692 = vmatmul.bf16.gmra.mxu2 %v4627_v33 }
 0x43e   : > { %2781 = vmatmul.bf16.gmra.mxu3 %v4635_v22 }
 0x43f   : > { %2835 = vst [vmem:[%s4823_s23 + $0x58] sm:$0xff] %v2803_v23 }
 0x440   : > { %v2653_v11 = vpop.f32.mrf.mxu2  ;;  %v2477_v14 = vpop.f32.mrf.mxu0 }
 0x441   : > { %v2654_v21 = vadd.f32 %v2653_v11, %v2565_v8  ;;  %v2742_v53 = vpop.f32.mrf.mxu3  ;;  %v2566_v41 = vpop.f32.mrf.mxu1  ;;  %v2478_v25 = vadd.f32 %v2477_v14, %v4811_v10 }
 0x443   : > { %v2743_v42 = vadd.f32 %v2742_v53, %v2654_v21  ;;  %v2567_v35 = vadd.f32 %v2566_v41, %v2478_v25 }
 0x445   : > { %v2804_v1 = vpack.c.bf16 %v2743_v42, %v4718_v2  ;;  %v5102_v2 = vld [vmem:[#allocation45_spill] sm:$0xff] }
 0x447   : > { %2836 = vst [vmem:[%s4823_s23 + $0x60] sm:$0xff] %v2804_v1 }
 0x448   : > { %v2655_v26 = vpop.f32.mrf.mxu2  ;;  %v2480_v18 = vpop.f32.mrf.mxu0 }
 0x449   : > { %v2656_v52 = vadd.f32 %v2655_v26, %v2567_v35  ;;  %v2744_v33 = vpop.f32.mrf.mxu3  ;;  %v2569_v22 = vpop.f32.mrf.mxu1  ;;  %v2481_v60 = vadd.f32 %v2480_v18, %v4811_v10 }
 0x44b   : > { %v2745_v30 = vadd.f32 %v2744_v33, %v2656_v52  ;;  %2519 = vmatmul.bf16.gmra.mxu0 %v4445_v40  ;;  %v2570_v16 = vadd.f32 %v2569_v22, %v2481_v60 }
 0x44c   : > { %2608 = vmatmul.bf16.gmra.mxu1 %v4455_v29 }
 0x44d   : > { %v2805_v36 = vpack.c.bf16 %v2745_v30, %v4721_v38  ;;  %2697 = vmatmul.bf16.gmra.mxu2 %v5101_v31 }
 0x44e   : > { %2786 = vmatmul.bf16.gmra.mxu3 %v5102_v2 }
 0x44f   : > { %2837 = vst [vmem:[%s4823_s23 + $0x68] sm:$0xff] %v2805_v36 }
 0x450   : > { %v2658_v63 = vpop.f32.mrf.mxu2  ;;  %v2482_v55 = vpop.f32.mrf.mxu0 }
 0x451   : > { %v2659_v13 = vadd.f32 %v2658_v63, %v2570_v16  ;;  %v2747_v61 = vpop.f32.mrf.mxu3  ;;  %v2571_v37 = vpop.f32.mrf.mxu1  ;;  %v2483_v12 = vadd.f32 %v2482_v55, %v4811_v10 }
 0x453   : > { %v2748_v4 = vadd.f32 %v2747_v61, %v2659_v13  ;;  %v2572_v38 = vadd.f32 %v2571_v37, %v2483_v12 }
 0x455   : > { %v2806_v40 = vpack.c.bf16 %v2748_v4, %v4728_v46 }
 0x457   : > { %2838 = vst [vmem:[%s4823_s23 + $0x70] sm:$0xff] %v2806_v40 }
 0x458   : > { %v2660_v29 = vpop.f32.mrf.mxu2  ;;  %v2485_v47 = vpop.f32.mrf.mxu0 }
 0x459   : > { %v2661_v24 = vadd.f32 %v2660_v29, %v2572_v38  ;;  %v2749_v7 = vpop.f32.mrf.mxu3  ;;  %v2574_v19 = vpop.f32.mrf.mxu1  ;;  %v2486_v27 = vadd.f32 %v2485_v47, %v4811_v10 }
 0x45b   : > { %v2750_v43 = vadd.f32 %v2749_v7, %v2661_v24  ;;  %v2575_v45 = vadd.f32 %v2574_v19, %v2486_v27  ;;  %v5103_v27 = vld [vmem:[#allocation26_spill] sm:$0xff] }
 0x45d   : > { %v2807_v32 = vpack.c.bf16 %v2750_v43, %v4731_v0 }
 0x45f   : > { %2839 = vst [vmem:[%s4823_s23 + $0x78] sm:$0xff] %v2807_v32 }
 0x460   : > { %v2663_v62 = vpop.f32.mrf.mxu2  ;;  %v2487_v46 = vpop.f32.mrf.mxu0 }
 0x461   : > { %v2664_v56 = vadd.f32 %v2663_v62, %v2575_v45  ;;  %v2752_v9 = vpop.f32.mrf.mxu3  ;;  %v2576_v48 = vpop.f32.mrf.mxu1  ;;  %v2488_v20 = vadd.f32 %v2487_v46, %v4811_v10 }
 0x463   : > { %v2753_v58 = vadd.f32 %v2752_v9, %v2664_v56  ;;  %v2577_v49 = vadd.f32 %v2576_v48, %v2488_v20 }
 0x465   : > { %v2808_v17 = vpack.c.bf16 %v2753_v58, %v4738_v59 }
 0x467   : > { %2840 = vst [vmem:[%s4823_s23 + $0x80] sm:$0xff] %v2808_v17 }
 0x468   : > { %v2665_v51 = vpop.f32.mrf.mxu2  ;;  %v2490_v0 = vpop.f32.mrf.mxu0 }
 0x469   : > { %v2666_v23 = vadd.f32 %v2665_v51, %v2577_v49  ;;  %v2754_v8 = vpop.f32.mrf.mxu3  ;;  %v2579_v11 = vpop.f32.mrf.mxu1  ;;  %v2491_v53 = vadd.f32 %v2490_v0, %v4811_v10 }
 0x46b   : > { %v2755_v21 = vadd.f32 %v2754_v8, %v2666_v23  ;;  %v2580_v41 = vadd.f32 %v2579_v11, %v2491_v53  ;;  %v5104_v53 = vld [vmem:[#allocation27_spill] sm:$0xff] }
 0x46d   : > { %v2809_v14 = vpack.c.bf16 %v2755_v21, %v4741_v50 }
 0x46f   : > { %2841 = vst [vmem:[%s4823_s23 + $0x88] sm:$0xff] %v2809_v14 }
 0x470   : > { %v2668_v42 = vpop.f32.mrf.mxu2  ;;  %v2492_v59 = vpop.f32.mrf.mxu0 }
 0x471   : > { %v2669_v25 = vadd.f32 %v2668_v42, %v2580_v41  ;;  %v2757_v1 = vpop.f32.mrf.mxu3  ;;  %v2581_v35 = vpop.f32.mrf.mxu1  ;;  %v2493_v52 = vadd.f32 %v2492_v59, %v4811_v10 }
 0x473   : > { %v2758_v26 = vadd.f32 %v2757_v1, %v2669_v25  ;;  %v2582_v18 = vadd.f32 %v2581_v35, %v2493_v52 }
 0x475   : > { %v2810_v33 = vpack.c.bf16 %v2758_v26, %v4748_v54 }
 0x477   : > { %2842 = vst [vmem:[%s4823_s23 + $0x90] sm:$0xff] %v2810_v33 }
 0x478   : > { %v2670_v22 = vpop.f32.mrf.mxu2  ;;  %v2495_v50 = vpop.f32.mrf.mxu0 }
 0x479   : > { %v2671_v30 = vadd.f32 %v2670_v22, %v2582_v18  ;;  %v2759_v60 = vpop.f32.mrf.mxu3  ;;  %v2584_v36 = vpop.f32.mrf.mxu1  ;;  %v2496_v2 = vadd.f32 %v2495_v50, %v4811_v10 }
 0x47b   : > { %v2760_v31 = vadd.f32 %v2759_v60, %v2671_v30  ;;  %v2585_v63 = vadd.f32 %v2584_v36, %v2496_v2  ;;  %v5105_v2 = vld [vmem:[#allocation28_spill] sm:$0xff] }
 0x47d   : > { %v2811_v16 = vpack.c.bf16 %v2760_v31, %v4751_v15 }
 0x47f   : > { %2843 = vst [vmem:[%s4823_s23 + $0x98] sm:$0xff] %v2811_v16 }
 0x480   : > { %v2673_v13 = vpop.f32.mrf.mxu2  ;;  %v2497_v54 = vpop.f32.mrf.mxu0 }
 0x481   : > { %v2674_v61 = vadd.f32 %v2673_v13, %v2585_v63  ;;  %v2762_v55 = vpop.f32.mrf.mxu3  ;;  %v2586_v37 = vpop.f32.mrf.mxu1  ;;  %v2498_v12 = vadd.f32 %v2497_v54, %v4811_v10 }
 0x483   : > { %v2763_v4 = vadd.f32 %v2762_v55, %v2674_v61  ;;  %v2587_v38 = vadd.f32 %v2586_v37, %v2498_v12 }
 0x485   : > { %v2812_v40 = vpack.c.bf16 %v2763_v4, %v4758_v34 }
 0x487   : > { %2844 = vst [vmem:[%s4823_s23 + $0xa0] sm:$0xff] %v2812_v40 }
 0x488   : > { %v2675_v29 = vpop.f32.mrf.mxu2  ;;  %v2500_v15 = vpop.f32.mrf.mxu0 }
 0x489   : > { %v2676_v24 = vadd.f32 %v2675_v29, %v2587_v38  ;;  %v2764_v7 = vpop.f32.mrf.mxu3  ;;  %v2589_v47 = vpop.f32.mrf.mxu1  ;;  %v2501_v43 = vadd.f32 %v2500_v15, %v4811_v10 }
 0x48b   : > { %v2765_v19 = vadd.f32 %v2764_v7, %v2676_v24  ;;  %v2590_v45 = vadd.f32 %v2589_v47, %v2501_v43  ;;  %v5106_v43 = vld [vmem:[#allocation15_spill] sm:$0xff] }
 0x48d   : > { %v2813_v32 = vpack.c.bf16 %v2765_v19, %v5103_v27 }
 0x48f   : > { %2845 = vst [vmem:[%s4823_s23 + $0xa8] sm:$0xff] %v2813_v32 }
 0x490   : > { %v2678_v62 = vpop.f32.mrf.mxu2  ;;  %v2502_v34 = vpop.f32.mrf.mxu0 }
 0x491   : > { %v2679_v56 = vadd.f32 %v2678_v62, %v2590_v45  ;;  %v2767_v9 = vpop.f32.mrf.mxu3  ;;  %v2591_v46 = vpop.f32.mrf.mxu1  ;;  %v2503_v58 = vadd.f32 %v2502_v34, %v4811_v10 }
 0x493   : > { %v2768_v48 = vadd.f32 %v2767_v9, %v2679_v56  ;;  %v2592_v17 = vadd.f32 %v2591_v46, %v2503_v58 }
 0x495   : > { %v2814_v20 = vpack.c.bf16 %v2768_v48, %v4768_v5 }
 0x497   : > { %2846 = vst [vmem:[%s4823_s23 + $0xb0] sm:$0xff] %v2814_v20 }
 0x498   : > { %v2680_v49 = vpop.f32.mrf.mxu2  ;;  %v2505_v8 = vpop.f32.mrf.mxu0 }
 0x499   : > { %v2681_v51 = vadd.f32 %v2680_v49, %v2592_v17  ;;  %v2769_v23 = vpop.f32.mrf.mxu3  ;;  %v2594_v0 = vpop.f32.mrf.mxu1  ;;  %v2506_v21 = vadd.f32 %v2505_v8, %v4811_v10 }
 0x49b   : > { %v2770_v11 = vadd.f32 %v2769_v23, %v2681_v51  ;;  %v2595_v41 = vadd.f32 %v2594_v0, %v2506_v21 }
 0x49d   : > { %v2815_v14 = vpack.c.bf16 %v2770_v11, %v5104_v53 }
 0x49f   : > { %2847 = vst [vmem:[%s4823_s23 + $0xb8] sm:$0xff] %v2815_v14 }
 0x4a0   : > { %v2683_v42 = vpop.f32.mrf.mxu2  ;;  %v2507_v5 = vpop.f32.mrf.mxu0 }
 0x4a1   : > { %v2684_v25 = vadd.f32 %v2683_v42, %v2595_v41  ;;  %v2772_v1 = vpop.f32.mrf.mxu3  ;;  %v2596_v59 = vpop.f32.mrf.mxu1  ;;  %v2508_v26 = vadd.f32 %v2507_v5, %v4811_v10 }
 0x4a3   : > { %v2773_v35 = vadd.f32 %v2772_v1, %v2684_v25  ;;  %v2597_v33 = vadd.f32 %v2596_v59, %v2508_v26 }
 0x4a5   : > { %v2816_v52 = vpack.c.bf16 %v2773_v35, %v4778_v39 }
 0x4a7   : > { %2848 = vst [vmem:[%s4823_s23 + $0xc0] sm:$0xff] %v2816_v52 }
 0x4a8   : > { %v2685_v18 = vpop.f32.mrf.mxu2  ;;  %v2510_v60 = vpop.f32.mrf.mxu0 }
 0x4a9   : > { %v2686_v22 = vadd.f32 %v2685_v18, %v2597_v33  ;;  %v2774_v30 = vpop.f32.mrf.mxu3  ;;  %v2599_v50 = vpop.f32.mrf.mxu1  ;;  %v2511_v31 = vadd.f32 %v2510_v60, %v4811_v10 }
 0x4ab   : > { %v2775_v36 = vadd.f32 %v2774_v30, %v2686_v22  ;;  %v2600_v63 = vadd.f32 %v2599_v50, %v2511_v31 }
 0x4ad   : > { %v2817_v16 = vpack.c.bf16 %v2775_v36, %v5105_v2 }
 0x4af   : > { %2849 = vst [vmem:[%s4823_s23 + $0xc8] sm:$0xff] %v2817_v16 }
 0x4b0   : > { %v2688_v13 = vpop.f32.mrf.mxu2  ;;  %v2512_v39 = vpop.f32.mrf.mxu0 }
 0x4b1   : > { %v2689_v61 = vadd.f32 %v2688_v13, %v2600_v63  ;;  %v2777_v55 = vpop.f32.mrf.mxu3  ;;  %v2601_v54 = vpop.f32.mrf.mxu1  ;;  %v2513_v4 = vadd.f32 %v2512_v39, %v4811_v10 }
 0x4b3   : > { %v2778_v37 = vadd.f32 %v2777_v55, %v2689_v61  ;;  %v2602_v40 = vadd.f32 %v2601_v54, %v2513_v4 }
 0x4b5   : > { %v2818_v12 = vpack.c.bf16 %v2778_v37, %v4788_v3 }
 0x4b7   : > { %2850 = vst [vmem:[%s4823_s23 + $0xd0] sm:$0xff] %v2818_v12 }
 0x4b8   : > { %v2690_v38 = vpop.f32.mrf.mxu2  ;;  %v2515_v7 = vpop.f32.mrf.mxu0 }
 0x4b9   : > { %v2691_v29 = vadd.f32 %v2690_v38, %v2602_v40  ;;  %v2779_v24 = vpop.f32.mrf.mxu3  ;;  %v2604_v15 = vpop.f32.mrf.mxu1  ;;  %v2516_v19 = vadd.f32 %v2515_v7, %v4811_v10 }
 0x4bb   : > { %v2780_v47 = vadd.f32 %v2779_v24, %v2691_v29  ;;  %v2605_v32 = vadd.f32 %v2604_v15, %v2516_v19 }
 0x4bd   : > { %v2819_v27 = vpack.c.bf16 %v2780_v47, %v5106_v43 }
 0x4bf   : > { %2851 = vst [vmem:[%s4823_s23 + $0xd8] sm:$0xff] %v2819_v27 }
 0x4c0   : > { %v2693_v45 = vpop.f32.mrf.mxu2  ;;  %v2517_v3 = vpop.f32.mrf.mxu0 }
 0x4c1   : > { %v2694_v62 = vadd.f32 %v2693_v45, %v2605_v32  ;;  %v2782_v56 = vpop.f32.mrf.mxu3  ;;  %v2606_v9 = vpop.f32.mrf.mxu1  ;;  %v2518_v46 = vadd.f32 %v2517_v3, %v4811_v10 }
 0x4c3   : > { %v2783_v34 = vadd.f32 %v2782_v56, %v2694_v62  ;;  %v2607_v58 = vadd.f32 %v2606_v9, %v2518_v46 }
 0x4c5   : > { %v2820_v48 = vpack.c.bf16 %v2783_v34, %v4798_v57 }
 0x4c7   : > { %2852 = vst [vmem:[%s4823_s23 + $0xe0] sm:$0xff] %v2820_v48 }
 0x4c8   : > { %v2695_v20 = vpop.f32.mrf.mxu2  ;;  %v2520_v51 = vpop.f32.mrf.mxu0 }
 0x4c9   : > { %v2696_v17 = vadd.f32 %v2695_v20, %v2607_v58  ;;  %v2784_v49 = vpop.f32.mrf.mxu3  ;;  %v2521_v8 = vadd.f32 %v2520_v51, %v4811_v10  ;;  %v2609_v0 = vpop.f32.mrf.mxu1 }
 0x4cb   : > { %v2785_v23 = vadd.f32 %v2784_v49, %v2696_v17  ;;  %v2610_v21 = vadd.f32 %v2609_v0, %v2521_v8 }
 0x4cd   : > { %v2821_v11 = vpack.c.bf16 %v2785_v23, %v4801_v28 }
 0x4cf   : > { %2853 = vst [vmem:[%s4823_s23 + $0xe8] sm:$0xff] %v2821_v11 }
 0x4d0   : > { %v2698_v53 = vpop.f32.mrf.mxu2  ;;  %v2522_v41 = vpop.f32.mrf.mxu0 }
 0x4d1   : > { %v2699_v14 = vadd.f32 %v2698_v53, %v2610_v21  ;;  %v2787_v57 = vpop.f32.mrf.mxu3  ;;  %v2523_v25 = vadd.f32 %v2522_v41, %v4811_v10  ;;  %v2611_v5 = vpop.f32.mrf.mxu1 }
 0x4d3   : > { %v2788_v42 = vadd.f32 %v2787_v57, %v2699_v14  ;;  %v2612_v28 = vadd.f32 %v2611_v5, %v2523_v25 }
 0x4d5   : > { %v2822_v1 = vpack.c.bf16 %v2788_v42, %v4808_v6 }
 0x4d7   : > { %2854 = vst [vmem:[%s4823_s23 + $0xf0] sm:$0xff] %v2822_v1 }
 0x4d8   : > { %v2700_v59 = vpop.f32.mrf.mxu2 }
 0x4d9   : > { %v2701_v35 = vadd.f32 %v2700_v59, %v2612_v28  ;;  %v2789_v26 = vpop.f32.mrf.mxu3 }
 0x4db   : > { %v2790_v52 = vadd.f32 %v2789_v26, %v2701_v35 }
 0x4dd   : > { %v2823_v10 = vpack.c.bf16 %v2790_v52, %v4813_v44 }
 0x4df   : > { %2855 = vst [vmem:[%s4823_s23 + $0xf8] sm:$0xff] %v2823_v10 }
 0x4e0   : > { %3872 = shalt.err (!%p3869_p10)
}
 0x4e1   : > { %s3928_s26 = smov 128   ;;  %s3929_s12 = smov 8  }
 0x4e2   : > { %3655 = dma.vmem_to_hbm [thread:$0]  (%p4044_p0), %s2871_s7, 4096, %s2873_s16, %s2857_s22, %s3928_s26, %s3928_s26, %s3929_s12  }
 0x4e3 PF: > { %p3682_p11 = scmp.ge.s32.totalorder %s3919_s21, 2  ;;  %s2887_s23 = sand.u32 1, %s3907_s18  }
 0x4e4   : > { %s2888_s27 = scalar_lea.sflag [#allocation4], %s2887_s23 }
 0x4e5   : > { %p3672_p12 = pnand %p3682_p11, %p3995_p6 }
 0x4e7   : > { %p3673_p13 = pneg %p3672_p12 }
 0x4e9   : > { %3902 = dma.done.wait (%p3673_p13), %s2888_s27, 4096  }
 0x4ea   : > { %3904 = vsyncadd (%p3673_p13), %s2888_s27, 4294963200  ;;  %p20_p3 = scmp.ge.s32.totalorder %s4031_s30, 6   ;;  %s5107_s18 = smov %s3911_s19 }
 0x4eb   : > { %s5108_s19 = smov %s3915_s20  ;;  %s5109_s20 = smov %s4040_s9 }
 0x4ec   : > { %s5110_s21 = smov %s4031_s30  ;;  %22 = sbr.rel (!%p20_p3) target bundleno = 7 (0x7), region = 97 }
 0x4f1   :  { %2894 = vsyncpa [#allocation3], 1 }
 0x4f2   :  { %2896 = vsyncpa [#allocation3 + $0x1], 1 }
 0x4f3   :  { %2897 = vsyncpa [#allocation6], 1 }
 0x4f4   :  { %2898 = vsyncpa [#allocation9], 1 }
 0x4f5   :  { %2899 = vsyncpa [#allocation4], 1 }
 0x4f6   :  { %2901 = vsyncpa [#allocation4 + $0x1], 1 }

</bundles_post_ra>
